<compile_context>
chip_gen: v7x
topology: tpu7x:2x2x1
jax: 0.10.0
libtpu: 0.0.40
codegen_flags: <defaults>
</compile_context>

<pallas_src>
import math
import numpy as np

import jax
import jax.numpy as jnp
from jax.experimental import pallas as pl
from jax.experimental.pallas import tpu as pltpu

# ----- model hyper-parameters (scaled-down but structurally identical) -------
DIM = 128           # d_model (PyTorch default 192); multiple of 128 -> lane-dense
DEPTH = 2           # encoder depth (PyTorch default 12)
HEAD_SIZE = 32
N_HEADS = DIM // HEAD_SIZE
FF_DIM = 4 * DIM
LN_EPS = 1e-5


# ----------------------------- in-kernel helpers -----------------------------
def _layer_norm_f32(x, g, b):
    mu = jnp.mean(x, axis=-1, keepdims=True)
    xc = x - mu
    var = jnp.mean(xc * xc, axis=-1, keepdims=True)
    return xc * jax.lax.rsqrt(var + LN_EPS) * g + b


def _gelu_exact(x):
    # Exact (erf) GELU matching nn.GELU() default.  erf via Abramowitz-Stegun
    # 7.1.26 (|err| <= 1.5e-7 ~ f32 eps), built only from exp/mul/add/div so it
    # lowers on every Mosaic generation (no math-lib erf dependency).
    p = 0.3275911
    a1, a2, a3, a4, a5 = 0.254829592, -0.284496736, 1.421413741, -1.453152027, 1.061405429
    z = x * (1.0 / math.sqrt(2.0))
    sgn = jnp.where(z >= 0.0, 1.0, -1.0)
    az = jnp.abs(z)
    t = 1.0 / (1.0 + p * az)
    poly = ((((a5 * t + a4) * t + a3) * t + a2) * t + a1) * t
    erf = sgn * (1.0 - poly * jnp.exp(-az * az))
    return 0.5 * x * (1.0 + erf)


# -------------------------- fused encoder-layer kernel ------------------------
def _encoder_layer_kernel(x_ref, bias_ref,
                          ln1_g_ref, ln1_b_ref, w_qkv_ref, b_qkv_ref,
                          w_o_ref, b_o_ref,
                          ln2_g_ref, ln2_b_ref, w_ff1_ref, b_ff1_ref,
                          w_ff2_ref, b_ff2_ref,
                          o_ref):
    f32, bf16 = jnp.float32, jnp.bfloat16
    x = x_ref[0].astype(f32)                       # [L, D]
    bias = bias_ref[0].astype(f32)                 # [1, L] key-padding bias (per batch)

    # --- self-attention block (norm_first) ---
    h = _layer_norm_f32(x, ln1_g_ref[...], ln1_b_ref[...])
    qkv = jnp.dot(h.astype(bf16), w_qkv_ref[...],
                  preferred_element_type=f32) + b_qkv_ref[...]      # [L, 3D] f32
    w_o = w_o_ref[...]                                              # [D, D] bf16 (hoisted)
    scale = 1.0 / math.sqrt(HEAD_SIZE)
    attn = jnp.zeros_like(x)                                        # accumulates out-proj
    for hd in range(N_HEADS):                                       # trace-time unrolled
        lo = hd * HEAD_SIZE
        q = (qkv[:, lo:lo + HEAD_SIZE] * scale).astype(bf16)            # [L, Dh]
        k = qkv[:, DIM + lo:DIM + lo + HEAD_SIZE].astype(bf16)          # [L, Dh]
        v = qkv[:, 2 * DIM + lo:2 * DIM + lo + HEAD_SIZE].astype(bf16)  # [L, Dh]
        s = jnp.einsum("qd,kd->qk", q, k, preferred_element_type=f32) + bias
        m = jnp.max(s, axis=-1, keepdims=True)
        p = jnp.exp(s - m)
        p = p * pl.reciprocal(jnp.sum(p, axis=-1, keepdims=True), approx=True)
        o_h = jnp.dot(p.astype(bf16), v, preferred_element_type=f32)    # [L, Dh]
        # fold this head's slice of the out-projection into the accumulator
        attn = attn + jnp.dot(o_h.astype(bf16), w_o[lo:lo + HEAD_SIZE, :],
                              preferred_element_type=f32)
    x = x + attn + b_o_ref[...]                    # residual fused (dropout1: identity)

    # --- feed-forward block (norm_first) ---
    h = _layer_norm_f32(x, ln2_g_ref[...], ln2_b_ref[...])
    h1 = jnp.dot(h.astype(bf16), w_ff1_ref[...],
                 preferred_element_type=f32) + b_ff1_ref[...]
    g = _gelu_exact(h1)
    h2 = jnp.dot(g.astype(bf16), w_ff2_ref[...],
                 preferred_element_type=f32) + b_ff2_ref[...]
    o_ref[0] = (x + h2).astype(o_ref.dtype)        # residual fused (dropout2: identity)


def encoder_layer(x, key_bias, p):
    B, L, D = x.shape

    def resident(a):                               # weight stays in VMEM across grid steps
        nd = a.ndim
        return pl.BlockSpec(a.shape, lambda b, _n=nd: (0,) * _n)

    row_spec = pl.BlockSpec((1, L, D), lambda b: (b, 0, 0))
    bias_spec = pl.BlockSpec((1, 1, L), lambda b: (b, 0, 0))
    weights = (p["ln1_g"], p["ln1_b"], p["w_qkv"], p["b_qkv"], p["w_o"], p["b_o"],
               p["ln2_g"], p["ln2_b"], p["w_ff1"], p["b_ff1"], p["w_ff2"], p["b_ff2"])

    return pl.pallas_call(
        _encoder_layer_kernel,
        out_shape=jax.ShapeDtypeStruct((B, L, D), x.dtype),
        grid=(B,),
        in_specs=[row_spec, bias_spec] + [resident(w) for w in weights],
        out_specs=row_spec,
        compiler_params=pltpu.CompilerParams(
            dimension_semantics=("parallel",),          # megacore / 2-TC sharding over batch
            vmem_limit_bytes=32 * 1024 * 1024),         # safe on v5e/v6e (128 MiB) and v7x (64 MiB)
    )(x, key_bias, *weights)


# ------------------------------ model (glue) ---------------------------------
def sinusoidal_pos_emb(length, dim, M=10000):
    half = dim // 2
    freq = jnp.exp(jnp.arange(half, dtype=jnp.float32) * -(math.log(M) / half))
    ang = jnp.arange(length, dtype=jnp.float32)[:, None] * freq[None, :]
    return jnp.concatenate([jnp.sin(ang), jnp.cos(ang)], axis=-1)   # [L, dim]


def rna_model_forward(params, seq, mask):
    """seq: int32 [B, Lpad] tokens in {0..3}; mask: bool [B, Lpad] (padded rows False)."""
    B, L = seq.shape
    pos = sinusoidal_pos_emb(L, DIM)
    x = params["emb"][seq] + pos[None]                               # [B, L, D] f32 (gather: XLA glue)
    key_bias = jnp.where(mask, 0.0, -1e30).astype(jnp.float32)[:, None, :]   # [B, 1, L], per-batch only
    for lp in params["layers"]:
        x = encoder_layer(x, key_bias, lp)
    # Final dim->2 head in plain XLA: a Pallas store with last dim 2 would be
    # masked-partial-store bound and the matmul is negligible.
    out = jnp.einsum("bld,dn->bln", x, params["proj_w"]) + params["proj_b"]
    return out                                                       # [B, Lpad, 2]


def init_params(key):
    n_rand = 2 + DEPTH * 8
    keys = iter(jax.random.split(key, n_rand))

    def nrm(shape, scale=0.02, dtype=jnp.float32):
        return (scale * jax.random.normal(next(keys), shape, jnp.float32)).astype(dtype)

    params = {
        "emb": nrm((4, DIM), 1.0),                  # nn.Embedding(4, dim)
        "proj_w": nrm((DIM, 2)),                    # nn.Linear(dim, 2)  (XLA head)
        "proj_b": jnp.zeros((2,), jnp.float32),
        "layers": [],
    }
    for _ in range(DEPTH):
        params["layers"].append({
            "ln1_g": jnp.ones((1, DIM), jnp.float32),
            "ln1_b": jnp.zeros((1, DIM), jnp.float32),
            "ln2_g": jnp.ones((1, DIM), jnp.float32),
            "ln2_b": jnp.zeros((1, DIM), jnp.float32),
            "w_qkv": nrm((DIM, 3 * DIM), dtype=jnp.bfloat16),   # in_proj (q|k|v), stored [in, out]
            "b_qkv": nrm((1, 3 * DIM)),
            "w_o":   nrm((DIM, DIM), dtype=jnp.bfloat16),       # attn out_proj, stored [in, out]
            "b_o":   nrm((1, DIM)),
            "w_ff1": nrm((DIM, FF_DIM), dtype=jnp.bfloat16),    # linear1
            "b_ff1": nrm((1, FF_DIM)),
            "w_ff2": nrm((FF_DIM, DIM), dtype=jnp.bfloat16),    # linear2
            "b_ff2": nrm((1, DIM)),
        })
    return params


if __name__ == "__main__":
    key = jax.random.PRNGKey(0)
    pkey, skey = jax.random.split(key)
    params = init_params(pkey)

    # small synthetic batch consistent with the module: tokens in {0..3}, bool mask
    B, Lfull = 2, 24
    lengths = np.array([20, 14], dtype=np.int32)
    mask_np = np.zeros((B, Lfull), dtype=bool)
    for i, l in enumerate(lengths):
        mask_np[i, :l] = True
    seq_np = np.asarray(jax.random.randint(skey, (B, Lfull), 0, 4, dtype=jnp.int32))

    # Lmax = mask.sum(-1).max() (dynamic in PyTorch; resolved host-side here),
    # then padded to a multiple of 8 for sublane-aligned tiles (padded keys masked).
    Lmax = int(mask_np.sum(-1).max())
    Lpad = ((Lmax + 7) // 8) * 8
    seq = np.zeros((B, Lpad), dtype=np.int32)
    seq[:, :Lmax] = seq_np[:, :Lmax]
    mask = np.zeros((B, Lpad), dtype=bool)
    mask[:, :Lmax] = mask_np[:, :Lmax]

    fwd = jax.jit(rna_model_forward)
    out = fwd(params, jnp.asarray(seq), jnp.asarray(mask))
    out = jax.block_until_ready(out)[:, :Lmax]      # drop padded rows -> [B, Lmax, 2]
    assert out.shape == (B, Lmax, 2), out.shape
    assert bool(jnp.all(jnp.isfinite(out)))
    print("KERNEL_OK")
</pallas_src>

<mosaic_0001>
module attributes {stable_mosaic.version = 11 : i64} {
  func.func @_encoder_layer_kernel(%arg0: i32, %arg1: memref<1x24x128xf32, #tpu.memory_space<vmem>>, %arg2: memref<1x1x24xf32, #tpu.memory_space<vmem>>, %arg3: memref<1x128xf32, #tpu.memory_space<vmem>>, %arg4: memref<1x128xf32, #tpu.memory_space<vmem>>, %arg5: memref<128x384xbf16, #tpu.memory_space<vmem>>, %arg6: memref<1x384xf32, #tpu.memory_space<vmem>>, %arg7: memref<128x128xbf16, #tpu.memory_space<vmem>>, %arg8: memref<1x128xf32, #tpu.memory_space<vmem>>, %arg9: memref<1x128xf32, #tpu.memory_space<vmem>>, %arg10: memref<1x128xf32, #tpu.memory_space<vmem>>, %arg11: memref<128x512xbf16, #tpu.memory_space<vmem>>, %arg12: memref<1x512xf32, #tpu.memory_space<vmem>>, %arg13: memref<512x128xbf16, #tpu.memory_space<vmem>>, %arg14: memref<1x128xf32, #tpu.memory_space<vmem>>, %arg15: memref<1x24x128xf32, #tpu.memory_space<vmem>>) attributes {dimension_semantics = [#tpu.dimension_semantics<parallel>], iteration_bounds = array<i64: 2>, scalar_prefetch = 0 : i64, scratch_operands = 0 : i64, tpu.core_type = #tpu.core_type<tc>, window_params = [{transform_indices = @transform_0, window_bounds = array<i64: 1, 24, 128>}, {transform_indices = @transform_1, window_bounds = array<i64: 1, 1, 24>}, {pipeline_mode = #tpu.pipeline_mode<synchronous>, transform_indices = @transform_2, window_bounds = array<i64: 1, 128>}, {pipeline_mode = #tpu.pipeline_mode<synchronous>, transform_indices = @transform_3, window_bounds = array<i64: 1, 128>}, {pipeline_mode = #tpu.pipeline_mode<synchronous>, transform_indices = @transform_4, window_bounds = array<i64: 128, 384>}, {pipeline_mode = #tpu.pipeline_mode<synchronous>, transform_indices = @transform_5, window_bounds = array<i64: 1, 384>}, {pipeline_mode = #tpu.pipeline_mode<synchronous>, transform_indices = @transform_6, window_bounds = array<i64: 128, 128>}, {pipeline_mode = #tpu.pipeline_mode<synchronous>, transform_indices = @transform_7, window_bounds = array<i64: 1, 128>}, {pipeline_mode = #tpu.pipeline_mode<synchronous>, transform_indices = @transform_8, window_bounds = array<i64: 1, 128>}, {pipeline_mode = #tpu.pipeline_mode<synchronous>, transform_indices = @transform_9, window_bounds = array<i64: 1, 128>}, {pipeline_mode = #tpu.pipeline_mode<synchronous>, transform_indices = @transform_10, window_bounds = array<i64: 128, 512>}, {pipeline_mode = #tpu.pipeline_mode<synchronous>, transform_indices = @transform_11, window_bounds = array<i64: 1, 512>}, {pipeline_mode = #tpu.pipeline_mode<synchronous>, transform_indices = @transform_12, window_bounds = array<i64: 512, 128>}, {pipeline_mode = #tpu.pipeline_mode<synchronous>, transform_indices = @transform_13, window_bounds = array<i64: 1, 128>}, {transform_indices = @transform_14, window_bounds = array<i64: 1, 24, 128>}]} {
    %c0 = arith.constant 0 : index
    %c0_0 = arith.constant 0 : index
    %c0_1 = arith.constant 0 : index
    %0 = vector.load %arg1[%c0, %c0_0, %c0_1] : memref<1x24x128xf32, #tpu.memory_space<vmem>>, vector<1x24x128xf32>
    %1 = vector.shape_cast %0 : vector<1x24x128xf32> to vector<24x128xf32>
    %c0_2 = arith.constant 0 : index
    %c0_3 = arith.constant 0 : index
    %c0_4 = arith.constant 0 : index
    %2 = vector.load %arg2[%c0_2, %c0_3, %c0_4] : memref<1x1x24xf32, #tpu.memory_space<vmem>>, vector<1x1x24xf32>
    %3 = vector.shape_cast %2 : vector<1x1x24xf32> to vector<1x24xf32>
    %c0_5 = arith.constant 0 : index
    %c0_6 = arith.constant 0 : index
    %4 = vector.load %arg3[%c0_5, %c0_6] : memref<1x128xf32, #tpu.memory_space<vmem>>, vector<1x128xf32>
    %c0_7 = arith.constant 0 : index
    %c0_8 = arith.constant 0 : index
    %5 = vector.load %arg4[%c0_7, %c0_8] : memref<1x128xf32, #tpu.memory_space<vmem>>, vector<1x128xf32>
    %cst = arith.constant dense<0.000000e+00> : vector<24xf32>
    %6 = vector.multi_reduction <add>, %1, %cst [1] : vector<24x128xf32> to vector<24xf32>
    %7 = vector.shape_cast %6 : vector<24xf32> to vector<24x1xf32>
    %cst_9 = arith.constant 1.280000e+02 : f32
    %8 = vector.broadcast %cst_9 : f32 to vector<24x1xf32>
    %9 = arith.divf %7, %8 : vector<24x1xf32>
    %10 = vector.broadcast %9 : vector<24x1xf32> to vector<24x128xf32>
    %11 = arith.subf %1, %10 : vector<24x128xf32>
    %12 = arith.mulf %11, %11 : vector<24x128xf32>
    %cst_10 = arith.constant dense<0.000000e+00> : vector<24xf32>
    %13 = vector.multi_reduction <add>, %12, %cst_10 [1] : vector<24x128xf32> to vector<24xf32>
    %14 = vector.shape_cast %13 : vector<24xf32> to vector<24x1xf32>
    %cst_11 = arith.constant 1.280000e+02 : f32
    %15 = vector.broadcast %cst_11 : f32 to vector<24x1xf32>
    %16 = arith.divf %14, %15 : vector<24x1xf32>
    %cst_12 = arith.constant 9.99999974E-6 : f32
    %17 = vector.broadcast %cst_12 : f32 to vector<24x1xf32>
    %18 = arith.addf %16, %17 : vector<24x1xf32>
    %19 = math.rsqrt %18 : vector<24x1xf32>
    %20 = vector.broadcast %19 : vector<24x1xf32> to vector<24x128xf32>
    %21 = arith.mulf %11, %20 : vector<24x128xf32>
    %22 = vector.broadcast %4 : vector<1x128xf32> to vector<24x128xf32>
    %23 = arith.mulf %21, %22 : vector<24x128xf32>
    %24 = vector.broadcast %5 : vector<1x128xf32> to vector<24x128xf32>
    %25 = arith.addf %23, %24 : vector<24x128xf32>
    %26 = arith.truncf %25 : vector<24x128xf32> to vector<24x128xbf16>
    %c0_13 = arith.constant 0 : index
    %c0_14 = arith.constant 0 : index
    %27 = vector.load %arg5[%c0_13, %c0_14] : memref<128x384xbf16, #tpu.memory_space<vmem>>, vector<128x384xbf16>
    %cst_15 = arith.constant dense<0.000000e+00> : vector<24x384xf32>
    %28 = tpu.matmul %26, %27, %cst_15 {dimension_numbers = #tpu.dot_dimension_numbers<[1], [0], [0], [1], [0, 0, 1, 1], [], []>} : vector<24x128xbf16>, vector<128x384xbf16>, vector<24x384xf32> -> vector<24x384xf32>
    %c0_16 = arith.constant 0 : index
    %c0_17 = arith.constant 0 : index
    %29 = vector.load %arg6[%c0_16, %c0_17] : memref<1x384xf32, #tpu.memory_space<vmem>>, vector<1x384xf32>
    %30 = vector.broadcast %29 : vector<1x384xf32> to vector<24x384xf32>
    %31 = arith.addf %28, %30 : vector<24x384xf32>
    %c0_18 = arith.constant 0 : index
    %c0_19 = arith.constant 0 : index
    %32 = vector.load %arg7[%c0_18, %c0_19] : memref<128x128xbf16, #tpu.memory_space<vmem>>, vector<128x128xbf16>
    %cst_20 = arith.constant 0.000000e+00 : f32
    %33 = vector.broadcast %cst_20 : f32 to vector<24x128xf32>
    %34 = vector.extract_strided_slice %31 {offsets = [0, 0], sizes = [24, 32], strides = [1, 1]} : vector<24x384xf32> to vector<24x32xf32>
    %cst_21 = arith.constant 0.176776692 : f32
    %35 = vector.broadcast %cst_21 : f32 to vector<24x32xf32>
    %36 = arith.mulf %34, %35 : vector<24x32xf32>
    %37 = arith.truncf %36 : vector<24x32xf32> to vector<24x32xbf16>
    %38 = vector.extract_strided_slice %31 {offsets = [0, 128], sizes = [24, 32], strides = [1, 1]} : vector<24x384xf32> to vector<24x32xf32>
    %39 = arith.truncf %38 : vector<24x32xf32> to vector<24x32xbf16>
    %40 = vector.extract_strided_slice %31 {offsets = [0, 256], sizes = [24, 32], strides = [1, 1]} : vector<24x384xf32> to vector<24x32xf32>
    %41 = arith.truncf %40 : vector<24x32xf32> to vector<24x32xbf16>
    "tpu.trace_start"() <{level = 10 : i32, message = "qd,kd->qk"}> : () -> ()
    %cst_22 = arith.constant dense<0.000000e+00> : vector<24x24xf32>
    %42 = tpu.matmul %37, %39, %cst_22 {dimension_numbers = #tpu.dot_dimension_numbers<[1], [1], [0], [0], [0, 0, 1, 0], [], []>} : vector<24x32xbf16>, vector<24x32xbf16>, vector<24x24xf32> -> vector<24x24xf32>
    "tpu.trace_stop"() : () -> ()
    %43 = vector.broadcast %3 : vector<1x24xf32> to vector<24x24xf32>
    %44 = arith.addf %42, %43 : vector<24x24xf32>
    %cst_23 = arith.constant dense<0xFF800000> : vector<24xf32>
    %45 = vector.multi_reduction <maximumf>, %44, %cst_23 [1] : vector<24x24xf32> to vector<24xf32>
    %46 = vector.shape_cast %45 : vector<24xf32> to vector<24x1xf32>
    %47 = vector.broadcast %46 : vector<24x1xf32> to vector<24x24xf32>
    %48 = arith.subf %44, %47 : vector<24x24xf32>
    %49 = math.exp %48 : vector<24x24xf32>
    %cst_24 = arith.constant dense<0.000000e+00> : vector<24xf32>
    %50 = vector.multi_reduction <add>, %49, %cst_24 [1] : vector<24x24xf32> to vector<24xf32>
    %51 = vector.shape_cast %50 : vector<24xf32> to vector<24x1xf32>
    %52 = tpu.reciprocal %51 {approx = true} : vector<24x1xf32> -> vector<24x1xf32>
    %53 = vector.broadcast %52 : vector<24x1xf32> to vector<24x24xf32>
    %54 = arith.mulf %49, %53 : vector<24x24xf32>
    %55 = arith.truncf %54 : vector<24x24xf32> to vector<24x24xbf16>
    %cst_25 = arith.constant dense<0.000000e+00> : vector<24x32xf32>
    %56 = tpu.matmul %55, %41, %cst_25 {dimension_numbers = #tpu.dot_dimension_numbers<[1], [0], [0], [1], [0, 0, 1, 1], [], []>} : vector<24x24xbf16>, vector<24x32xbf16>, vector<24x32xf32> -> vector<24x32xf32>
    %57 = arith.truncf %56 : vector<24x32xf32> to vector<24x32xbf16>
    %58 = vector.extract_strided_slice %32 {offsets = [0, 0], sizes = [32, 128], strides = [1, 1]} : vector<128x128xbf16> to vector<32x128xbf16>
    %cst_26 = arith.constant dense<0.000000e+00> : vector<24x128xf32>
    %59 = tpu.matmul %57, %58, %cst_26 {dimension_numbers = #tpu.dot_dimension_numbers<[1], [0], [0], [1], [0, 0, 1, 1], [], []>} : vector<24x32xbf16>, vector<32x128xbf16>, vector<24x128xf32> -> vector<24x128xf32>
    %60 = arith.addf %33, %59 : vector<24x128xf32>
    %61 = vector.extract_strided_slice %31 {offsets = [0, 32], sizes = [24, 32], strides = [1, 1]} : vector<24x384xf32> to vector<24x32xf32>
    %cst_27 = arith.constant 0.176776692 : f32
    %62 = vector.broadcast %cst_27 : f32 to vector<24x32xf32>
    %63 = arith.mulf %61, %62 : vector<24x32xf32>
    %64 = arith.truncf %63 : vector<24x32xf32> to vector<24x32xbf16>
    %65 = vector.extract_strided_slice %31 {offsets = [0, 160], sizes = [24, 32], strides = [1, 1]} : vector<24x384xf32> to vector<24x32xf32>
    %66 = arith.truncf %65 : vector<24x32xf32> to vector<24x32xbf16>
    %67 = vector.extract_strided_slice %31 {offsets = [0, 288], sizes = [24, 32], strides = [1, 1]} : vector<24x384xf32> to vector<24x32xf32>
    %68 = arith.truncf %67 : vector<24x32xf32> to vector<24x32xbf16>
    "tpu.trace_start"() <{level = 10 : i32, message = "qd,kd->qk"}> : () -> ()
    %cst_28 = arith.constant dense<0.000000e+00> : vector<24x24xf32>
    %69 = tpu.matmul %64, %66, %cst_28 {dimension_numbers = #tpu.dot_dimension_numbers<[1], [1], [0], [0], [0, 0, 1, 0], [], []>} : vector<24x32xbf16>, vector<24x32xbf16>, vector<24x24xf32> -> vector<24x24xf32>
    "tpu.trace_stop"() : () -> ()
    %70 = vector.broadcast %3 : vector<1x24xf32> to vector<24x24xf32>
    %71 = arith.addf %69, %70 : vector<24x24xf32>
    %cst_29 = arith.constant dense<0xFF800000> : vector<24xf32>
    %72 = vector.multi_reduction <maximumf>, %71, %cst_29 [1] : vector<24x24xf32> to vector<24xf32>
    %73 = vector.shape_cast %72 : vector<24xf32> to vector<24x1xf32>
    %74 = vector.broadcast %73 : vector<24x1xf32> to vector<24x24xf32>
    %75 = arith.subf %71, %74 : vector<24x24xf32>
    %76 = math.exp %75 : vector<24x24xf32>
    %cst_30 = arith.constant dense<0.000000e+00> : vector<24xf32>
    %77 = vector.multi_reduction <add>, %76, %cst_30 [1] : vector<24x24xf32> to vector<24xf32>
    %78 = vector.shape_cast %77 : vector<24xf32> to vector<24x1xf32>
    %79 = tpu.reciprocal %78 {approx = true} : vector<24x1xf32> -> vector<24x1xf32>
    %80 = vector.broadcast %79 : vector<24x1xf32> to vector<24x24xf32>
    %81 = arith.mulf %76, %80 : vector<24x24xf32>
    %82 = arith.truncf %81 : vector<24x24xf32> to vector<24x24xbf16>
    %cst_31 = arith.constant dense<0.000000e+00> : vector<24x32xf32>
    %83 = tpu.matmul %82, %68, %cst_31 {dimension_numbers = #tpu.dot_dimension_numbers<[1], [0], [0], [1], [0, 0, 1, 1], [], []>} : vector<24x24xbf16>, vector<24x32xbf16>, vector<24x32xf32> -> vector<24x32xf32>
    %84 = arith.truncf %83 : vector<24x32xf32> to vector<24x32xbf16>
    %85 = vector.extract_strided_slice %32 {offsets = [32, 0], sizes = [32, 128], strides = [1, 1]} : vector<128x128xbf16> to vector<32x128xbf16>
    %cst_32 = arith.constant dense<0.000000e+00> : vector<24x128xf32>
    %86 = tpu.matmul %84, %85, %cst_32 {dimension_numbers = #tpu.dot_dimension_numbers<[1], [0], [0], [1], [0, 0, 1, 1], [], []>} : vector<24x32xbf16>, vector<32x128xbf16>, vector<24x128xf32> -> vector<24x128xf32>
    %87 = arith.addf %60, %86 : vector<24x128xf32>
    %88 = vector.extract_strided_slice %31 {offsets = [0, 64], sizes = [24, 32], strides = [1, 1]} : vector<24x384xf32> to vector<24x32xf32>
    %cst_33 = arith.constant 0.176776692 : f32
    %89 = vector.broadcast %cst_33 : f32 to vector<24x32xf32>
    %90 = arith.mulf %88, %89 : vector<24x32xf32>
    %91 = arith.truncf %90 : vector<24x32xf32> to vector<24x32xbf16>
    %92 = vector.extract_strided_slice %31 {offsets = [0, 192], sizes = [24, 32], strides = [1, 1]} : vector<24x384xf32> to vector<24x32xf32>
    %93 = arith.truncf %92 : vector<24x32xf32> to vector<24x32xbf16>
    %94 = vector.extract_strided_slice %31 {offsets = [0, 320], sizes = [24, 32], strides = [1, 1]} : vector<24x384xf32> to vector<24x32xf32>
    %95 = arith.truncf %94 : vector<24x32xf32> to vector<24x32xbf16>
    "tpu.trace_start"() <{level = 10 : i32, message = "qd,kd->qk"}> : () -> ()
    %cst_34 = arith.constant dense<0.000000e+00> : vector<24x24xf32>
    %96 = tpu.matmul %91, %93, %cst_34 {dimension_numbers = #tpu.dot_dimension_numbers<[1], [1], [0], [0], [0, 0, 1, 0], [], []>} : vector<24x32xbf16>, vector<24x32xbf16>, vector<24x24xf32> -> vector<24x24xf32>
    "tpu.trace_stop"() : () -> ()
    %97 = vector.broadcast %3 : vector<1x24xf32> to vector<24x24xf32>
    %98 = arith.addf %96, %97 : vector<24x24xf32>
    %cst_35 = arith.constant dense<0xFF800000> : vector<24xf32>
    %99 = vector.multi_reduction <maximumf>, %98, %cst_35 [1] : vector<24x24xf32> to vector<24xf32>
    %100 = vector.shape_cast %99 : vector<24xf32> to vector<24x1xf32>
    %101 = vector.broadcast %100 : vector<24x1xf32> to vector<24x24xf32>
    %102 = arith.subf %98, %101 : vector<24x24xf32>
    %103 = math.exp %102 : vector<24x24xf32>
    %cst_36 = arith.constant dense<0.000000e+00> : vector<24xf32>
    %104 = vector.multi_reduction <add>, %103, %cst_36 [1] : vector<24x24xf32> to vector<24xf32>
    %105 = vector.shape_cast %104 : vector<24xf32> to vector<24x1xf32>
    %106 = tpu.reciprocal %105 {approx = true} : vector<24x1xf32> -> vector<24x1xf32>
    %107 = vector.broadcast %106 : vector<24x1xf32> to vector<24x24xf32>
    %108 = arith.mulf %103, %107 : vector<24x24xf32>
    %109 = arith.truncf %108 : vector<24x24xf32> to vector<24x24xbf16>
    %cst_37 = arith.constant dense<0.000000e+00> : vector<24x32xf32>
    %110 = tpu.matmul %109, %95, %cst_37 {dimension_numbers = #tpu.dot_dimension_numbers<[1], [0], [0], [1], [0, 0, 1, 1], [], []>} : vector<24x24xbf16>, vector<24x32xbf16>, vector<24x32xf32> -> vector<24x32xf32>
    %111 = arith.truncf %110 : vector<24x32xf32> to vector<24x32xbf16>
    %112 = vector.extract_strided_slice %32 {offsets = [64, 0], sizes = [32, 128], strides = [1, 1]} : vector<128x128xbf16> to vector<32x128xbf16>
    %cst_38 = arith.constant dense<0.000000e+00> : vector<24x128xf32>
    %113 = tpu.matmul %111, %112, %cst_38 {dimension_numbers = #tpu.dot_dimension_numbers<[1], [0], [0], [1], [0, 0, 1, 1], [], []>} : vector<24x32xbf16>, vector<32x128xbf16>, vector<24x128xf32> -> vector<24x128xf32>
    %114 = arith.addf %87, %113 : vector<24x128xf32>
    %115 = vector.extract_strided_slice %31 {offsets = [0, 96], sizes = [24, 32], strides = [1, 1]} : vector<24x384xf32> to vector<24x32xf32>
    %cst_39 = arith.constant 0.176776692 : f32
    %116 = vector.broadcast %cst_39 : f32 to vector<24x32xf32>
    %117 = arith.mulf %115, %116 : vector<24x32xf32>
    %118 = arith.truncf %117 : vector<24x32xf32> to vector<24x32xbf16>
    %119 = vector.extract_strided_slice %31 {offsets = [0, 224], sizes = [24, 32], strides = [1, 1]} : vector<24x384xf32> to vector<24x32xf32>
    %120 = arith.truncf %119 : vector<24x32xf32> to vector<24x32xbf16>
    %121 = vector.extract_strided_slice %31 {offsets = [0, 352], sizes = [24, 32], strides = [1, 1]} : vector<24x384xf32> to vector<24x32xf32>
    %122 = arith.truncf %121 : vector<24x32xf32> to vector<24x32xbf16>
    "tpu.trace_start"() <{level = 10 : i32, message = "qd,kd->qk"}> : () -> ()
    %cst_40 = arith.constant dense<0.000000e+00> : vector<24x24xf32>
    %123 = tpu.matmul %118, %120, %cst_40 {dimension_numbers = #tpu.dot_dimension_numbers<[1], [1], [0], [0], [0, 0, 1, 0], [], []>} : vector<24x32xbf16>, vector<24x32xbf16>, vector<24x24xf32> -> vector<24x24xf32>
    "tpu.trace_stop"() : () -> ()
    %124 = vector.broadcast %3 : vector<1x24xf32> to vector<24x24xf32>
    %125 = arith.addf %123, %124 : vector<24x24xf32>
    %cst_41 = arith.constant dense<0xFF800000> : vector<24xf32>
    %126 = vector.multi_reduction <maximumf>, %125, %cst_41 [1] : vector<24x24xf32> to vector<24xf32>
    %127 = vector.shape_cast %126 : vector<24xf32> to vector<24x1xf32>
    %128 = vector.broadcast %127 : vector<24x1xf32> to vector<24x24xf32>
    %129 = arith.subf %125, %128 : vector<24x24xf32>
    %130 = math.exp %129 : vector<24x24xf32>
    %cst_42 = arith.constant dense<0.000000e+00> : vector<24xf32>
    %131 = vector.multi_reduction <add>, %130, %cst_42 [1] : vector<24x24xf32> to vector<24xf32>
    %132 = vector.shape_cast %131 : vector<24xf32> to vector<24x1xf32>
    %133 = tpu.reciprocal %132 {approx = true} : vector<24x1xf32> -> vector<24x1xf32>
    %134 = vector.broadcast %133 : vector<24x1xf32> to vector<24x24xf32>
    %135 = arith.mulf %130, %134 : vector<24x24xf32>
    %136 = arith.truncf %135 : vector<24x24xf32> to vector<24x24xbf16>
    %cst_43 = arith.constant dense<0.000000e+00> : vector<24x32xf32>
    %137 = tpu.matmul %136, %122, %cst_43 {dimension_numbers = #tpu.dot_dimension_numbers<[1], [0], [0], [1], [0, 0, 1, 1], [], []>} : vector<24x24xbf16>, vector<24x32xbf16>, vector<24x32xf32> -> vector<24x32xf32>
    %138 = arith.truncf %137 : vector<24x32xf32> to vector<24x32xbf16>
    %139 = vector.extract_strided_slice %32 {offsets = [96, 0], sizes = [32, 128], strides = [1, 1]} : vector<128x128xbf16> to vector<32x128xbf16>
    %cst_44 = arith.constant dense<0.000000e+00> : vector<24x128xf32>
    %140 = tpu.matmul %138, %139, %cst_44 {dimension_numbers = #tpu.dot_dimension_numbers<[1], [0], [0], [1], [0, 0, 1, 1], [], []>} : vector<24x32xbf16>, vector<32x128xbf16>, vector<24x128xf32> -> vector<24x128xf32>
    %141 = arith.addf %114, %140 : vector<24x128xf32>
    %142 = arith.addf %1, %141 : vector<24x128xf32>
    %c0_45 = arith.constant 0 : index
    %c0_46 = arith.constant 0 : index
    %143 = vector.load %arg8[%c0_45, %c0_46] : memref<1x128xf32, #tpu.memory_space<vmem>>, vector<1x128xf32>
    %144 = vector.broadcast %143 : vector<1x128xf32> to vector<24x128xf32>
    %145 = arith.addf %142, %144 : vector<24x128xf32>
    %c0_47 = arith.constant 0 : index
    %c0_48 = arith.constant 0 : index
    %146 = vector.load %arg9[%c0_47, %c0_48] : memref<1x128xf32, #tpu.memory_space<vmem>>, vector<1x128xf32>
    %c0_49 = arith.constant 0 : index
    %c0_50 = arith.constant 0 : index
    %147 = vector.load %arg10[%c0_49, %c0_50] : memref<1x128xf32, #tpu.memory_space<vmem>>, vector<1x128xf32>
    %cst_51 = arith.constant dense<0.000000e+00> : vector<24xf32>
    %148 = vector.multi_reduction <add>, %145, %cst_51 [1] : vector<24x128xf32> to vector<24xf32>
    %149 = vector.shape_cast %148 : vector<24xf32> to vector<24x1xf32>
    %cst_52 = arith.constant 1.280000e+02 : f32
    %150 = vector.broadcast %cst_52 : f32 to vector<24x1xf32>
    %151 = arith.divf %149, %150 : vector<24x1xf32>
    %152 = vector.broadcast %151 : vector<24x1xf32> to vector<24x128xf32>
    %153 = arith.subf %145, %152 : vector<24x128xf32>
    %154 = arith.mulf %153, %153 : vector<24x128xf32>
    %cst_53 = arith.constant dense<0.000000e+00> : vector<24xf32>
    %155 = vector.multi_reduction <add>, %154, %cst_53 [1] : vector<24x128xf32> to vector<24xf32>
    %156 = vector.shape_cast %155 : vector<24xf32> to vector<24x1xf32>
    %cst_54 = arith.constant 1.280000e+02 : f32
    %157 = vector.broadcast %cst_54 : f32 to vector<24x1xf32>
    %158 = arith.divf %156, %157 : vector<24x1xf32>
    %cst_55 = arith.constant 9.99999974E-6 : f32
    %159 = vector.broadcast %cst_55 : f32 to vector<24x1xf32>
    %160 = arith.addf %158, %159 : vector<24x1xf32>
    %161 = math.rsqrt %160 : vector<24x1xf32>
    %162 = vector.broadcast %161 : vector<24x1xf32> to vector<24x128xf32>
    %163 = arith.mulf %153, %162 : vector<24x128xf32>
    %164 = vector.broadcast %146 : vector<1x128xf32> to vector<24x128xf32>
    %165 = arith.mulf %163, %164 : vector<24x128xf32>
    %166 = vector.broadcast %147 : vector<1x128xf32> to vector<24x128xf32>
    %167 = arith.addf %165, %166 : vector<24x128xf32>
    %168 = arith.truncf %167 : vector<24x128xf32> to vector<24x128xbf16>
    %c0_56 = arith.constant 0 : index
    %c0_57 = arith.constant 0 : index
    %169 = vector.load %arg11[%c0_56, %c0_57] : memref<128x512xbf16, #tpu.memory_space<vmem>>, vector<128x512xbf16>
    %cst_58 = arith.constant dense<0.000000e+00> : vector<24x512xf32>
    %170 = tpu.matmul %168, %169, %cst_58 {dimension_numbers = #tpu.dot_dimension_numbers<[1], [0], [0], [1], [0, 0, 1, 1], [], []>} : vector<24x128xbf16>, vector<128x512xbf16>, vector<24x512xf32> -> vector<24x512xf32>
    %c0_59 = arith.constant 0 : index
    %c0_60 = arith.constant 0 : index
    %171 = vector.load %arg12[%c0_59, %c0_60] : memref<1x512xf32, #tpu.memory_space<vmem>>, vector<1x512xf32>
    %172 = vector.broadcast %171 : vector<1x512xf32> to vector<24x512xf32>
    %173 = arith.addf %170, %172 : vector<24x512xf32>
    %cst_61 = arith.constant 0.707106769 : f32
    %174 = vector.broadcast %cst_61 : f32 to vector<24x512xf32>
    %175 = arith.mulf %173, %174 : vector<24x512xf32>
    %cst_62 = arith.constant 0.000000e+00 : f32
    %176 = vector.broadcast %cst_62 : f32 to vector<24x512xf32>
    %177 = arith.cmpf oge, %175, %176 : vector<24x512xf32>
    %cst_63 = arith.constant 1.000000e+00 : f32
    %cst_64 = arith.constant -1.000000e+00 : f32
    %178 = vector.broadcast %cst_63 : f32 to vector<24x512xf32>
    %179 = vector.broadcast %cst_64 : f32 to vector<24x512xf32>
    %180 = arith.select %177, %178, %179 : vector<24x512xi1>, vector<24x512xf32>
    %181 = math.absf %175 : vector<24x512xf32>
    %cst_65 = arith.constant 0.327591091 : f32
    %182 = vector.broadcast %cst_65 : f32 to vector<24x512xf32>
    %183 = arith.mulf %182, %181 : vector<24x512xf32>
    %cst_66 = arith.constant 1.000000e+00 : f32
    %184 = vector.broadcast %cst_66 : f32 to vector<24x512xf32>
    %185 = arith.addf %184, %183 : vector<24x512xf32>
    %cst_67 = arith.constant 1.000000e+00 : f32
    %186 = vector.broadcast %cst_67 : f32 to vector<24x512xf32>
    %187 = arith.divf %186, %185 : vector<24x512xf32>
    %cst_68 = arith.constant 1.06140542 : f32
    %188 = vector.broadcast %cst_68 : f32 to vector<24x512xf32>
    %189 = arith.mulf %188, %187 : vector<24x512xf32>
    %cst_69 = arith.constant -1.45315206 : f32
    %190 = vector.broadcast %cst_69 : f32 to vector<24x512xf32>
    %191 = arith.addf %189, %190 : vector<24x512xf32>
    %192 = arith.mulf %191, %187 : vector<24x512xf32>
    %cst_70 = arith.constant 1.42141378 : f32
    %193 = vector.broadcast %cst_70 : f32 to vector<24x512xf32>
    %194 = arith.addf %192, %193 : vector<24x512xf32>
    %195 = arith.mulf %194, %187 : vector<24x512xf32>
    %cst_71 = arith.constant -0.284496725 : f32
    %196 = vector.broadcast %cst_71 : f32 to vector<24x512xf32>
    %197 = arith.addf %195, %196 : vector<24x512xf32>
    %198 = arith.mulf %197, %187 : vector<24x512xf32>
    %cst_72 = arith.constant 0.254829586 : f32
    %199 = vector.broadcast %cst_72 : f32 to vector<24x512xf32>
    %200 = arith.addf %198, %199 : vector<24x512xf32>
    %201 = arith.mulf %200, %187 : vector<24x512xf32>
    %cst_73 = arith.constant 0.000000e+00 : f32
    %202 = vector.broadcast %cst_73 : f32 to vector<24x512xf32>
    %203 = arith.subf %202, %181 : vector<24x512xf32>
    %204 = arith.mulf %203, %181 : vector<24x512xf32>
    %205 = math.exp %204 : vector<24x512xf32>
    %206 = arith.mulf %201, %205 : vector<24x512xf32>
    %cst_74 = arith.constant 1.000000e+00 : f32
    %207 = vector.broadcast %cst_74 : f32 to vector<24x512xf32>
    %208 = arith.subf %207, %206 : vector<24x512xf32>
    %209 = arith.mulf %180, %208 : vector<24x512xf32>
    %cst_75 = arith.constant 5.000000e-01 : f32
    %210 = vector.broadcast %cst_75 : f32 to vector<24x512xf32>
    %211 = arith.mulf %210, %173 : vector<24x512xf32>
    %cst_76 = arith.constant 1.000000e+00 : f32
    %212 = vector.broadcast %cst_76 : f32 to vector<24x512xf32>
    %213 = arith.addf %212, %209 : vector<24x512xf32>
    %214 = arith.mulf %211, %213 : vector<24x512xf32>
    %215 = arith.truncf %214 : vector<24x512xf32> to vector<24x512xbf16>
    %c0_77 = arith.constant 0 : index
    %c0_78 = arith.constant 0 : index
    %216 = vector.load %arg13[%c0_77, %c0_78] : memref<512x128xbf16, #tpu.memory_space<vmem>>, vector<512x128xbf16>
    %cst_79 = arith.constant dense<0.000000e+00> : vector<24x128xf32>
    %217 = tpu.matmul %215, %216, %cst_79 {dimension_numbers = #tpu.dot_dimension_numbers<[1], [0], [0], [1], [0, 0, 1, 1], [], []>} : vector<24x512xbf16>, vector<512x128xbf16>, vector<24x128xf32> -> vector<24x128xf32>
    %c0_80 = arith.constant 0 : index
    %c0_81 = arith.constant 0 : index
    %218 = vector.load %arg14[%c0_80, %c0_81] : memref<1x128xf32, #tpu.memory_space<vmem>>, vector<1x128xf32>
    %219 = vector.broadcast %218 : vector<1x128xf32> to vector<24x128xf32>
    %220 = arith.addf %217, %219 : vector<24x128xf32>
    %221 = arith.addf %145, %220 : vector<24x128xf32>
    %c0_82 = arith.constant 0 : index
    %c0_83 = arith.constant 0 : index
    %c0_84 = arith.constant 0 : index
    %222 = vector.load %arg15[%c0_82, %c0_83, %c0_84] : memref<1x24x128xf32, #tpu.memory_space<vmem>>, vector<1x24x128xf32>
    %223 = vector.shape_cast %222 : vector<1x24x128xf32> to vector<24x128xf32>
    %224 = vector.shape_cast %221 : vector<24x128xf32> to vector<1x24x128xf32>
    tpu.vector_store %arg15[%c0_82, %c0_83, %c0_84], %224 {strides = array<i32>} : memref<1x24x128xf32, #tpu.memory_space<vmem>>, vector<1x24x128xf32>,
    return
  }
  func.func @transform_0(%arg0: i32) -> (i32, i32, i32) {
    %c0_i32 = arith.constant 0 : i32
    %c0_i32_0 = arith.constant 0 : i32
    %c0_i32_1 = arith.constant 0 : i32
    return %arg0, %c0_i32, %c0_i32_0 : i32, i32, i32
  }
  func.func @transform_1(%arg0: i32) -> (i32, i32, i32) {
    %c0_i32 = arith.constant 0 : i32
    %c0_i32_0 = arith.constant 0 : i32
    %c0_i32_1 = arith.constant 0 : i32
    return %arg0, %c0_i32, %c0_i32_0 : i32, i32, i32
  }
  func.func @transform_2(%arg0: i32) -> (i32, i32) {
    %c0_i32 = arith.constant 0 : i32
    %c0_i32_0 = arith.constant 0 : i32
    %c0_i32_1 = arith.constant 0 : i32
    return %c0_i32, %c0_i32_0 : i32, i32
  }
  func.func @transform_3(%arg0: i32) -> (i32, i32) {
    %c0_i32 = arith.constant 0 : i32
    %c0_i32_0 = arith.constant 0 : i32
    %c0_i32_1 = arith.constant 0 : i32
    return %c0_i32, %c0_i32_0 : i32, i32
  }
  func.func @transform_4(%arg0: i32) -> (i32, i32) {
    %c0_i32 = arith.constant 0 : i32
    %c0_i32_0 = arith.constant 0 : i32
    %c0_i32_1 = arith.constant 0 : i32
    return %c0_i32, %c0_i32_0 : i32, i32
  }
  func.func @transform_5(%arg0: i32) -> (i32, i32) {
    %c0_i32 = arith.constant 0 : i32
    %c0_i32_0 = arith.constant 0 : i32
    %c0_i32_1 = arith.constant 0 : i32
    return %c0_i32, %c0_i32_0 : i32, i32
  }
  func.func @transform_6(%arg0: i32) -> (i32, i32) {
    %c0_i32 = arith.constant 0 : i32
    %c0_i32_0 = arith.constant 0 : i32
    %c0_i32_1 = arith.constant 0 : i32
    return %c0_i32, %c0_i32_0 : i32, i32
  }
  func.func @transform_7(%arg0: i32) -> (i32, i32) {
    %c0_i32 = arith.constant 0 : i32
    %c0_i32_0 = arith.constant 0 : i32
    %c0_i32_1 = arith.constant 0 : i32
    return %c0_i32, %c0_i32_0 : i32, i32
  }
  func.func @transform_8(%arg0: i32) -> (i32, i32) {
    %c0_i32 = arith.constant 0 : i32
    %c0_i32_0 = arith.constant 0 : i32
    %c0_i32_1 = arith.constant 0 : i32
    return %c0_i32, %c0_i32_0 : i32, i32
  }
  func.func @transform_9(%arg0: i32) -> (i32, i32) {
    %c0_i32 = arith.constant 0 : i32
    %c0_i32_0 = arith.constant 0 : i32
    %c0_i32_1 = arith.constant 0 : i32
    return %c0_i32, %c0_i32_0 : i32, i32
  }
  func.func @transform_10(%arg0: i32) -> (i32, i32) {
    %c0_i32 = arith.constant 0 : i32
    %c0_i32_0 = arith.constant 0 : i32
    %c0_i32_1 = arith.constant 0 : i32
    return %c0_i32, %c0_i32_0 : i32, i32
  }
  func.func @transform_11(%arg0: i32) -> (i32, i32) {
    %c0_i32 = arith.constant 0 : i32
    %c0_i32_0 = arith.constant 0 : i32
    %c0_i32_1 = arith.constant 0 : i32
    return %c0_i32, %c0_i32_0 : i32, i32
  }
  func.func @transform_12(%arg0: i32) -> (i32, i32) {
    %c0_i32 = arith.constant 0 : i32
    %c0_i32_0 = arith.constant 0 : i32
    %c0_i32_1 = arith.constant 0 : i32
    return %c0_i32, %c0_i32_0 : i32, i32
  }
  func.func @transform_13(%arg0: i32) -> (i32, i32) {
    %c0_i32 = arith.constant 0 : i32
    %c0_i32_0 = arith.constant 0 : i32
    %c0_i32_1 = arith.constant 0 : i32
    return %c0_i32, %c0_i32_0 : i32, i32
  }
  func.func @transform_14(%arg0: i32) -> (i32, i32, i32) {
    %c0_i32 = arith.constant 0 : i32
    %c0_i32_0 = arith.constant 0 : i32
    %c0_i32_1 = arith.constant 0 : i32
    return %arg0, %c0_i32, %c0_i32_0 : i32, i32, i32
  }
}

module attributes {stable_mosaic.version = 11 : i64} {
  func.func @_encoder_layer_kernel(%arg0: i32, %arg1: memref<1x24x128xf32, #tpu.memory_space<vmem>>, %arg2: memref<1x1x24xf32, #tpu.memory_space<vmem>>, %arg3: memref<1x128xf32, #tpu.memory_space<vmem>>, %arg4: memref<1x128xf32, #tpu.memory_space<vmem>>, %arg5: memref<128x384xbf16, #tpu.memory_space<vmem>>, %arg6: memref<1x384xf32, #tpu.memory_space<vmem>>, %arg7: memref<128x128xbf16, #tpu.memory_space<vmem>>, %arg8: memref<1x128xf32, #tpu.memory_space<vmem>>, %arg9: memref<1x128xf32, #tpu.memory_space<vmem>>, %arg10: memref<1x128xf32, #tpu.memory_space<vmem>>, %arg11: memref<128x512xbf16, #tpu.memory_space<vmem>>, %arg12: memref<1x512xf32, #tpu.memory_space<vmem>>, %arg13: memref<512x128xbf16, #tpu.memory_space<vmem>>, %arg14: memref<1x128xf32, #tpu.memory_space<vmem>>, %arg15: memref<1x24x128xf32, #tpu.memory_space<vmem>>) attributes {dimension_semantics = [#tpu.dimension_semantics<parallel>], iteration_bounds = array<i64: 2>, scalar_prefetch = 0 : i64, scratch_operands = 0 : i64, tpu.core_type = #tpu.core_type<tc>, window_params = [{transform_indices = @transform_0, window_bounds = array<i64: 1, 24, 128>}, {transform_indices = @transform_1, window_bounds = array<i64: 1, 1, 24>}, {pipeline_mode = #tpu.pipeline_mode<synchronous>, transform_indices = @transform_2, window_bounds = array<i64: 1, 128>}, {pipeline_mode = #tpu.pipeline_mode<synchronous>, transform_indices = @transform_3, window_bounds = array<i64: 1, 128>}, {pipeline_mode = #tpu.pipeline_mode<synchronous>, transform_indices = @transform_4, window_bounds = array<i64: 128, 384>}, {pipeline_mode = #tpu.pipeline_mode<synchronous>, transform_indices = @transform_5, window_bounds = array<i64: 1, 384>}, {pipeline_mode = #tpu.pipeline_mode<synchronous>, transform_indices = @transform_6, window_bounds = array<i64: 128, 128>}, {pipeline_mode = #tpu.pipeline_mode<synchronous>, transform_indices = @transform_7, window_bounds = array<i64: 1, 128>}, {pipeline_mode = #tpu.pipeline_mode<synchronous>, transform_indices = @transform_8, window_bounds = array<i64: 1, 128>}, {pipeline_mode = #tpu.pipeline_mode<synchronous>, transform_indices = @transform_9, window_bounds = array<i64: 1, 128>}, {pipeline_mode = #tpu.pipeline_mode<synchronous>, transform_indices = @transform_10, window_bounds = array<i64: 128, 512>}, {pipeline_mode = #tpu.pipeline_mode<synchronous>, transform_indices = @transform_11, window_bounds = array<i64: 1, 512>}, {pipeline_mode = #tpu.pipeline_mode<synchronous>, transform_indices = @transform_12, window_bounds = array<i64: 512, 128>}, {pipeline_mode = #tpu.pipeline_mode<synchronous>, transform_indices = @transform_13, window_bounds = array<i64: 1, 128>}, {transform_indices = @transform_14, window_bounds = array<i64: 1, 24, 128>}]} {
    %c0 = arith.constant 0 : index
    %c0_0 = arith.constant 0 : index
    %c0_1 = arith.constant 0 : index
    %0 = vector.load %arg1[%c0, %c0_0, %c0_1] : memref<1x24x128xf32, #tpu.memory_space<vmem>>, vector<1x24x128xf32>
    %1 = vector.shape_cast %0 : vector<1x24x128xf32> to vector<24x128xf32>
    %c0_2 = arith.constant 0 : index
    %c0_3 = arith.constant 0 : index
    %c0_4 = arith.constant 0 : index
    %2 = vector.load %arg2[%c0_2, %c0_3, %c0_4] : memref<1x1x24xf32, #tpu.memory_space<vmem>>, vector<1x1x24xf32>
    %3 = vector.shape_cast %2 : vector<1x1x24xf32> to vector<1x24xf32>
    %c0_5 = arith.constant 0 : index
    %c0_6 = arith.constant 0 : index
    %4 = vector.load %arg3[%c0_5, %c0_6] : memref<1x128xf32, #tpu.memory_space<vmem>>, vector<1x128xf32>
    %c0_7 = arith.constant 0 : index
    %c0_8 = arith.constant 0 : index
    %5 = vector.load %arg4[%c0_7, %c0_8] : memref<1x128xf32, #tpu.memory_space<vmem>>, vector<1x128xf32>
    %cst = arith.constant dense<0.000000e+00> : vector<24xf32>
    %6 = vector.multi_reduction <add>, %1, %cst [1] : vector<24x128xf32> to vector<24xf32>
    %7 = vector.shape_cast %6 : vector<24xf32> to vector<24x1xf32>
    %cst_9 = arith.constant 1.280000e+02 : f32
    %8 = vector.broadcast %cst_9 : f32 to vector<24x1xf32>
    %9 = arith.divf %7, %8 : vector<24x1xf32>
    %10 = vector.broadcast %9 : vector<24x1xf32> to vector<24x128xf32>
    %11 = arith.subf %1, %10 : vector<24x128xf32>
    %12 = arith.mulf %11, %11 : vector<24x128xf32>
    %cst_10 = arith.constant dense<0.000000e+00> : vector<24xf32>
    %13 = vector.multi_reduction <add>, %12, %cst_10 [1] : vector<24x128xf32> to vector<24xf32>
    %14 = vector.shape_cast %13 : vector<24xf32> to vector<24x1xf32>
    %cst_11 = arith.constant 1.280000e+02 : f32
    %15 = vector.broadcast %cst_11 : f32 to vector<24x1xf32>
    %16 = arith.divf %14, %15 : vector<24x1xf32>
    %cst_12 = arith.constant 9.99999974E-6 : f32
    %17 = vector.broadcast %cst_12 : f32 to vector<24x1xf32>
    %18 = arith.addf %16, %17 : vector<24x1xf32>
    %19 = math.rsqrt %18 : vector<24x1xf32>
    %20 = vector.broadcast %19 : vector<24x1xf32> to vector<24x128xf32>
    %21 = arith.mulf %11, %20 : vector<24x128xf32>
    %22 = vector.broadcast %4 : vector<1x128xf32> to vector<24x128xf32>
    %23 = arith.mulf %21, %22 : vector<24x128xf32>
    %24 = vector.broadcast %5 : vector<1x128xf32> to vector<24x128xf32>
    %25 = arith.addf %23, %24 : vector<24x128xf32>
    %26 = arith.truncf %25 : vector<24x128xf32> to vector<24x128xbf16>
    %c0_13 = arith.constant 0 : index
    %c0_14 = arith.constant 0 : index
    %27 = vector.load %arg5[%c0_13, %c0_14] : memref<128x384xbf16, #tpu.memory_space<vmem>>, vector<128x384xbf16>
    %cst_15 = arith.constant dense<0.000000e+00> : vector<24x384xf32>
    %28 = tpu.matmul %26, %27, %cst_15 {dimension_numbers = #tpu.dot_dimension_numbers<[1], [0], [0], [1], [0, 0, 1, 1], [], []>} : vector<24x128xbf16>, vector<128x384xbf16>, vector<24x384xf32> -> vector<24x384xf32>
    %c0_16 = arith.constant 0 : index
    %c0_17 = arith.constant 0 : index
    %29 = vector.load %arg6[%c0_16, %c0_17] : memref<1x384xf32, #tpu.memory_space<vmem>>, vector<1x384xf32>
    %30 = vector.broadcast %29 : vector<1x384xf32> to vector<24x384xf32>
    %31 = arith.addf %28, %30 : vector<24x384xf32>
    %c0_18 = arith.constant 0 : index
    %c0_19 = arith.constant 0 : index
    %32 = vector.load %arg7[%c0_18, %c0_19] : memref<128x128xbf16, #tpu.memory_space<vmem>>, vector<128x128xbf16>
    %cst_20 = arith.constant 0.000000e+00 : f32
    %33 = vector.broadcast %cst_20 : f32 to vector<24x128xf32>
    %34 = vector.extract_strided_slice %31 {offsets = [0, 0], sizes = [24, 32], strides = [1, 1]} : vector<24x384xf32> to vector<24x32xf32>
    %cst_21 = arith.constant 0.176776692 : f32
    %35 = vector.broadcast %cst_21 : f32 to vector<24x32xf32>
    %36 = arith.mulf %34, %35 : vector<24x32xf32>
    %37 = arith.truncf %36 : vector<24x32xf32> to vector<24x32xbf16>
    %38 = vector.extract_strided_slice %31 {offsets = [0, 128], sizes = [24, 32], strides = [1, 1]} : vector<24x384xf32> to vector<24x32xf32>
    %39 = arith.truncf %38 : vector<24x32xf32> to vector<24x32xbf16>
    %40 = vector.extract_strided_slice %31 {offsets = [0, 256], sizes = [24, 32], strides = [1, 1]} : vector<24x384xf32> to vector<24x32xf32>
    %41 = arith.truncf %40 : vector<24x32xf32> to vector<24x32xbf16>
    "tpu.trace_start"() <{level = 10 : i32, message = "qd,kd->qk"}> : () -> ()
    %cst_22 = arith.constant dense<0.000000e+00> : vector<24x24xf32>
    %42 = tpu.matmul %37, %39, %cst_22 {dimension_numbers = #tpu.dot_dimension_numbers<[1], [1], [0], [0], [0, 0, 1, 0], [], []>} : vector<24x32xbf16>, vector<24x32xbf16>, vector<24x24xf32> -> vector<24x24xf32>
    "tpu.trace_stop"() : () -> ()
    %43 = vector.broadcast %3 : vector<1x24xf32> to vector<24x24xf32>
    %44 = arith.addf %42, %43 : vector<24x24xf32>
    %cst_23 = arith.constant dense<0xFF800000> : vector<24xf32>
    %45 = vector.multi_reduction <maximumf>, %44, %cst_23 [1] : vector<24x24xf32> to vector<24xf32>
    %46 = vector.shape_cast %45 : vector<24xf32> to vector<24x1xf32>
    %47 = vector.broadcast %46 : vector<24x1xf32> to vector<24x24xf32>
    %48 = arith.subf %44, %47 : vector<24x24xf32>
    %49 = math.exp %48 : vector<24x24xf32>
    %cst_24 = arith.constant dense<0.000000e+00> : vector<24xf32>
    %50 = vector.multi_reduction <add>, %49, %cst_24 [1] : vector<24x24xf32> to vector<24xf32>
    %51 = vector.shape_cast %50 : vector<24xf32> to vector<24x1xf32>
    %52 = tpu.reciprocal %51 {approx = true} : vector<24x1xf32> -> vector<24x1xf32>
    %53 = vector.broadcast %52 : vector<24x1xf32> to vector<24x24xf32>
    %54 = arith.mulf %49, %53 : vector<24x24xf32>
    %55 = arith.truncf %54 : vector<24x24xf32> to vector<24x24xbf16>
    %cst_25 = arith.constant dense<0.000000e+00> : vector<24x32xf32>
    %56 = tpu.matmul %55, %41, %cst_25 {dimension_numbers = #tpu.dot_dimension_numbers<[1], [0], [0], [1], [0, 0, 1, 1], [], []>} : vector<24x24xbf16>, vector<24x32xbf16>, vector<24x32xf32> -> vector<24x32xf32>
    %57 = arith.truncf %56 : vector<24x32xf32> to vector<24x32xbf16>
    %58 = vector.extract_strided_slice %32 {offsets = [0, 0], sizes = [32, 128], strides = [1, 1]} : vector<128x128xbf16> to vector<32x128xbf16>
    %cst_26 = arith.constant dense<0.000000e+00> : vector<24x128xf32>
    %59 = tpu.matmul %57, %58, %cst_26 {dimension_numbers = #tpu.dot_dimension_numbers<[1], [0], [0], [1], [0, 0, 1, 1], [], []>} : vector<24x32xbf16>, vector<32x128xbf16>, vector<24x128xf32> -> vector<24x128xf32>
    %60 = arith.addf %33, %59 : vector<24x128xf32>
    %61 = vector.extract_strided_slice %31 {offsets = [0, 32], sizes = [24, 32], strides = [1, 1]} : vector<24x384xf32> to vector<24x32xf32>
    %cst_27 = arith.constant 0.176776692 : f32
    %62 = vector.broadcast %cst_27 : f32 to vector<24x32xf32>
    %63 = arith.mulf %61, %62 : vector<24x32xf32>
    %64 = arith.truncf %63 : vector<24x32xf32> to vector<24x32xbf16>
    %65 = vector.extract_strided_slice %31 {offsets = [0, 160], sizes = [24, 32], strides = [1, 1]} : vector<24x384xf32> to vector<24x32xf32>
    %66 = arith.truncf %65 : vector<24x32xf32> to vector<24x32xbf16>
    %67 = vector.extract_strided_slice %31 {offsets = [0, 288], sizes = [24, 32], strides = [1, 1]} : vector<24x384xf32> to vector<24x32xf32>
    %68 = arith.truncf %67 : vector<24x32xf32> to vector<24x32xbf16>
    "tpu.trace_start"() <{level = 10 : i32, message = "qd,kd->qk"}> : () -> ()
    %cst_28 = arith.constant dense<0.000000e+00> : vector<24x24xf32>
    %69 = tpu.matmul %64, %66, %cst_28 {dimension_numbers = #tpu.dot_dimension_numbers<[1], [1], [0], [0], [0, 0, 1, 0], [], []>} : vector<24x32xbf16>, vector<24x32xbf16>, vector<24x24xf32> -> vector<24x24xf32>
    "tpu.trace_stop"() : () -> ()
    %70 = vector.broadcast %3 : vector<1x24xf32> to vector<24x24xf32>
    %71 = arith.addf %69, %70 : vector<24x24xf32>
    %cst_29 = arith.constant dense<0xFF800000> : vector<24xf32>
    %72 = vector.multi_reduction <maximumf>, %71, %cst_29 [1] : vector<24x24xf32> to vector<24xf32>
    %73 = vector.shape_cast %72 : vector<24xf32> to vector<24x1xf32>
    %74 = vector.broadcast %73 : vector<24x1xf32> to vector<24x24xf32>
    %75 = arith.subf %71, %74 : vector<24x24xf32>
    %76 = math.exp %75 : vector<24x24xf32>
    %cst_30 = arith.constant dense<0.000000e+00> : vector<24xf32>
    %77 = vector.multi_reduction <add>, %76, %cst_30 [1] : vector<24x24xf32> to vector<24xf32>
    %78 = vector.shape_cast %77 : vector<24xf32> to vector<24x1xf32>
    %79 = tpu.reciprocal %78 {approx = true} : vector<24x1xf32> -> vector<24x1xf32>
    %80 = vector.broadcast %79 : vector<24x1xf32> to vector<24x24xf32>
    %81 = arith.mulf %76, %80 : vector<24x24xf32>
    %82 = arith.truncf %81 : vector<24x24xf32> to vector<24x24xbf16>
    %cst_31 = arith.constant dense<0.000000e+00> : vector<24x32xf32>
    %83 = tpu.matmul %82, %68, %cst_31 {dimension_numbers = #tpu.dot_dimension_numbers<[1], [0], [0], [1], [0, 0, 1, 1], [], []>} : vector<24x24xbf16>, vector<24x32xbf16>, vector<24x32xf32> -> vector<24x32xf32>
    %84 = arith.truncf %83 : vector<24x32xf32> to vector<24x32xbf16>
    %85 = vector.extract_strided_slice %32 {offsets = [32, 0], sizes = [32, 128], strides = [1, 1]} : vector<128x128xbf16> to vector<32x128xbf16>
    %cst_32 = arith.constant dense<0.000000e+00> : vector<24x128xf32>
    %86 = tpu.matmul %84, %85, %cst_32 {dimension_numbers = #tpu.dot_dimension_numbers<[1], [0], [0], [1], [0, 0, 1, 1], [], []>} : vector<24x32xbf16>, vector<32x128xbf16>, vector<24x128xf32> -> vector<24x128xf32>
    %87 = arith.addf %60, %86 : vector<24x128xf32>
    %88 = vector.extract_strided_slice %31 {offsets = [0, 64], sizes = [24, 32], strides = [1, 1]} : vector<24x384xf32> to vector<24x32xf32>
    %cst_33 = arith.constant 0.176776692 : f32
    %89 = vector.broadcast %cst_33 : f32 to vector<24x32xf32>
    %90 = arith.mulf %88, %89 : vector<24x32xf32>
    %91 = arith.truncf %90 : vector<24x32xf32> to vector<24x32xbf16>
    %92 = vector.extract_strided_slice %31 {offsets = [0, 192], sizes = [24, 32], strides = [1, 1]} : vector<24x384xf32> to vector<24x32xf32>
    %93 = arith.truncf %92 : vector<24x32xf32> to vector<24x32xbf16>
    %94 = vector.extract_strided_slice %31 {offsets = [0, 320], sizes = [24, 32], strides = [1, 1]} : vector<24x384xf32> to vector<24x32xf32>
    %95 = arith.truncf %94 : vector<24x32xf32> to vector<24x32xbf16>
    "tpu.trace_start"() <{level = 10 : i32, message = "qd,kd->qk"}> : () -> ()
    %cst_34 = arith.constant dense<0.000000e+00> : vector<24x24xf32>
    %96 = tpu.matmul %91, %93, %cst_34 {dimension_numbers = #tpu.dot_dimension_numbers<[1], [1], [0], [0], [0, 0, 1, 0], [], []>} : vector<24x32xbf16>, vector<24x32xbf16>, vector<24x24xf32> -> vector<24x24xf32>
    "tpu.trace_stop"() : () -> ()
    %97 = vector.broadcast %3 : vector<1x24xf32> to vector<24x24xf32>
    %98 = arith.addf %96, %97 : vector<24x24xf32>
    %cst_35 = arith.constant dense<0xFF800000> : vector<24xf32>
    %99 = vector.multi_reduction <maximumf>, %98, %cst_35 [1] : vector<24x24xf32> to vector<24xf32>
    %100 = vector.shape_cast %99 : vector<24xf32> to vector<24x1xf32>
    %101 = vector.broadcast %100 : vector<24x1xf32> to vector<24x24xf32>
    %102 = arith.subf %98, %101 : vector<24x24xf32>
    %103 = math.exp %102 : vector<24x24xf32>
    %cst_36 = arith.constant dense<0.000000e+00> : vector<24xf32>
    %104 = vector.multi_reduction <add>, %103, %cst_36 [1] : vector<24x24xf32> to vector<24xf32>
    %105 = vector.shape_cast %104 : vector<24xf32> to vector<24x1xf32>
    %106 = tpu.reciprocal %105 {approx = true} : vector<24x1xf32> -> vector<24x1xf32>
    %107 = vector.broadcast %106 : vector<24x1xf32> to vector<24x24xf32>
    %108 = arith.mulf %103, %107 : vector<24x24xf32>
    %109 = arith.truncf %108 : vector<24x24xf32> to vector<24x24xbf16>
    %cst_37 = arith.constant dense<0.000000e+00> : vector<24x32xf32>
    %110 = tpu.matmul %109, %95, %cst_37 {dimension_numbers = #tpu.dot_dimension_numbers<[1], [0], [0], [1], [0, 0, 1, 1], [], []>} : vector<24x24xbf16>, vector<24x32xbf16>, vector<24x32xf32> -> vector<24x32xf32>
    %111 = arith.truncf %110 : vector<24x32xf32> to vector<24x32xbf16>
    %112 = vector.extract_strided_slice %32 {offsets = [64, 0], sizes = [32, 128], strides = [1, 1]} : vector<128x128xbf16> to vector<32x128xbf16>
    %cst_38 = arith.constant dense<0.000000e+00> : vector<24x128xf32>
    %113 = tpu.matmul %111, %112, %cst_38 {dimension_numbers = #tpu.dot_dimension_numbers<[1], [0], [0], [1], [0, 0, 1, 1], [], []>} : vector<24x32xbf16>, vector<32x128xbf16>, vector<24x128xf32> -> vector<24x128xf32>
    %114 = arith.addf %87, %113 : vector<24x128xf32>
    %115 = vector.extract_strided_slice %31 {offsets = [0, 96], sizes = [24, 32], strides = [1, 1]} : vector<24x384xf32> to vector<24x32xf32>
    %cst_39 = arith.constant 0.176776692 : f32
    %116 = vector.broadcast %cst_39 : f32 to vector<24x32xf32>
    %117 = arith.mulf %115, %116 : vector<24x32xf32>
    %118 = arith.truncf %117 : vector<24x32xf32> to vector<24x32xbf16>
    %119 = vector.extract_strided_slice %31 {offsets = [0, 224], sizes = [24, 32], strides = [1, 1]} : vector<24x384xf32> to vector<24x32xf32>
    %120 = arith.truncf %119 : vector<24x32xf32> to vector<24x32xbf16>
    %121 = vector.extract_strided_slice %31 {offsets = [0, 352], sizes = [24, 32], strides = [1, 1]} : vector<24x384xf32> to vector<24x32xf32>
    %122 = arith.truncf %121 : vector<24x32xf32> to vector<24x32xbf16>
    "tpu.trace_start"() <{level = 10 : i32, message = "qd,kd->qk"}> : () -> ()
    %cst_40 = arith.constant dense<0.000000e+00> : vector<24x24xf32>
    %123 = tpu.matmul %118, %120, %cst_40 {dimension_numbers = #tpu.dot_dimension_numbers<[1], [1], [0], [0], [0, 0, 1, 0], [], []>} : vector<24x32xbf16>, vector<24x32xbf16>, vector<24x24xf32> -> vector<24x24xf32>
    "tpu.trace_stop"() : () -> ()
    %124 = vector.broadcast %3 : vector<1x24xf32> to vector<24x24xf32>
    %125 = arith.addf %123, %124 : vector<24x24xf32>
    %cst_41 = arith.constant dense<0xFF800000> : vector<24xf32>
    %126 = vector.multi_reduction <maximumf>, %125, %cst_41 [1] : vector<24x24xf32> to vector<24xf32>
    %127 = vector.shape_cast %126 : vector<24xf32> to vector<24x1xf32>
    %128 = vector.broadcast %127 : vector<24x1xf32> to vector<24x24xf32>
    %129 = arith.subf %125, %128 : vector<24x24xf32>
    %130 = math.exp %129 : vector<24x24xf32>
    %cst_42 = arith.constant dense<0.000000e+00> : vector<24xf32>
    %131 = vector.multi_reduction <add>, %130, %cst_42 [1] : vector<24x24xf32> to vector<24xf32>
    %132 = vector.shape_cast %131 : vector<24xf32> to vector<24x1xf32>
    %133 = tpu.reciprocal %132 {approx = true} : vector<24x1xf32> -> vector<24x1xf32>
    %134 = vector.broadcast %133 : vector<24x1xf32> to vector<24x24xf32>
    %135 = arith.mulf %130, %134 : vector<24x24xf32>
    %136 = arith.truncf %135 : vector<24x24xf32> to vector<24x24xbf16>
    %cst_43 = arith.constant dense<0.000000e+00> : vector<24x32xf32>
    %137 = tpu.matmul %136, %122, %cst_43 {dimension_numbers = #tpu.dot_dimension_numbers<[1], [0], [0], [1], [0, 0, 1, 1], [], []>} : vector<24x24xbf16>, vector<24x32xbf16>, vector<24x32xf32> -> vector<24x32xf32>
    %138 = arith.truncf %137 : vector<24x32xf32> to vector<24x32xbf16>
    %139 = vector.extract_strided_slice %32 {offsets = [96, 0], sizes = [32, 128], strides = [1, 1]} : vector<128x128xbf16> to vector<32x128xbf16>
    %cst_44 = arith.constant dense<0.000000e+00> : vector<24x128xf32>
    %140 = tpu.matmul %138, %139, %cst_44 {dimension_numbers = #tpu.dot_dimension_numbers<[1], [0], [0], [1], [0, 0, 1, 1], [], []>} : vector<24x32xbf16>, vector<32x128xbf16>, vector<24x128xf32> -> vector<24x128xf32>
    %141 = arith.addf %114, %140 : vector<24x128xf32>
    %142 = arith.addf %1, %141 : vector<24x128xf32>
    %c0_45 = arith.constant 0 : index
    %c0_46 = arith.constant 0 : index
    %143 = vector.load %arg8[%c0_45, %c0_46] : memref<1x128xf32, #tpu.memory_space<vmem>>, vector<1x128xf32>
    %144 = vector.broadcast %143 : vector<1x128xf32> to vector<24x128xf32>
    %145 = arith.addf %142, %144 : vector<24x128xf32>
    %c0_47 = arith.constant 0 : index
    %c0_48 = arith.constant 0 : index
    %146 = vector.load %arg9[%c0_47, %c0_48] : memref<1x128xf32, #tpu.memory_space<vmem>>, vector<1x128xf32>
    %c0_49 = arith.constant 0 : index
    %c0_50 = arith.constant 0 : index
    %147 = vector.load %arg10[%c0_49, %c0_50] : memref<1x128xf32, #tpu.memory_space<vmem>>, vector<1x128xf32>
    %cst_51 = arith.constant dense<0.000000e+00> : vector<24xf32>
    %148 = vector.multi_reduction <add>, %145, %cst_51 [1] : vector<24x128xf32> to vector<24xf32>
    %149 = vector.shape_cast %148 : vector<24xf32> to vector<24x1xf32>
    %cst_52 = arith.constant 1.280000e+02 : f32
    %150 = vector.broadcast %cst_52 : f32 to vector<24x1xf32>
    %151 = arith.divf %149, %150 : vector<24x1xf32>
    %152 = vector.broadcast %151 : vector<24x1xf32> to vector<24x128xf32>
    %153 = arith.subf %145, %152 : vector<24x128xf32>
    %154 = arith.mulf %153, %153 : vector<24x128xf32>
    %cst_53 = arith.constant dense<0.000000e+00> : vector<24xf32>
    %155 = vector.multi_reduction <add>, %154, %cst_53 [1] : vector<24x128xf32> to vector<24xf32>
    %156 = vector.shape_cast %155 : vector<24xf32> to vector<24x1xf32>
    %cst_54 = arith.constant 1.280000e+02 : f32
    %157 = vector.broadcast %cst_54 : f32 to vector<24x1xf32>
    %158 = arith.divf %156, %157 : vector<24x1xf32>
    %cst_55 = arith.constant 9.99999974E-6 : f32
    %159 = vector.broadcast %cst_55 : f32 to vector<24x1xf32>
    %160 = arith.addf %158, %159 : vector<24x1xf32>
    %161 = math.rsqrt %160 : vector<24x1xf32>
    %162 = vector.broadcast %161 : vector<24x1xf32> to vector<24x128xf32>
    %163 = arith.mulf %153, %162 : vector<24x128xf32>
    %164 = vector.broadcast %146 : vector<1x128xf32> to vector<24x128xf32>
    %165 = arith.mulf %163, %164 : vector<24x128xf32>
    %166 = vector.broadcast %147 : vector<1x128xf32> to vector<24x128xf32>
    %167 = arith.addf %165, %166 : vector<24x128xf32>
    %168 = arith.truncf %167 : vector<24x128xf32> to vector<24x128xbf16>
    %c0_56 = arith.constant 0 : index
    %c0_57 = arith.constant 0 : index
    %169 = vector.load %arg11[%c0_56, %c0_57] : memref<128x512xbf16, #tpu.memory_space<vmem>>, vector<128x512xbf16>
    %cst_58 = arith.constant dense<0.000000e+00> : vector<24x512xf32>
    %170 = tpu.matmul %168, %169, %cst_58 {dimension_numbers = #tpu.dot_dimension_numbers<[1], [0], [0], [1], [0, 0, 1, 1], [], []>} : vector<24x128xbf16>, vector<128x512xbf16>, vector<24x512xf32> -> vector<24x512xf32>
    %c0_59 = arith.constant 0 : index
    %c0_60 = arith.constant 0 : index
    %171 = vector.load %arg12[%c0_59, %c0_60] : memref<1x512xf32, #tpu.memory_space<vmem>>, vector<1x512xf32>
    %172 = vector.broadcast %171 : vector<1x512xf32> to vector<24x512xf32>
    %173 = arith.addf %170, %172 : vector<24x512xf32>
    %cst_61 = arith.constant 0.707106769 : f32
    %174 = vector.broadcast %cst_61 : f32 to vector<24x512xf32>
    %175 = arith.mulf %173, %174 : vector<24x512xf32>
    %cst_62 = arith.constant 0.000000e+00 : f32
    %176 = vector.broadcast %cst_62 : f32 to vector<24x512xf32>
    %177 = arith.cmpf oge, %175, %176 : vector<24x512xf32>
    %cst_63 = arith.constant 1.000000e+00 : f32
    %cst_64 = arith.constant -1.000000e+00 : f32
    %178 = vector.broadcast %cst_63 : f32 to vector<24x512xf32>
    %179 = vector.broadcast %cst_64 : f32 to vector<24x512xf32>
    %180 = arith.select %177, %178, %179 : vector<24x512xi1>, vector<24x512xf32>
    %181 = math.absf %175 : vector<24x512xf32>
    %cst_65 = arith.constant 0.327591091 : f32
    %182 = vector.broadcast %cst_65 : f32 to vector<24x512xf32>
    %183 = arith.mulf %182, %181 : vector<24x512xf32>
    %cst_66 = arith.constant 1.000000e+00 : f32
    %184 = vector.broadcast %cst_66 : f32 to vector<24x512xf32>
    %185 = arith.addf %184, %183 : vector<24x512xf32>
    %cst_67 = arith.constant 1.000000e+00 : f32
    %186 = vector.broadcast %cst_67 : f32 to vector<24x512xf32>
    %187 = arith.divf %186, %185 : vector<24x512xf32>
    %cst_68 = arith.constant 1.06140542 : f32
    %188 = vector.broadcast %cst_68 : f32 to vector<24x512xf32>
    %189 = arith.mulf %188, %187 : vector<24x512xf32>
    %cst_69 = arith.constant -1.45315206 : f32
    %190 = vector.broadcast %cst_69 : f32 to vector<24x512xf32>
    %191 = arith.addf %189, %190 : vector<24x512xf32>
    %192 = arith.mulf %191, %187 : vector<24x512xf32>
    %cst_70 = arith.constant 1.42141378 : f32
    %193 = vector.broadcast %cst_70 : f32 to vector<24x512xf32>
    %194 = arith.addf %192, %193 : vector<24x512xf32>
    %195 = arith.mulf %194, %187 : vector<24x512xf32>
    %cst_71 = arith.constant -0.284496725 : f32
    %196 = vector.broadcast %cst_71 : f32 to vector<24x512xf32>
    %197 = arith.addf %195, %196 : vector<24x512xf32>
    %198 = arith.mulf %197, %187 : vector<24x512xf32>
    %cst_72 = arith.constant 0.254829586 : f32
    %199 = vector.broadcast %cst_72 : f32 to vector<24x512xf32>
    %200 = arith.addf %198, %199 : vector<24x512xf32>
    %201 = arith.mulf %200, %187 : vector<24x512xf32>
    %cst_73 = arith.constant 0.000000e+00 : f32
    %202 = vector.broadcast %cst_73 : f32 to vector<24x512xf32>
    %203 = arith.subf %202, %181 : vector<24x512xf32>
    %204 = arith.mulf %203, %181 : vector<24x512xf32>
    %205 = math.exp %204 : vector<24x512xf32>
    %206 = arith.mulf %201, %205 : vector<24x512xf32>
    %cst_74 = arith.constant 1.000000e+00 : f32
    %207 = vector.broadcast %cst_74 : f32 to vector<24x512xf32>
    %208 = arith.subf %207, %206 : vector<24x512xf32>
    %209 = arith.mulf %180, %208 : vector<24x512xf32>
    %cst_75 = arith.constant 5.000000e-01 : f32
    %210 = vector.broadcast %cst_75 : f32 to vector<24x512xf32>
    %211 = arith.mulf %210, %173 : vector<24x512xf32>
    %cst_76 = arith.constant 1.000000e+00 : f32
    %212 = vector.broadcast %cst_76 : f32 to vector<24x512xf32>
    %213 = arith.addf %212, %209 : vector<24x512xf32>
    %214 = arith.mulf %211, %213 : vector<24x512xf32>
    %215 = arith.truncf %214 : vector<24x512xf32> to vector<24x512xbf16>
    %c0_77 = arith.constant 0 : index
    %c0_78 = arith.constant 0 : index
    %216 = vector.load %arg13[%c0_77, %c0_78] : memref<512x128xbf16, #tpu.memory_space<vmem>>, vector<512x128xbf16>
    %cst_79 = arith.constant dense<0.000000e+00> : vector<24x128xf32>
    %217 = tpu.matmul %215, %216, %cst_79 {dimension_numbers = #tpu.dot_dimension_numbers<[1], [0], [0], [1], [0, 0, 1, 1], [], []>} : vector<24x512xbf16>, vector<512x128xbf16>, vector<24x128xf32> -> vector<24x128xf32>
    %c0_80 = arith.constant 0 : index
    %c0_81 = arith.constant 0 : index
    %218 = vector.load %arg14[%c0_80, %c0_81] : memref<1x128xf32, #tpu.memory_space<vmem>>, vector<1x128xf32>
    %219 = vector.broadcast %218 : vector<1x128xf32> to vector<24x128xf32>
    %220 = arith.addf %217, %219 : vector<24x128xf32>
    %221 = arith.addf %145, %220 : vector<24x128xf32>
    %c0_82 = arith.constant 0 : index
    %c0_83 = arith.constant 0 : index
    %c0_84 = arith.constant 0 : index
    %222 = vector.load %arg15[%c0_82, %c0_83, %c0_84] : memref<1x24x128xf32, #tpu.memory_space<vmem>>, vector<1x24x128xf32>
    %223 = vector.shape_cast %222 : vector<1x24x128xf32> to vector<24x128xf32>
    %224 = vector.shape_cast %221 : vector<24x128xf32> to vector<1x24x128xf32>
    tpu.vector_store %arg15[%c0_82, %c0_83, %c0_84], %224 {strides = array<i32>} : memref<1x24x128xf32, #tpu.memory_space<vmem>>, vector<1x24x128xf32>,
    return
  }
  func.func @transform_0(%arg0: i32) -> (i32, i32, i32) {
    %c0_i32 = arith.constant 0 : i32
    %c0_i32_0 = arith.constant 0 : i32
    %c0_i32_1 = arith.constant 0 : i32
    return %arg0, %c0_i32, %c0_i32_0 : i32, i32, i32
  }
  func.func @transform_1(%arg0: i32) -> (i32, i32, i32) {
    %c0_i32 = arith.constant 0 : i32
    %c0_i32_0 = arith.constant 0 : i32
    %c0_i32_1 = arith.constant 0 : i32
    return %arg0, %c0_i32, %c0_i32_0 : i32, i32, i32
  }
  func.func @transform_2(%arg0: i32) -> (i32, i32) {
    %c0_i32 = arith.constant 0 : i32
    %c0_i32_0 = arith.constant 0 : i32
    %c0_i32_1 = arith.constant 0 : i32
    return %c0_i32, %c0_i32_0 : i32, i32
  }
  func.func @transform_3(%arg0: i32) -> (i32, i32) {
    %c0_i32 = arith.constant 0 : i32
    %c0_i32_0 = arith.constant 0 : i32
    %c0_i32_1 = arith.constant 0 : i32
    return %c0_i32, %c0_i32_0 : i32, i32
  }
  func.func @transform_4(%arg0: i32) -> (i32, i32) {
    %c0_i32 = arith.constant 0 : i32
    %c0_i32_0 = arith.constant 0 : i32
    %c0_i32_1 = arith.constant 0 : i32
    return %c0_i32, %c0_i32_0 : i32, i32
  }
  func.func @transform_5(%arg0: i32) -> (i32, i32) {
    %c0_i32 = arith.constant 0 : i32
    %c0_i32_0 = arith.constant 0 : i32
    %c0_i32_1 = arith.constant 0 : i32
    return %c0_i32, %c0_i32_0 : i32, i32
  }
  func.func @transform_6(%arg0: i32) -> (i32, i32) {
    %c0_i32 = arith.constant 0 : i32
    %c0_i32_0 = arith.constant 0 : i32
    %c0_i32_1 = arith.constant 0 : i32
    return %c0_i32, %c0_i32_0 : i32, i32
  }
  func.func @transform_7(%arg0: i32) -> (i32, i32) {
    %c0_i32 = arith.constant 0 : i32
    %c0_i32_0 = arith.constant 0 : i32
    %c0_i32_1 = arith.constant 0 : i32
    return %c0_i32, %c0_i32_0 : i32, i32
  }
  func.func @transform_8(%arg0: i32) -> (i32, i32) {
    %c0_i32 = arith.constant 0 : i32
    %c0_i32_0 = arith.constant 0 : i32
    %c0_i32_1 = arith.constant 0 : i32
    return %c0_i32, %c0_i32_0 : i32, i32
  }
  func.func @transform_9(%arg0: i32) -> (i32, i32) {
    %c0_i32 = arith.constant 0 : i32
    %c0_i32_0 = arith.constant 0 : i32
    %c0_i32_1 = arith.constant 0 : i32
    return %c0_i32, %c0_i32_0 : i32, i32
  }
  func.func @transform_10(%arg0: i32) -> (i32, i32) {
    %c0_i32 = arith.constant 0 : i32
    %c0_i32_0 = arith.constant 0 : i32
    %c0_i32_1 = arith.constant 0 : i32
    return %c0_i32, %c0_i32_0 : i32, i32
  }
  func.func @transform_11(%arg0: i32) -> (i32, i32) {
    %c0_i32 = arith.constant 0 : i32
    %c0_i32_0 = arith.constant 0 : i32
    %c0_i32_1 = arith.constant 0 : i32
    return %c0_i32, %c0_i32_0 : i32, i32
  }
  func.func @transform_12(%arg0: i32) -> (i32, i32) {
    %c0_i32 = arith.constant 0 : i32
    %c0_i32_0 = arith.constant 0 : i32
    %c0_i32_1 = arith.constant 0 : i32
    return %c0_i32, %c0_i32_0 : i32, i32
  }
  func.func @transform_13(%arg0: i32) -> (i32, i32) {
    %c0_i32 = arith.constant 0 : i32
    %c0_i32_0 = arith.constant 0 : i32
    %c0_i32_1 = arith.constant 0 : i32
    return %c0_i32, %c0_i32_0 : i32, i32
  }
  func.func @transform_14(%arg0: i32) -> (i32, i32, i32) {
    %c0_i32 = arith.constant 0 : i32
    %c0_i32_0 = arith.constant 0 : i32
    %c0_i32_1 = arith.constant 0 : i32
    return %arg0, %c0_i32, %c0_i32_0 : i32, i32, i32
  }
}

</mosaic_0001>

<bundles_post_ra>
// kernel: rna_model_forward.3
= control target key start
LH: loop header
LB: loop body
LE: loop exit
PB: predicated region body
PF: predicated region fallthrough
CT: control target
= control target key end

     0   :  { %s3640_s29 = smov 0   ;;  %s4456_s0 = inlined_call_operand.vmem [shape: f32[2,24,128], index: 0, kind: input, shape index: {}]   ;;  %s4457_s1 = inlined_call_operand.vmem [shape: f32[2,1,24], index: 1, kind: input, shape index: {}]   ;;  %s4458_s2 = inlined_call_operand.vmem [shape: f32[1,128], index: 2, kind: input, shape index: {}]   ;;  %s4459_s3 = inlined_call_operand.vmem [shape: f32[1,128], index: 3, kind: input, shape index: {}]   ;;  %s4460_s4 = inlined_call_operand.vmem [shape: bf16[128,384], index: 4, kind: input, shape index: {}]   ;;  %s4461_s5 = inlined_call_operand.vmem [shape: f32[1,384], index: 5, kind: input, shape index: {}]   ;;  %s4462_s6 = inlined_call_operand.vmem [shape: bf16[128,128], index: 6, kind: input, shape index: {}]   ;;  %s4463_s7 = inlined_call_operand.vmem [shape: f32[1,128], index: 7, kind: input, shape index: {}]   ;;  %s4464_s8 = inlined_call_operand.vmem [shape: f32[1,128], index: 8, kind: input, shape index: {}]   ;;  %s4465_s9 = inlined_call_operand.vmem [shape: f32[1,128], index: 9, kind: input, shape index: {}]   ;;  %s4466_s10 = inlined_call_operand.vmem [shape: bf16[128,512], index: 10, kind: input, shape index: {}]   ;;  %s4467_s11 = inlined_call_operand.vmem [shape: f32[1,512], index: 11, kind: input, shape index: {}]   ;;  %s4468_s12 = inlined_call_operand.vmem [shape: bf16[512,128], index: 12, kind: input, shape index: {}]   ;;  %s4469_s13 = inlined_call_operand.vmem [shape: f32[1,128], index: 13, kind: input, shape index: {}]   ;;  %s4470_s14 = inlined_call_operand.vmem [shape: f32[2,24,128], index: 14, kind: output, shape index: {}]  }
   0x1 LB: > { %s2929_s30 = sadd.s32 4294967295, %s3558_s29   ;;  %p2933_p0 = scmp.ge.s32.totalorder %s3558_s29, 1  ;;  %s3558_s29 = sphi %s3640_s29, %s24_s29  }
   0x2   : > { %p420_p1 = scmp.lt.s32.totalorder %s3558_s29, 3 }
   0x4   : > { %p421_p2 = pnand %p2933_p0, %p420_p1 }
   0x5   : > { %p469_p3 = scmp.lt.s32.totalorder (!%p421_p2), %s2929_s30, 1  ;;  %v3321_v3 = vld [vmem:[%s4460_s4 + $0x4] ss:$12 sps:$4 sm:$0xff] (!%p421_p2)   ;;  %v3323_v4 = vld [vmem:[%s4460_s4] ss:$12 sps:$4 sm:$0xff] (!%p421_p2)   ;;  %v3560_v35 = vmov (!%p421_p2), 0  }
   0x6   : > { %424 = sbr.rel (%p421_p2) target bundleno = 3949 (0xf6d), region = 76  ;;  %v3324_v5 = vld [vmem:[%s4460_s4 + $0x8] ss:$12 sps:$4 sm:$0xff] (!%p421_p2)   ;;  %720 = vmatprep.subr.bf16.mxu0 (!%p421_p2), %v3321_v3  ;;  %v3327_v19 = vld [vmem:[%s4460_s4 + $0x18] ss:$12 sps:$4 sm:$0xff] (!%p421_p2)   ;;  %752 = vmatprep.mubr.bf16.mxu0 (!%p421_p2), %v3560_v35  ;;  %vm850_vm0 = vcmask (!%p421_p2), 261120  }
   0x7   : > { %v3325_v6 = vld [vmem:[%s4460_s4 + $0x1c] ss:$12 sps:$4 sm:$0xff] (!%p421_p2)   ;;  %3179 = vmatprep.subr.bf16.mxu1 (!%p421_p2), %v3324_v5  ;;  %721 = vmatpush1.bf16.msra.mxu0 (!%p421_p2), %v3323_v4  ;;  %v3328_v20 = vld [vmem:[%s4460_s4 + $0x20] ss:$12 sps:$4 sm:$0xff] (!%p421_p2)   ;;  %v3332_v23 = vld [vmem:[%s4460_s4 + $0x38] ss:$12 sps:$4 sm:$0xff] (!%p421_p2)  }
   0x8   : > { %3180 = vmatpush3.bf16.msra.mxu1 (!%p421_p2), %v3324_v5  ;;  %722 = vmatprep.subr.bf16.mxu0 (!%p421_p2), %v3325_v6  ;;  %v3329_v21 = vld [vmem:[%s4460_s4 + $0x34] ss:$12 sps:$4 sm:$0xff] (!%p421_p2)   ;;  %v3331_v22 = vld [vmem:[%s4460_s4 + $0x30] ss:$12 sps:$4 sm:$0xff] (!%p421_p2)   ;;  %v3333_v24 = vld [vmem:[%s4460_s4 + $0x4c] ss:$12 sps:$4 sm:$0xff] (!%p421_p2)  }
   0x9   : > { %3181 = vmatprep.subr.bf16.mxu1 (!%p421_p2), %v3328_v20  ;;  %v3335_v25 = vld [vmem:[%s4460_s4 + $0x48] ss:$12 sps:$4 sm:$0xff] (!%p421_p2)   ;;  %v3336_v26 = vld [vmem:[%s4460_s4 + $0x50] ss:$12 sps:$4 sm:$0xff] (!%p421_p2)   ;;  %v3339_v28 = vld [vmem:[%s4460_s4 + $0x60] ss:$12 sps:$4 sm:$0xff] (!%p421_p2)  }
   0xa   : > { %v3337_v27 = vld [vmem:[%s4460_s4 + $0x64] ss:$12 sps:$4 sm:$0xff] (!%p421_p2)   ;;  %v3340_v29 = vld [vmem:[%s4460_s4 + $0x68] ss:$12 sps:$4 sm:$0xff] (!%p421_p2)   ;;  %v3344_v31 = vld [vmem:[%s4460_s4 + $0x80] ss:$12 sps:$4 sm:$0xff] (!%p421_p2)  }
   0xb   : > { %723 = vmatpush1.bf16.msra.mxu0 (!%p421_p2), %v3327_v19  ;;  %v3341_v30 = vld [vmem:[%s4460_s4 + $0x7c] ss:$12 sps:$4 sm:$0xff] (!%p421_p2)   ;;  %v3343_v32 = vld [vmem:[%s4460_s4 + $0x78] ss:$12 sps:$4 sm:$0xff] (!%p421_p2)   ;;  %v3345_v33 = vld [vmem:[%s4460_s4 + $0x94] ss:$12 sps:$4 sm:$0xff] (!%p421_p2)  }
   0xc   : > { %3182 = vmatpush3.bf16.msra.mxu1 (!%p421_p2), %v3328_v20  ;;  %724 = vmatprep.subr.bf16.mxu0 (!%p421_p2), %v3329_v21  ;;  %v3348_v34 = vld [vmem:[%s4460_s4 + $0x98] ss:$12 sps:$4 sm:$0xff] (!%p421_p2)   ;;  %v3347_v36 = vld [vmem:[%s4460_s4 + $0x90] ss:$12 sps:$4 sm:$0xff] (!%p421_p2)   ;;  %v3351_v39 = vld [vmem:[%s4460_s4 + $0xa8] ss:$12 sps:$4 sm:$0xff] (!%p421_p2)  }
   0xd   : > { %s4472_s30 = smov (!%p469_p3, %s2929_s30), 1  ;;  %3183 = vmatprep.subr.bf16.mxu1 %v3332_v23  ;;  %v3349_v37 = vld [vmem:[%s4460_s4 + $0xac] ss:$12 sps:$4 sm:$0xff]   ;;  %v3352_v38 = vld [vmem:[%s4460_s4 + $0xb0] ss:$12 sps:$4 sm:$0xff]   ;;  %vm953_vm1 = vcmask 1043456  }
   0xe   : > { %s3307_s15 = smul.u32 24, %s4472_s30  ;;  %v2936_v51 = vld [vmem:[%s4458_s2] ss:$0 sm:$0xff]  ;;  %s476_s27 = scalar_lea.vmem %s4457_s1, %s4472_s30  ;;  %vm911_vm2 = vcmask 195584  }
   0xf   : > { %725 = vmatpush1.bf16.msra.mxu0 %v3331_v22  ;;  %v2937_v57 = vld [vmem:[%s4459_s3] ss:$0 sm:$0xff]  ;;  %s3561_s28 = smov 96   ;;  %s3562_s21 = smov 64  }
  0x10   : > { %s3656_s18 = scalar_lea.vmem %s4456_s0, %s3307_s15  ;;  %3184 = vmatpush3.bf16.msra.mxu1 %v3332_v23  ;;  %726 = vmatprep.subr.bf16.mxu0 %v3333_v24  ;;  %v575_v4 = vld [vmem:[%s4461_s5] sm:$0x7]  ;;  %s3563_s22 = smov 32  }
  0x11   : > { %v483_v0 = vld [vmem:[%s3656_s18] sm:$0xff]  ;;  %v485_v1 = vld [vmem:[%s3656_s18 + $0x10] sm:$0xff]  ;;  %v484_v2 = vld [vmem:[%s3656_s18 + $0x8] sm:$0xff]  ;;  %3185 = vmatprep.subr.bf16.mxu1 %v3336_v26  ;;  %s481_s20 = scalar_lea.vmem %s4470_s14, %s3307_s15 }
  0x12   : > { %489 = vadd.xlane.f32.xlu0 %v483_v0  ;;  %493 = vadd.xlane.f32.xlu1 %v485_v1 }
  0x13   : > { %727 = vmatpush1.bf16.msra.mxu0 %v3335_v25 }
  0x14   : > { %3186 = vmatpush3.bf16.msra.mxu1 %v3336_v26  ;;  %728 = vmatprep.subr.bf16.mxu0 %v3337_v27 }
  0x15   : > { %3187 = vmatprep.subr.bf16.mxu1 %v3340_v29 }
  0x16   : > { %491 = vadd.xlane.f32.xlu0 %v484_v2 }
  0x17   : > { %729 = vmatpush1.bf16.msra.mxu0 %v3339_v28 }
  0x18   : > { %3188 = vmatpush3.bf16.msra.mxu1 %v3340_v29  ;;  %730 = vmatprep.subr.bf16.mxu0 %v3341_v30 }
  0x19   : > { %3189 = vmatprep.subr.bf16.mxu1 %v3344_v31 }
  0x1b   : > { %731 = vmatpush1.bf16.msra.mxu0 %v3343_v32 }
  0x1c   : > { %3190 = vmatpush3.bf16.msra.mxu1 %v3344_v31  ;;  %732 = vmatprep.subr.bf16.mxu0 %v3345_v33 }
  0x1d   : > { %3191 = vmatprep.subr.bf16.mxu1 %v3348_v34 }
  0x1f   : > { %733 = vmatpush1.bf16.msra.mxu0 %v3347_v36 }
  0x20   : > { %3192 = vmatpush3.bf16.msra.mxu1 %v3348_v34  ;;  %734 = vmatprep.subr.bf16.mxu0 %v3349_v37 }
  0x21   : > { %3193 = vmatprep.subr.bf16.mxu1 %v3352_v38 }
  0x23   : > { %735 = vmatpush1.bf16.msra.mxu0 %v3351_v39 }
  0x24   : > { %3194 = vmatpush3.bf16.msra.mxu1 %v3352_v38 }
  0x9f   : > { %v490_v7 = vpop.xlane.xlu0 %489  ;;  %v494_v8 = vpop.xlane.xlu1 %493 }
  0xa0   : > { %v496_v9 = vmul.f32 0.0078125, %v490_v7  ;;  %v498_v10 = vmul.f32 0.0078125, %v494_v8 }
  0xa2   : > { %v3673_v11 = vsub.f32 %v483_v0, %v496_v9  ;;  %v3675_v12 = vsub.f32 %v485_v1, %v498_v10  ;;  %v577_v1 = vlaneseq }
  0xa3   : > { %v492_v13 = vpop.xlane.xlu0 %491 }
  0xa4   : > { %v497_v14 = vmul.f32 0.0078125, %v492_v13  ;;  %v502_v15 = vmul.f32 %v3673_v11, %v3673_v11  ;;  %v504_v17 = vmul.f32 %v3675_v12, %v3675_v12 }
  0xa6   : > { %v3679_v16 = vsub.f32 %v484_v2, %v497_v14  ;;  %505 = vadd.xlane.f32.xlu1 %v502_v15  ;;  %v3756_v2 = vshrl.u32 %v577_v1, 7 }
  0xa8   : > { %v503_v18 = vmul.f32 %v3679_v16, %v3679_v16  ;;  %v579_v3 = vsub.s32 0, %v3756_v2  ;;  %v583_v5 = vsub.s32 1, %v3756_v2  ;;  %v587_v7 = vsub.s32 2, %v3756_v2 }
  0xaa   : > { %509 = vadd.xlane.f32.xlu1 %v504_v17  ;;  %507 = vadd.xlane.f32.xlu0 %v503_v18  ;;  %v580_v6 = vrot.slane %v575_v4, %v579_v3  ;;  %v584_v9 = vrot.slane %v575_v4, %v583_v5 }
 0x133   : > { %v506_v40 = vpop.xlane.xlu1 %505 }
 0x134   : > { %v511_v41 = vmul.f32 0.0078125, %v506_v40 }
 0x136   : > { %v514_v42 = vadd.f32 1e-05, %v511_v41 }
 0x137   : > { %v510_v43 = vpop.xlane.xlu1 %509  ;;  %v508_v44 = vpop.xlane.xlu0 %507 }
 0x138   : > { %3441 = vrsqrt.f32 %v514_v42  ;;  %v513_v45 = vmul.f32 0.0078125, %v510_v43  ;;  %v512_v46 = vmul.f32 0.0078125, %v508_v44  ;;  %v3804_v44 = vld [vmem:[%s476_s27] ss:$0 sm:$0xff] }
 0x13a   : > { %v516_v47 = vadd.f32 1e-05, %v513_v45  ;;  %v515_v48 = vadd.f32 1e-05, %v512_v46 }
 0x13c   : > { %3443 = vrsqrt.f32 %v516_v47 }
 0x13d   : > { %3445 = vrsqrt.f32 %v515_v48 }
 0x142   : > { %v3442_v49 = vpop.eup %3441 }
 0x143   : > { %v520_v50 = vmul.f32 %v3442_v49, %v3673_v11 }
 0x145   : > { %v529_v56 = vmul.f32 %v2936_v51, %v520_v50 }
 0x146   : > { %v3444_v52 = vpop.eup %3443 }
 0x147   : > { %v3446_v53 = vpop.eup %3445  ;;  %v522_v54 = vmul.f32 %v3444_v52, %v3675_v12  ;;  %v538_v61 = vadd.f32 %v2937_v57, %v529_v56  ;;  %v588_v12 = vrot.slane %v575_v4, %v587_v7 }
 0x148   : > { %v521_v55 = vmul.f32 %v3446_v53, %v3679_v16 }
 0x149   : > { %v531_v58 = vmul.f32 %v2936_v51, %v522_v54 }
 0x14a   : > { %v530_v59 = vmul.f32 %v2936_v51, %v521_v55 }
 0x14b   : > { %v540_v60 = vadd.f32 %v2937_v57, %v531_v58 }
 0x14c   : > { %v539_v62 = vadd.f32 %v2937_v57, %v530_v59 }
 0x14d   : > { %v542_v63 = vpack.c.bf16 %v540_v60, %v540_v60 }
 0x14e   : > { %v541_v0 = vpack.c.bf16 %v539_v62, %v538_v61 }
 0x150   : > { %753 = vmatmul.mubr.bf16.vlgmr.msra.gmra.mrb[0].mxu0 %v541_v0  ;;  %3195 = vmatprep.mubr.bf16.mxu1 %v541_v0 }
 0x151   : > { %3196 = vmatmul.mubr.bf16.vlgmr.msra.gmra.mrb[0].mxu1 %v542_v63  ;;  %762 = vmatprep.mubr.bf16.mxu0 %v3560_v35 }
 0x158   : > { %763 = vmatmul.mubr.bf16.gmra.mrb[4].mxu0 %v542_v63 }
 0x223   : > { %v754_v8 = vpop.f32.mrb[0].mxu0 }
 0x224   : > { %v755_v10 = vadd.f32 %v754_v8, %v580_v6  ;;  %v756_v11 = vpop.f32.mrb[1].mxu0  ;;  %v3197_v13 = vpop.f32.mrb[0].mxu1 }
 0x225   : > { %v758_v14 = vpop.f32.mrb[2].mxu0  ;;  %v805_v15 = vpop.f32.mrb[1].mxu1  ;;  %v757_v19 = vadd.f32 %v756_v11, %v584_v9  ;;  %v814_v26 = vadd.f32 %v3197_v13, %v588_v12 }
 0x226   : > { %v759_v16 = vadd.f32 %v758_v14, %v580_v6  ;;  %v760_v17 = vpop.f32.mrb[3].mxu0  ;;  %v3198_v18 = vpop.f32.mrb[2].mxu1  ;;  %v835_v22 = vmul.f32 0.17677669, %v755_v10  ;;  %v806_v24 = vadd.f32 %v805_v15, %v588_v12 }
 0x227   : > { %v761_v20 = vadd.f32 %v760_v17, %v584_v9  ;;  %v808_v21 = vpop.f32.mrb[3].mxu1  ;;  %v3782_v33 = vpack.c.bf16 %v814_v26, %v814_v26 }
 0x228   : > { %v836_v23 = vmul.f32 0.17677669, %v759_v16  ;;  %v809_v25 = vadd.f32 %v808_v21, %v588_v12 }
 0x229   : > { %v3770_v27 = vpack.c.bf16 %v761_v20, %v757_v19  ;;  %v955_v40 = vsel %vm953_vm1, %v3782_v33, 0 }
 0x22a   : > { %v3772_v28 = vpack.c.bf16 %v836_v23, %v835_v22  ;;  %v3774_v29 = vpack.c.bf16 %v809_v25, %v806_v24  ;;  %v3353_v25 = vld [vmem:[%s4462_s6] sm:$0xff]  }
 0x22b   : > { %v764_v30 = vpop.f32.mrb[4].mxu0  ;;  %3295 = vmatprep.subr.msk.bf16.mxu0 %vm850_vm0, %v3770_v27  ;;  %v858_v31 = vsel %vm850_vm0, %v3770_v27, 0 }
 0x22c   : > { %v766_v32 = vpop.f32.mrb[5].mxu0  ;;  %3200 = vmatpush3.bf16.xpose.msra.mxu0 %v858_v31  ;;  %3203 = vmatprep.mubr.msk.bf16.mxu0 %vm850_vm0, %v3772_v28  ;;  %v765_v39 = vadd.f32 %v764_v30, %v580_v6  ;;  %v3354_v31 = vld [vmem:[%s4462_s6 + $0x8] sm:$0xff]  }
 0x22d   : > { %v767_v34 = vadd.f32 %v766_v32, %v584_v9  ;;  %3207 = vmatprep.subr.bf16.mxu1 %v3774_v29  ;;  %v768_v36 = vpop.f32.mrb[6].mxu0 }
 0x22e   : > { %3208 = vmatpush3.bf16.msra.mxu1 %v3774_v29  ;;  %v769_v37 = vpop.f32.mrb[7].mxu0  ;;  %v837_v42 = vmul.f32 0.17677669, %v765_v39 }
 0x22f   : > { %v3786_v38 = vpack.c.bf16 %v767_v34, %v767_v34  ;;  %3297 = vmatprep.subr.msk.bf16.mxu1 %vm953_vm1, %v3782_v33 }
 0x230   : > { %v3796_v43 = vpack.c.bf16 %v837_v42, %v837_v42 }
 0x231   : > { %3296 = vmatprep.subr.msk.bf16.mxu0 %vm850_vm0, %v3786_v38  ;;  %v861_v41 = vsel %vm850_vm0, %v3786_v38, 0 }
 0x232   : > { %3210 = vmatpush3.bf16.msra.mxu1 %v955_v40 }
 0x234   : > { %3202 = vmatpush3.bf16.xpose.msra.mxu0 %v861_v41 }
 0x23b   : > { %3204 = vmatmul.mubr.msk.bf16.vlgmr.msra.gmra.mrb[8].mxu0 %vm850_vm0, %v3796_v43 }
 0x30e   : > { %v3205_v45 = vpop.f32.mrb[8].mxu0 }
 0x30f   : > { %v897_v46 = vpop.f32.mrb[9].mxu0  ;;  %v906_v50 = vadd.f32 %v3205_v45, %v3804_v44 }
 0x310   : > { %v898_v47 = vadd.f32 %v3804_v44, %v897_v46  ;;  %v3206_v48 = vpop.f32.mrb[10].mxu0 }
 0x311   : > { %v900_v49 = vpop.f32.mrb[11].mxu0  ;;  %v918_v54 = vsel %vm911_vm2, %v906_v50, -inf }
 0x312   : > { %v901_v51 = vadd.f32 %v3804_v44, %v900_v49  ;;  %v912_v52 = vsel %vm911_vm2, %v898_v47, -inf }
 0x313   : > { %913 = vmax.xlane.f32.xlu0 %v912_v52 }
 0x314   : > { %v915_v53 = vsel %vm911_vm2, %v901_v51, -inf }
 0x315   : > { %916 = vmax.xlane.f32.xlu1 %v915_v53 }
 0x317   : > { %919 = vmax.xlane.f32.xlu0 %v918_v54 }
 0x3a0   : > { %v914_v55 = vpop.xlane.xlu0 %913 }
 0x3a1   : > { %v921_v56 = vsub.f32 %v898_v47, %v914_v55 }
 0x3a2   : > { %v917_v57 = vpop.xlane.xlu1 %916 }
 0x3a3   : > { %v924_v58 = vmul.f32 1.442695, %v921_v56  ;;  %v922_v59 = vsub.f32 %v901_v51, %v917_v57 }
 0x3a4   : > { %v920_v60 = vpop.xlane.xlu0 %919 }
 0x3a5   : > { %3447 = vpow2.f32 %v924_v58  ;;  %v926_v61 = vmul.f32 1.442695, %v922_v59  ;;  %v923_v62 = vsub.f32 %v906_v50, %v920_v60 }
 0x3a7   : > { %3449 = vpow2.f32 %v926_v61  ;;  %v928_v63 = vmul.f32 1.442695, %v923_v62 }
 0x3a9   : > { %3451 = vpow2.f32 %v928_v63 }
 0x3af   : > { %v3448_v0 = vpop.eup %3447 }
 0x3b0   : > { %v930_v1 = vsel %vm911_vm2, %v3448_v0, 0.0 }
 0x3b1   : > { %v3450_v4 = vpop.eup %3449  ;;  %931 = vadd.xlane.f32.xlu1 %v930_v1 }
 0x3b2   : > { %v933_v6 = vsel %vm911_vm2, %v3450_v4, 0.0 }
 0x3b3   : > { %v3452_v8 = vpop.eup %3451  ;;  %934 = vadd.xlane.f32.xlu0 %v933_v6 }
 0x3b4   : > { %v936_v9 = vsel %vm911_vm2, %v3452_v8, 0.0 }
 0x3b5   : > { %937 = vadd.xlane.f32.xlu1 %v936_v9 }
 0x3c6   : > { %1017 = vrot.lane.b32.xlu1 %v3786_v38, %s3561_s28 }
 0x3c9   : > { %1015 = vrot.lane.b32.xlu0 %v3770_v27, %s3561_s28 }
 0x3ca   : > { %1009 = vrot.lane.b32.xlu1 %v3772_v28, %s3561_s28 }
 0x3ce   : > { %1011 = vrot.lane.b32.xlu1 %v3796_v43, %s3561_s28 }
 0x43e   : > { %v932_v10 = vpop.xlane.xlu1 %931 }
 0x43f   : > { %3453 = vrcp.f32 %v932_v10 }
 0x440   : > { %v935_v11 = vpop.xlane.xlu0 %934 }
 0x441   : > { %3455 = vrcp.f32 %v935_v11 }
 0x442   : > { %v938_v12 = vpop.xlane.xlu1 %937 }
 0x443   : > { %3457 = vrcp.f32 %v938_v12 }
 0x444   : > { %v1016_v13 = vpop.permute.xlu0 %1015 }
 0x445   : > { %3298 = vmatprep.subr.msk.bf16.mxu1 %vm850_vm0, %v1016_v13  ;;  %v1026_v23 = vsel %vm850_vm0, %v1016_v13, 0 }
 0x446   : > { %v1018_v16 = vpop.permute.xlu1 %1017 }
 0x447   : > { %v1029_v26 = vsel %vm850_vm0, %v1018_v16, 0 }
 0x449   : > { %v3454_v14 = vpop.eup %3453 }
 0x44a   : > { %v942_v17 = vmul.f32 %v3454_v14, %v3448_v0  ;;  %v1010_v24 = vpop.permute.xlu1 %1009 }
 0x44b   : > { %v3456_v15 = vpop.eup %3455 }
 0x44c   : > { %v943_v18 = vmul.f32 %v3456_v15, %v3450_v4 }
 0x44d   : > { %v3458_v19 = vpop.eup %3457 }
 0x44e   : > { %v944_v20 = vmul.f32 %v3458_v19, %v3452_v8  ;;  %v945_v21 = vpack.c.bf16 %v943_v18, %v942_v17  ;;  %v1012_v30 = vpop.permute.xlu1 %1011 }
 0x450   : > { %3211 = vmatprep.mubr.msk.bf16.mxu1 %vm911_vm2, %v945_v21  ;;  %v946_v22 = vpack.c.bf16 %v944_v20, %v944_v20 }
 0x452   : > { %3212 = vmatmul.mubr.msk.bf16.vlgmr.msra.gmra.mrb[4].mxu1 %vm911_vm2, %v946_v22 }
 0x453   : > { %3216 = vmatpush3.bf16.xpose.msra.mxu1 %v1026_v23  ;;  %3219 = vmatprep.mubr.msk.bf16.mxu1 %vm850_vm0, %v1010_v24  ;;  %v3356_v23 = vld [vmem:[%s4462_s6 + $0x18] sm:$0xff]  }
 0x454   : > { %3299 = vmatprep.subr.msk.bf16.mxu1 %vm850_vm0, %v1018_v16 }
 0x45b   : > { %3218 = vmatpush3.bf16.xpose.msra.mxu1 %v1029_v26 }
 0x45c   : > { %3239 = vmatprep.subr.bf16.mxu1 %v3353_v25 }
 0x462   : > { %3220 = vmatmul.mubr.msk.bf16.vlgmr.msra.gmra.mrb[8].mxu1 %vm850_vm0, %v1012_v30 }
 0x463   : > { %3240 = vmatpush3.bf16.msra.mxu1 %v3353_v25 }
 0x464   : > { %3241 = vmatprep.subr.bf16.mxu1 %v3354_v31 }
 0x467   : > { %3242 = vmatpush3.bf16.msra.mxu1 %v3354_v31 }
 0x525   : > { %v3213_v32 = vpop.f32.mrb[4].mxu1 }
 0x526   : > { %v991_v34 = vpop.f32.mrb[5].mxu1  ;;  %v1006_v40 = vpack.c.bf16 %v3213_v32, %v3213_v32 }
 0x527   : > { %v3214_v36 = vpop.f32.mrb[6].mxu1 }
 0x528   : > { %v994_v37 = vpop.f32.mrb[7].mxu1 }
 0x529   : > { %v1005_v39 = vpack.c.bf16 %v994_v37, %v991_v34 }
 0x52b   : > { %3243 = vmatprep.mubr.msk.bf16.mxu1 %vm850_vm0, %v1005_v39 }
 0x52c   : > { %3244 = vmatmul.mubr.msk.bf16.vlgmr.msra.gmra.mrb[12].mxu1 %vm850_vm0, %v1006_v40 }
 0x535   : > { %v3221_v41 = vpop.f32.mrb[8].mxu1 }
 0x536   : > { %v1065_v42 = vpop.f32.mrb[9].mxu1  ;;  %v1074_v48 = vadd.f32 %v3221_v41, %v3804_v44 }
 0x537   : > { %v1066_v45 = vadd.f32 %v3804_v44, %v1065_v42  ;;  %v3222_v46 = vpop.f32.mrb[10].mxu1 }
 0x538   : > { %v1068_v47 = vpop.f32.mrb[11].mxu1  ;;  %v1085_v52 = vsel %vm911_vm2, %v1074_v48, -inf }
 0x539   : > { %v1069_v49 = vadd.f32 %v3804_v44, %v1068_v47  ;;  %v1079_v50 = vsel %vm911_vm2, %v1066_v45, -inf }
 0x53a   : > { %1080 = vmax.xlane.f32.xlu0 %v1079_v50 }
 0x53b   : > { %v1082_v51 = vsel %vm911_vm2, %v1069_v49, -inf }
 0x53c   : > { %1083 = vmax.xlane.f32.xlu1 %v1082_v51 }
 0x53e   : > { %1086 = vmax.xlane.f32.xlu0 %v1085_v52 }
 0x5c7   : > { %v1081_v53 = vpop.xlane.xlu0 %1080 }
 0x5c8   : > { %v1088_v54 = vsub.f32 %v1066_v45, %v1081_v53 }
 0x5c9   : > { %v1084_v55 = vpop.xlane.xlu1 %1083 }
 0x5ca   : > { %v1091_v56 = vmul.f32 1.442695, %v1088_v54  ;;  %v1089_v57 = vsub.f32 %v1069_v49, %v1084_v55 }
 0x5cb   : > { %v1087_v58 = vpop.xlane.xlu0 %1086 }
 0x5cc   : > { %3459 = vpow2.f32 %v1091_v56  ;;  %v1093_v59 = vmul.f32 1.442695, %v1089_v57  ;;  %v1090_v60 = vsub.f32 %v1074_v48, %v1087_v58 }
 0x5ce   : > { %3461 = vpow2.f32 %v1093_v59  ;;  %v1095_v61 = vmul.f32 1.442695, %v1090_v60 }
 0x5d0   : > { %3463 = vpow2.f32 %v1095_v61 }
 0x5d6   : > { %v3460_v62 = vpop.eup %3459 }
 0x5d7   : > { %v1097_v63 = vsel %vm911_vm2, %v3460_v62, 0.0 }
 0x5d8   : > { %v3462_v0 = vpop.eup %3461  ;;  %1098 = vadd.xlane.f32.xlu0 %v1097_v63 }
 0x5d9   : > { %v1100_v4 = vsel %vm911_vm2, %v3462_v0, 0.0 }
 0x5da   : > { %v3464_v1 = vpop.eup %3463 }
 0x5db   : > { %v1103_v6 = vsel %vm911_vm2, %v3464_v1, 0.0 }
 0x5dc   : > { %1101 = vadd.xlane.f32.xlu0 %v1100_v4  ;;  %1104 = vadd.xlane.f32.xlu1 %v1103_v6 }
 0x5ed   : > { %1118 = vrot.lane.b32.xlu1 %v3782_v33, %s3561_s28 }
 0x5f1   : > { %1316 = vrot.lane.b32.xlu1 %v3770_v27, %s3562_s21 }
 0x5f2   : > { %1116 = vrot.lane.b32.xlu0 %v3774_v29, %s3561_s28 }
 0x5f5   : > { %1318 = vrot.lane.b32.xlu1 %v3786_v38, %s3562_s21 }
 0x5f6   : > { %1312 = vrot.lane.b32.xlu0 %v3772_v28, %s3562_s21 }
 0x5f9   : > { %1314 = vrot.lane.b32.xlu1 %v3796_v43, %s3562_s21 }
 0x5fa   : > { %1552 = vrot.lane.b32.xlu0 %v3770_v27, %s3563_s22 }
 0x5fd   : > { %1554 = vrot.lane.b32.xlu1 %v3786_v38, %s3563_s22 }
 0x5fe   : > { %1548 = vrot.lane.b32.xlu0 %v3772_v28, %s3563_s22  ;;  %v3355_v28 = vld [vmem:[%s4462_s6 + $0x10] sm:$0xff]  }
 0x5ff   : > { %v3866_v8 = vpop.f32.mrb[12].mxu1 }
 0x600   : > { %v3868_v9 = vpop.f32.mrb[13].mxu1 }
 0x601   : > { %1550 = vrot.lane.b32.xlu1 %v3796_v43, %s3563_s22  ;;  %v3246_v10 = vpop.f32.mrb[14].mxu1 }
 0x602   : > { %v3872_v11 = vpop.f32.mrb[15].mxu1 }
 0x665   : > { %v1099_v12 = vpop.xlane.xlu0 %1098 }
 0x666   : > { %3465 = vrcp.f32 %v1099_v12 }
 0x669   : > { %v1105_v13 = vpop.xlane.xlu1 %1104  ;;  %v1102_v27 = vpop.xlane.xlu0 %1101 }
 0x66a   : > { %3467 = vrcp.f32 %v1105_v13 }
 0x66b   : > { %3469 = vrcp.f32 %v1102_v27 }
 0x66d   : > { %v1117_v38 = vpop.permute.xlu0 %1116  ;;  %v1119_v14 = vpop.permute.xlu1 %1118 }
 0x66e   : > { %3223 = vmatprep.subr.bf16.mxu0 %v1117_v38  ;;  %v1128_v43 = vsel %vm953_vm1, %v1119_v14, 0 }
 0x66f   : > { %3224 = vmatpush3.bf16.msra.mxu0 %v1117_v38 }
 0x670   : > { %3300 = vmatprep.subr.msk.bf16.mxu0 %vm953_vm1, %v1119_v14  ;;  %v3466_v15 = vpop.eup %3465 }
 0x671   : > { %v1109_v19 = vmul.f32 %v3466_v15, %v3460_v62  ;;  %v1317_v24 = vpop.permute.xlu1 %1316  ;;  %v1313_v37 = vpop.permute.xlu0 %1312 }
 0x672   : > { %v1327_v36 = vsel %vm850_vm0, %v1317_v24, 0 }
 0x673   : > { %3226 = vmatpush3.bf16.msra.mxu0 %v1128_v43 }
 0x674   : > { %v3468_v16 = vpop.eup %3467  ;;  %3231 = vmatprep.subr.bf16.mxu0 %v3355_v28 }
 0x675   : > { %v3470_v17 = vpop.eup %3469  ;;  %v1111_v18 = vmul.f32 %v3468_v16, %v3464_v1  ;;  %v1319_v39 = vpop.permute.xlu1 %1318 }
 0x676   : > { %v1110_v20 = vmul.f32 %v3470_v17, %v3462_v0  ;;  %v1330_v40 = vsel %vm850_vm0, %v1319_v39, 0  ;;  %v1553_v41 = vpop.permute.xlu0 %1552 }
 0x677   : > { %v1113_v21 = vpack.c.bf16 %v1111_v18, %v1111_v18  ;;  %v1563_v45 = vsel %vm850_vm0, %v1553_v41, 0 }
 0x678   : > { %v1112_v22 = vpack.c.bf16 %v1110_v20, %v1109_v19 }
 0x679   : > { %v1315_v42 = vpop.permute.xlu1 %1314 }
 0x67a   : > { %3227 = vmatprep.mubr.msk.bf16.mxu0 %vm911_vm2, %v1112_v22  ;;  %v1549_v46 = vpop.permute.xlu0 %1548 }
 0x67b   : > { %3228 = vmatmul.mubr.msk.bf16.vlgmr.msra.gmra.mrb[12].mxu0 %vm911_vm2, %v1113_v21 }
 0x67c   : > { %3232 = vmatpush3.bf16.msra.mxu0 %v3355_v28 }
 0x67d   : > { %3233 = vmatprep.subr.bf16.mxu0 %v3356_v23  ;;  %v1555_v47 = vpop.permute.xlu1 %1554 }
 0x67e   : > { %v1566_v48 = vsel %vm850_vm0, %v1555_v47, 0 }
 0x680   : > { %3234 = vmatpush3.bf16.msra.mxu0 %v3356_v23 }
 0x681   : > { %3301 = vmatprep.subr.msk.bf16.mxu0 %vm850_vm0, %v1317_v24  ;;  %v1551_v49 = vpop.permute.xlu1 %1550 }
 0x74e   : > { %v3229_v25 = vpop.f32.mrb[12].mxu0 }
 0x74f   : > { %v1164_v26 = vpop.f32.mrb[13].mxu0  ;;  %v1179_v34 = vpack.c.bf16 %v3229_v25, %v3229_v25 }
 0x750   : > { %v3230_v30 = vpop.f32.mrb[14].mxu0 }
 0x751   : > { %v1167_v31 = vpop.f32.mrb[15].mxu0 }
 0x752   : > { %v1178_v32 = vpack.c.bf16 %v1167_v31, %v1164_v26 }
 0x754   : > { %3235 = vmatprep.mubr.msk.bf16.mxu0 %vm850_vm0, %v1178_v32 }
 0x755   : > { %3236 = vmatmul.mubr.msk.bf16.vlgmr.msra.gmra.mrb[16].mxu0 %vm850_vm0, %v1179_v34 }
 0x756   : > { %3248 = vmatpush3.bf16.xpose.msra.mxu0 %v1327_v36  ;;  %3251 = vmatprep.mubr.msk.bf16.mxu0 %vm850_vm0, %v1313_v37 }
 0x757   : > { %3302 = vmatprep.subr.msk.bf16.mxu0 %vm850_vm0, %v1319_v39 }
 0x75e   : > { %3250 = vmatpush3.bf16.xpose.msra.mxu0 %v1330_v40 }
 0x75f   : > { %3304 = vmatprep.subr.msk.bf16.mxu0 %vm850_vm0, %v1553_v41 }
 0x765   : > { %3252 = vmatmul.mubr.msk.bf16.vlgmr.msra.gmra.mrb[20].mxu0 %vm850_vm0, %v1315_v42 }
 0x766   : > { %3272 = vmatpush3.bf16.xpose.msra.mxu0 %v1563_v45  ;;  %3275 = vmatprep.mubr.msk.bf16.mxu0 %vm850_vm0, %v1549_v46 }
 0x767   : > { %3305 = vmatprep.subr.msk.bf16.mxu0 %vm850_vm0, %v1555_v47 }
 0x76e   : > { %3274 = vmatpush3.bf16.xpose.msra.mxu0 %v1566_v48 }
 0x775   : > { %3276 = vmatmul.mubr.msk.bf16.vlgmr.msra.gmra.mrb[24].mxu0 %vm850_vm0, %v1551_v49 }
 0x776   : > { %2098 = vmatprep.mubr.bf16.mxu0 %v3560_v35 }
 0x828   : > { %v3237_v50 = vpop.f32.mrb[16].mxu0 }
 0x829   : > { %v3900_v51 = vadd.f32 %v3866_v8, %v3237_v50  ;;  %v1232_v52 = vpop.f32.mrb[17].mxu0 }
 0x82a   : > { %v3903_v53 = vadd.f32 %v3868_v9, %v1232_v52  ;;  %v3238_v54 = vpop.f32.mrb[18].mxu0 }
 0x82b   : > { %v1235_v55 = vpop.f32.mrb[19].mxu0 }
 0x82c   : > { %v3906_v56 = vadd.f32 %v3872_v11, %v1235_v55 }
 0x838   : > { %v3253_v57 = vpop.f32.mrb[20].mxu0 }
 0x839   : > { %v1366_v58 = vpop.f32.mrb[21].mxu0  ;;  %v1375_v62 = vadd.f32 %v3253_v57, %v3804_v44 }
 0x83a   : > { %v1367_v59 = vadd.f32 %v3804_v44, %v1366_v58  ;;  %v3254_v60 = vpop.f32.mrb[22].mxu0 }
 0x83b   : > { %v1369_v61 = vpop.f32.mrb[23].mxu0  ;;  %v1386_v4 = vsel %vm911_vm2, %v1375_v62, -inf }
 0x83c   : > { %v1370_v63 = vadd.f32 %v3804_v44, %v1369_v61  ;;  %v1380_v0 = vsel %vm911_vm2, %v1367_v59, -inf }
 0x83d   : > { %1381 = vmax.xlane.f32.xlu0 %v1380_v0 }
 0x83e   : > { %v1383_v1 = vsel %vm911_vm2, %v1370_v63, -inf }
 0x83f   : > { %1384 = vmax.xlane.f32.xlu1 %v1383_v1 }
 0x841   : > { %1387 = vmax.xlane.f32.xlu0 %v1386_v4 }
 0x848   : > { %v3277_v6 = vpop.f32.mrb[24].mxu0 }
 0x849   : > { %v1602_v8 = vpop.f32.mrb[25].mxu0  ;;  %v1611_v24 = vadd.f32 %v3277_v6, %v3804_v44 }
 0x84a   : > { %v3278_v9 = vpop.f32.mrb[26].mxu0  ;;  %v1603_v22 = vadd.f32 %v3804_v44, %v1602_v8  ;;  %v3358_v8 = vld [vmem:[%s4462_s6 + $0x28] sm:$0xff]  }
 0x84b   : > { %v1605_v10 = vpop.f32.mrb[27].mxu0  ;;  %v1622_v30 = vsel %vm911_vm2, %v1611_v24, -inf }
 0x84c   : > { %v1606_v23 = vadd.f32 %v3804_v44, %v1605_v10  ;;  %v1616_v26 = vsel %vm911_vm2, %v1603_v22, -inf  ;;  %v3357_v44 = vld [vmem:[%s4462_s6 + $0x20] sm:$0xff]  }
 0x84e   : > { %v1619_v25 = vsel %vm911_vm2, %v1606_v23, -inf }
 0x8ca   : > { %v1382_v11 = vpop.xlane.xlu0 %1381 }
 0x8cb   : > { %v1389_v12 = vsub.f32 %v1367_v59, %v1382_v11 }
 0x8cc   : > { %v1385_v13 = vpop.xlane.xlu1 %1384 }
 0x8cd   : > { %v1392_v27 = vmul.f32 1.442695, %v1389_v12  ;;  %v1390_v38 = vsub.f32 %v1370_v63, %v1385_v13 }
 0x8ce   : > { %v1388_v14 = vpop.xlane.xlu0 %1387 }
 0x8cf   : > { %3471 = vpow2.f32 %v1392_v27  ;;  %v1394_v28 = vmul.f32 1.442695, %v1390_v38  ;;  %v1391_v43 = vsub.f32 %v1375_v62, %v1388_v14 }
 0x8d1   : > { %3473 = vpow2.f32 %v1394_v28  ;;  %v1396_v15 = vmul.f32 1.442695, %v1391_v43 }
 0x8d3   : > { %3475 = vpow2.f32 %v1396_v15 }
 0x8d9   : > { %v3472_v16 = vpop.eup %3471 }
 0x8da   : > { %v1398_v17 = vsel %vm911_vm2, %v3472_v16, 0.0 }
 0x8db   : > { %v3474_v18 = vpop.eup %3473  ;;  %1399 = vadd.xlane.f32.xlu0 %v1398_v17 }
 0x8dc   : > { %v1401_v20 = vsel %vm911_vm2, %v3474_v18, 0.0 }
 0x8dd   : > { %v3476_v19 = vpop.eup %3475 }
 0x8de   : > { %v1404_v21 = vsel %vm911_vm2, %v3476_v19, 0.0 }
 0x8df   : > { %1402 = vadd.xlane.f32.xlu0 %v1401_v20  ;;  %1405 = vadd.xlane.f32.xlu1 %v1404_v21 }
 0x8f0   : > { %1417 = vrot.lane.b32.xlu1 %v3782_v33, %s3562_s21 }
 0x8f5   : > { %1415 = vrot.lane.b32.xlu0 %v3774_v29, %s3562_s21 }
 0x914   : > { %1620 = vmax.xlane.f32.xlu0 %v1619_v25  ;;  %1617 = vmax.xlane.f32.xlu1 %v1616_v26 }
 0x918   : > { %1623 = vmax.xlane.f32.xlu0 %v1622_v30 }
 0x968   : > { %v1400_v31 = vpop.xlane.xlu0 %1399 }
 0x969   : > { %3477 = vrcp.f32 %v1400_v31 }
 0x96c   : > { %v1406_v32 = vpop.xlane.xlu1 %1405  ;;  %v1403_v34 = vpop.xlane.xlu0 %1402 }
 0x96d   : > { %3479 = vrcp.f32 %v1406_v32 }
 0x96e   : > { %3481 = vrcp.f32 %v1403_v34 }
 0x970   : > { %v1416_v36 = vpop.permute.xlu0 %1415  ;;  %v1418_v37 = vpop.permute.xlu1 %1417 }
 0x971   : > { %3255 = vmatprep.subr.bf16.mxu1 %v1416_v36  ;;  %v1427_v39 = vsel %vm953_vm1, %v1418_v37, 0 }
 0x972   : > { %3256 = vmatpush3.bf16.msra.mxu1 %v1416_v36 }
 0x973   : > { %3303 = vmatprep.subr.msk.bf16.mxu1 %vm953_vm1, %v1418_v37  ;;  %v3478_v40 = vpop.eup %3477 }
 0x974   : > { %v1410_v46 = vmul.f32 %v3478_v40, %v3472_v16 }
 0x976   : > { %3258 = vmatpush3.bf16.msra.mxu1 %v1427_v39 }
 0x977   : > { %v3480_v41 = vpop.eup %3479  ;;  %3263 = vmatprep.subr.bf16.mxu1 %v3357_v44 }
 0x978   : > { %v3482_v42 = vpop.eup %3481  ;;  %v1412_v45 = vmul.f32 %v3480_v41, %v3476_v19 }
 0x979   : > { %v1411_v47 = vmul.f32 %v3482_v42, %v3474_v18 }
 0x97a   : > { %v1414_v48 = vpack.c.bf16 %v1412_v45, %v1412_v45 }
 0x97b   : > { %v1413_v49 = vpack.c.bf16 %v1411_v47, %v1410_v46 }
 0x97d   : > { %3259 = vmatprep.mubr.msk.bf16.mxu1 %vm911_vm2, %v1413_v49  ;;  %v3549_v49 = vld [vmem:[%s3656_s18] sm:$0xff] }
 0x97e   : > { %3260 = vmatmul.mubr.msk.bf16.vlgmr.msra.gmra.mrb[16].mxu1 %vm911_vm2, %v1414_v48  ;;  %v2995_v48 = vld [vmem:[%s4463_s7] ss:$0 sm:$0xff] }
 0x97f   : > { %3264 = vmatpush3.bf16.msra.mxu1 %v3357_v44 }
 0x980   : > { %3265 = vmatprep.subr.bf16.mxu1 %v3358_v8 }
 0x983   : > { %3266 = vmatpush3.bf16.msra.mxu1 %v3358_v8  ;;  %v3367_v8 = vld [vmem:[%s4466_s10 + $0x20] ss:$16 sps:$4 sm:$0xff]  }
 0x9a1   : > { %v1618_v50 = vpop.xlane.xlu1 %1617  ;;  %v1621_v52 = vpop.xlane.xlu0 %1620 }
 0x9a2   : > { %v1626_v54 = vsub.f32 %v1606_v23, %v1621_v52  ;;  %v1625_v55 = vsub.f32 %v1603_v22, %v1618_v50  ;;  %v3359_v23 = vld [vmem:[%s4462_s6 + $0x30] sm:$0xff]  }
 0x9a4   : > { %v1630_v57 = vmul.f32 1.442695, %v1626_v54  ;;  %v1628_v60 = vmul.f32 1.442695, %v1625_v55  ;;  %v3550_v54 = vld [vmem:[%s3656_s18 + $0x8] sm:$0xff] }
 0x9a5   : > { %v1624_v58 = vpop.xlane.xlu0 %1623 }
 0x9a6   : > { %v1627_v59 = vsub.f32 %v1611_v24, %v1624_v58  ;;  %3483 = vpow2.f32 %v1630_v57  ;;  %v3360_v24 = vld [vmem:[%s4462_s6 + $0x38] sm:$0xff]   ;;  %v3551_v58 = vld [vmem:[%s3656_s18 + $0x10] sm:$0xff] }
 0x9a8   : > { %v1632_v61 = vmul.f32 1.442695, %v1627_v59 }
 0x9aa   : > { %3485 = vpow2.f32 %v1632_v61 }
 0x9ab   : > { %3487 = vpow2.f32 %v1628_v60 }
 0x9b0   : > { %v3484_v62 = vpop.eup %3483 }
 0x9b1   : > { %v1637_v63 = vsel %vm911_vm2, %v3484_v62, 0.0 }
 0x9b2   : > { %1638 = vadd.xlane.f32.xlu0 %v1637_v63  ;;  %v3363_v63 = vld [vmem:[%s4466_s10 + $0x4] ss:$16 sps:$4 sm:$0xff]  }
 0x9b3   : > { %2066 = vmatprep.subr.bf16.mxu0 %v3363_v63 }
 0x9b4   : > { %v3486_v0 = vpop.eup %3485 }
 0x9b5   : > { %v1640_v1 = vsel %vm911_vm2, %v3486_v0, 0.0  ;;  %v3488_v4 = vpop.eup %3487 }
 0x9b6   : > { %1641 = vadd.xlane.f32.xlu1 %v1640_v1  ;;  %v1634_v6 = vsel %vm911_vm2, %v3488_v4, 0.0  ;;  %v3366_v1 = vld [vmem:[%s4466_s10 + $0xc] ss:$16 sps:$4 sm:$0xff]  }
 0x9ba   : > { %1635 = vadd.xlane.f32.xlu1 %v1634_v6  ;;  %v3372_v6 = vld [vmem:[%s4466_s10 + $0x2c] ss:$16 sps:$4 sm:$0xff]  }
 0x9c8   : > { %1651 = vrot.lane.b32.xlu0 %v3774_v29, %s3563_s22 }
 0x9cb   : > { %1653 = vrot.lane.b32.xlu1 %v3782_v33, %s3563_s22 }
 0xa3f   : > { %v1639_v9 = vpop.xlane.xlu0 %1638 }
 0xa40   : > { %3489 = vrcp.f32 %v1639_v9  ;;  %v3370_v9 = vld [vmem:[%s4466_s10 + $0x28] ss:$16 sps:$4 sm:$0xff]  }
 0xa43   : > { %v1642_v10 = vpop.xlane.xlu1 %1641  ;;  %v1652_v11 = vpop.permute.xlu0 %1651 }
 0xa44   : > { %3279 = vmatprep.subr.bf16.mxu1 %v1652_v11 }
 0xa47   : > { %v1636_v12 = vpop.xlane.xlu1 %1635 }
 0xa48   : > { %3491 = vrcp.f32 %v1636_v12 }
 0xa49   : > { %3493 = vrcp.f32 %v1642_v10 }
 0xa4a   : > { %v3490_v13 = vpop.eup %3489 }
 0xa4b   : > { %v1647_v15 = vmul.f32 %v3490_v13, %v3484_v62  ;;  %v1654_v19 = vpop.permute.xlu1 %1653  ;;  %v3361_v62 = vld [vmem:[%s4466_s10] ss:$16 sps:$4 sm:$0xff]  }
 0xa4c   : > { %v1663_v21 = vsel %vm953_vm1, %v1654_v19, 0  ;;  %2067 = vmatpush1.bf16.msra.mxu0 %v3361_v62 }
 0xa51   : > { %v3261_v27 = vpop.f32.mrb[16].mxu1 }
 0xa52   : > { %v3492_v38 = vpop.eup %3491  ;;  %v1463_v14 = vpop.f32.mrb[17].mxu1  ;;  %v1478_v18 = vpack.c.bf16 %v3261_v27, %v3261_v27 }
 0xa53   : > { %v3262_v28 = vpop.f32.mrb[18].mxu1  ;;  %v1646_v43 = vmul.f32 %v3492_v38, %v3488_v4  ;;  %v3494_v33 = vpop.eup %3493  ;;  %v3369_v4 = vld [vmem:[%s4466_s10 + $0x24] ss:$16 sps:$4 sm:$0xff]  }
 0xa54   : > { %v1466_v16 = vpop.f32.mrb[19].mxu1  ;;  %v1648_v20 = vmul.f32 %v3494_v33, %v3486_v0  ;;  %v3364_v0 = vld [vmem:[%s4466_s10 + $0x8] ss:$16 sps:$4 sm:$0xff]   ;;  %2068 = vmatprep.subr.bf16.mxu0 %v3369_v4  ;;  %v3373_v33 = vld [vmem:[%s4466_s10 + $0x40] ss:$16 sps:$4 sm:$0xff]  }
 0xa55   : > { %v1477_v29 = vpack.c.bf16 %v1466_v16, %v1463_v14  ;;  %v1649_v17 = vpack.c.bf16 %v1647_v15, %v1646_v43  ;;  %2069 = vmatpush1.bf16.msra.mxu0 %v3367_v8 }
 0xa56   : > { %v1650_v22 = vpack.c.bf16 %v1648_v20, %v1648_v20  ;;  %v3381_v20 = vld [vmem:[%s4466_s10 + $0x64] ss:$16 sps:$4 sm:$0xff]  }
 0xa57   : > { %3267 = vmatprep.mubr.msk.bf16.mxu1 %vm850_vm0, %v1477_v29 }
 0xa58   : > { %3268 = vmatmul.mubr.msk.bf16.vlgmr.msra.gmra.mrb[20].mxu1 %vm850_vm0, %v1478_v18  ;;  %v3378_v18 = vld [vmem:[%s4466_s10 + $0x4c] ss:$16 sps:$4 sm:$0xff]  }
 0xa59   : > { %3280 = vmatpush3.bf16.msra.mxu1 %v1652_v11  ;;  %3283 = vmatprep.mubr.msk.bf16.mxu1 %vm911_vm2, %v1649_v17  ;;  %v3375_v17 = vld [vmem:[%s4466_s10 + $0x44] ss:$16 sps:$4 sm:$0xff]  }
 0xa5a   : > { %3306 = vmatprep.subr.msk.bf16.mxu1 %vm953_vm1, %v1654_v19  ;;  %v3376_v19 = vld [vmem:[%s4466_s10 + $0x48] ss:$16 sps:$4 sm:$0xff]   ;;  %2070 = vmatprep.subr.bf16.mxu0 %v3375_v17  ;;  %v3417_v17 = vld [vmem:[%s4468_s12 + $0x50] sm:$0xff]  }
 0xa5b   : > { %2071 = vmatpush1.bf16.msra.mxu0 %v3373_v33  ;;  %v3419_v33 = vld [vmem:[%s4468_s12 + $0x10] sm:$0xff]  }
 0xa5c   : > { %2072 = vmatprep.subr.bf16.mxu0 %v3381_v20  ;;  %v3421_v20 = vld [vmem:[%s4468_s12 + $0x58] sm:$0xff]  }
 0xa5d   : > { %3282 = vmatpush3.bf16.msra.mxu1 %v1663_v21  ;;  %v3384_v21 = vld [vmem:[%s4466_s10 + $0x6c] ss:$16 sps:$4 sm:$0xff]  }
 0xa5e   : > { %3287 = vmatprep.subr.bf16.mxu1 %v3359_v23 }
 0xa60   : > { %3284 = vmatmul.mubr.msk.bf16.vlgmr.msra.gmra.mrb[24].mxu1 %vm911_vm2, %v1650_v22  ;;  %v3379_v22 = vld [vmem:[%s4466_s10 + $0x60] ss:$16 sps:$4 sm:$0xff]  }
 0xa61   : > { %3288 = vmatpush3.bf16.msra.mxu1 %v3359_v23  ;;  %v3382_v23 = vld [vmem:[%s4466_s10 + $0x68] ss:$16 sps:$4 sm:$0xff]   ;;  %2073 = vmatpush1.bf16.msra.mxu0 %v3379_v22 }
 0xa62   : > { %3289 = vmatprep.subr.bf16.mxu1 %v3360_v24  ;;  %v3423_v22 = vld [vmem:[%s4468_s12 + $0x18] sm:$0xff]  }
 0xa65   : > { %3290 = vmatpush3.bf16.msra.mxu1 %v3360_v24  ;;  %v3387_v24 = vld [vmem:[%s4466_s10 + $0x84] ss:$16 sps:$4 sm:$0xff]  }
 0xa66   : > { %2117 = vmatprep.subr.bf16.mxu1 %v3366_v1  ;;  %2074 = vmatprep.subr.bf16.mxu0 %v3387_v24  ;;  %v2997_v1 = vld [vmem:[%s4465_s9] ss:$0 sm:$0xff] }
 0xa67   : > { %v3425_v24 = vld [vmem:[%s4468_s12 + $0x60] sm:$0xff]  }
 0xb2b   : > { %v3269_v25 = vpop.f32.mrb[20].mxu1 }
 0xb2c   : > { %v1547_v26 = vadd.f32 %v3269_v25, %v3900_v51  ;;  %v1531_v30 = vpop.f32.mrb[21].mxu1  ;;  %v3390_v25 = vld [vmem:[%s4466_s10 + $0x8c] ss:$16 sps:$4 sm:$0xff]  }
 0xb2d   : > { %v1545_v31 = vadd.f32 %v1531_v30, %v3903_v53  ;;  %v3270_v32 = vpop.f32.mrb[22].mxu1  ;;  %v3388_v30 = vld [vmem:[%s4466_s10 + $0x88] ss:$16 sps:$4 sm:$0xff]  }
 0xb2e   : > { %v1534_v34 = vpop.f32.mrb[23].mxu1  ;;  %v3396_v32 = vld [vmem:[%s4466_s10 + $0xac] ss:$16 sps:$4 sm:$0xff]  }
 0xb2f   : > { %v1546_v36 = vadd.f32 %v1534_v34, %v3906_v56  ;;  %v3391_v34 = vld [vmem:[%s4466_s10 + $0xa0] ss:$16 sps:$4 sm:$0xff]  }
 0xb33   : > { %v3285_v37 = vpop.f32.mrb[24].mxu1 }
 0xb34   : > { %v1699_v44 = vpop.f32.mrb[25].mxu1  ;;  %v1714_v42 = vpack.c.bf16 %v3285_v37, %v3285_v37  ;;  %v3399_v37 = vld [vmem:[%s4466_s10 + $0xc4] ss:$16 sps:$4 sm:$0xff]  }
 0xb35   : > { %v3286_v39 = vpop.f32.mrb[26].mxu1 }
 0xb36   : > { %v1702_v40 = vpop.f32.mrb[27].mxu1  ;;  %v3397_v39 = vld [vmem:[%s4466_s10 + $0xc0] ss:$16 sps:$4 sm:$0xff]  }
 0xb37   : > { %v1713_v41 = vpack.c.bf16 %v1702_v40, %v1699_v44  ;;  %v3402_v44 = vld [vmem:[%s4466_s10 + $0xcc] ss:$16 sps:$4 sm:$0xff]   ;;  %v3400_v40 = vld [vmem:[%s4466_s10 + $0xc8] ss:$16 sps:$4 sm:$0xff]  }
 0xb39   : > { %3291 = vmatprep.mubr.msk.bf16.mxu1 %vm850_vm0, %v1713_v41  ;;  %v3405_v41 = vld [vmem:[%s4466_s10 + $0xe4] ss:$16 sps:$4 sm:$0xff]  }
 0xb3a   : > { %3292 = vmatmul.mubr.msk.bf16.vlgmr.msra.gmra.mrb[28].mxu1 %vm850_vm0, %v1714_v42  ;;  %v3408_v42 = vld [vmem:[%s4466_s10 + $0xec] ss:$16 sps:$4 sm:$0xff]  }
 0xb3b   : > { %2149 = vmatprep.mubr.bf16.mxu1 %v3560_v35  ;;  %2118 = vmatpush1.bf16.msra.mxu1 %v3364_v0 }
 0xb3c   : > { %2119 = vmatprep.subr.bf16.mxu1 %v3372_v6 }
 0xb3f   : > { %2120 = vmatpush1.bf16.msra.mxu1 %v3370_v9 }
 0xb40   : > { %2121 = vmatprep.subr.bf16.mxu1 %v3378_v18  ;;  %v3418_v18 = vld [vmem:[%s4468_s12 + $0xd0] sm:$0xff]  }
 0xb43   : > { %2122 = vmatpush1.bf16.msra.mxu1 %v3376_v19  ;;  %v3420_v19 = vld [vmem:[%s4468_s12 + $0x90] sm:$0xff]  }
 0xb44   : > { %2123 = vmatprep.subr.bf16.mxu1 %v3384_v21  ;;  %v3422_v21 = vld [vmem:[%s4468_s12 + $0xd8] sm:$0xff]  }
 0xb47   : > { %2124 = vmatpush1.bf16.msra.mxu1 %v3382_v23  ;;  %v3424_v23 = vld [vmem:[%s4468_s12 + $0x98] sm:$0xff]  }
 0xb48   : > { %2125 = vmatprep.subr.bf16.mxu1 %v3390_v25  ;;  %v3426_v25 = vld [vmem:[%s4468_s12 + $0xe0] sm:$0xff]  }
 0xb4b   : > { %2126 = vmatpush1.bf16.msra.mxu1 %v3388_v30  ;;  %v3428_v30 = vld [vmem:[%s4468_s12 + $0xa0] sm:$0xff]  }
 0xb4c   : > { %2127 = vmatprep.subr.bf16.mxu1 %v3396_v32  ;;  %v3430_v32 = vld [vmem:[%s4468_s12 + $0xe8] sm:$0xff]  }
 0xc0d   : > { %v3293_v51 = vpop.f32.mrb[28].mxu1 }
 0xc0e   : > { %v1783_v53 = vadd.f32 %v3293_v51, %v1547_v26  ;;  %v1767_v45 = vpop.f32.mrb[29].mxu1  ;;  %v3385_v26 = vld [vmem:[%s4466_s10 + $0x80] ss:$16 sps:$4 sm:$0xff]  }
 0xc0f   : > { %v1781_v46 = vadd.f32 %v1767_v45, %v1545_v31  ;;  %v3294_v56 = vpop.f32.mrb[30].mxu1  ;;  %2075 = vmatpush1.bf16.msra.mxu0 %v3385_v26  ;;  %v3393_v31 = vld [vmem:[%s4466_s10 + $0xa4] ss:$16 sps:$4 sm:$0xff]   ;;  %v3403_v51 = vld [vmem:[%s4466_s10 + $0xe0] ss:$16 sps:$4 sm:$0xff]  }
 0xc10   : > { %v1770_v47 = vpop.f32.mrb[31].mxu1  ;;  %v1786_v59 = vadd.f32 %v3551_v58, %v1783_v53  ;;  %2076 = vmatprep.subr.bf16.mxu0 %v3393_v31  ;;  %v3406_v53 = vld [vmem:[%s4466_s10 + $0xe8] ss:$16 sps:$4 sm:$0xff]   ;;  %v2996_v58 = vld [vmem:[%s4464_s8] ss:$0 sm:$0xff] }
 0xc11   : > { %v1784_v50 = vadd.f32 %v3549_v49, %v1781_v46  ;;  %v1782_v52 = vadd.f32 %v1770_v47, %v1546_v36  ;;  %v3394_v36 = vld [vmem:[%s4466_s10 + $0xa8] ss:$16 sps:$4 sm:$0xff]   ;;  %v3427_v26 = vld [vmem:[%s4468_s12 + $0x20] sm:$0xff]  }
 0xc12   : > { %v3974_v61 = vadd.f32 %v2995_v48, %v1786_v59  ;;  %2128 = vmatpush1.bf16.msra.mxu1 %v3394_v36  ;;  %v3429_v31 = vld [vmem:[%s4468_s12 + $0x68] sm:$0xff]  }
 0xc13   : > { %v1785_v55 = vadd.f32 %v3550_v54, %v1782_v52  ;;  %v3967_v57 = vadd.f32 %v2995_v48, %v1784_v50  ;;  %2077 = vmatpush1.bf16.msra.mxu0 %v3391_v34  ;;  %2129 = vmatprep.subr.bf16.mxu1 %v3402_v44  ;;  %v3431_v34 = vld [vmem:[%s4468_s12 + $0x28] sm:$0xff]   ;;  %v3434_v44 = vld [vmem:[%s4468_s12 + $0xf0] sm:$0xff]  }
 0xc14   : > { %2078 = vmatprep.subr.bf16.mxu0 %v3399_v37  ;;  %v3432_v36 = vld [vmem:[%s4468_s12 + $0xa8] sm:$0xff]   ;;  %v3433_v37 = vld [vmem:[%s4468_s12 + $0x70] sm:$0xff]  }
 0xc15   : > { %1799 = vadd.xlane.f32.xlu1 %v3967_v57  ;;  %v3971_v60 = vadd.f32 %v2995_v48, %v1785_v55 }
 0xc16   : > { %2130 = vmatpush1.bf16.msra.mxu1 %v3400_v40  ;;  %v3436_v40 = vld [vmem:[%s4468_s12 + $0xb0] sm:$0xff]  }
 0xc17   : > { %1801 = vadd.xlane.f32.xlu0 %v3971_v60  ;;  %2079 = vmatpush1.bf16.msra.mxu0 %v3397_v39  ;;  %v3435_v39 = vld [vmem:[%s4468_s12 + $0x30] sm:$0xff]  }
 0xc18   : > { %2080 = vmatprep.subr.bf16.mxu0 %v3405_v41  ;;  %2131 = vmatprep.subr.bf16.mxu1 %v3408_v42  ;;  %v3437_v41 = vld [vmem:[%s4468_s12 + $0x78] sm:$0xff]  }
 0xc19   : > { %v3438_v42 = vld [vmem:[%s4468_s12 + $0xf8] sm:$0xff]  }
 0xc1a   : > { %2132 = vmatpush1.bf16.msra.mxu1 %v3406_v53  ;;  %v3440_v53 = vld [vmem:[%s4468_s12 + $0xb8] sm:$0xff]  }
 0xc1b   : > { %1803 = vadd.xlane.f32.xlu0 %v3974_v61  ;;  %2081 = vmatpush1.bf16.msra.mxu0 %v3403_v51  ;;  %v3439_v51 = vld [vmem:[%s4468_s12 + $0x38] sm:$0xff]  }
 0xca2   : > { %v1800_v10 = vpop.xlane.xlu1 %1799 }
 0xca3   : > { %v1805_v11 = vmul.f32 0.0078125, %v1800_v10 }
 0xca4   : > { %v1802_v12 = vpop.xlane.xlu0 %1801 }
 0xca5   : > { %v4002_v13 = vsub.f32 %v3967_v57, %v1805_v11  ;;  %v1806_v27 = vmul.f32 0.0078125, %v1802_v12 }
 0xca7   : > { %v4005_v38 = vsub.f32 %v3971_v60, %v1806_v27  ;;  %v1811_v14 = vmul.f32 %v4002_v13, %v4002_v13 }
 0xca8   : > { %v1804_v28 = vpop.xlane.xlu0 %1803 }
 0xca9   : > { %v1807_v43 = vmul.f32 0.0078125, %v1804_v28  ;;  %1814 = vadd.xlane.f32.xlu1 %v1811_v14  ;;  %v1812_v15 = vmul.f32 %v4005_v38, %v4005_v38  ;;  %v3410_v14 = vld [vmem:[%s4468_s12 + $0xc0] sm:$0xff]  }
 0xcaa   : > { %v3411_v28 = vld [vmem:[%s4468_s12] sm:$0xff]   ;;  %3151 = vmatprep.subr.bf16.mxu1 %v3410_v14 }
 0xcab   : > { %v4012_v16 = vsub.f32 %v3974_v61, %v1807_v43  ;;  %1816 = vadd.xlane.f32.xlu0 %v1812_v15  ;;  %v3413_v43 = vld [vmem:[%s4468_s12 + $0x48] sm:$0xff]  }
 0xcac   : > { %v3414_v15 = vld [vmem:[%s4468_s12 + $0xc8] sm:$0xff]  }
 0xcad   : > { %v1813_v29 = vmul.f32 %v4012_v16, %v4012_v16 }
 0xcaf   : > { %1818 = vadd.xlane.f32.xlu1 %v1813_v29  ;;  %v3416_v29 = vld [vmem:[%s4468_s12 + $0x88] sm:$0xff]  }
 0xd36   : > { %v1815_v45 = vpop.xlane.xlu1 %1814 }
 0xd37   : > { %v1820_v46 = vmul.f32 0.0078125, %v1815_v45  ;;  %v1884_v45 = vld [vmem:[%s4467_s11] sm:$0xf] }
 0xd38   : > { %v1817_v56 = vpop.xlane.xlu0 %1816 }
 0xd39   : > { %v1823_v47 = vadd.f32 1e-05, %v1820_v46  ;;  %v1821_v48 = vmul.f32 0.0078125, %v1817_v56  ;;  %v1900_v46 = vsub.s32 3, %v3756_v2  ;;  %v4201_v56 = vrot.slane %v1884_v45, %v579_v3 }
 0xd3b   : > { %3495 = vrsqrt.f32 %v1823_v47  ;;  %v1824_v49 = vadd.f32 1e-05, %v1821_v48  ;;  %v4205_v47 = vrot.slane %v1884_v45, %v587_v7  ;;  %v4209_v48 = vrot.slane %v1884_v45, %v583_v5 }
 0xd3c   : > { %v1819_v50 = vpop.xlane.xlu1 %1818 }
 0xd3d   : > { %3497 = vrsqrt.f32 %v1824_v49  ;;  %v1822_v52 = vmul.f32 0.0078125, %v1819_v50  ;;  %v4211_v49 = vrot.slane %v1884_v45, %v1900_v46 }
 0xd3f   : > { %v1825_v54 = vadd.f32 1e-05, %v1822_v52 }
 0xd41   : > { %3499 = vrsqrt.f32 %v1825_v54 }
 0xd45   : > { %v3496_v55 = vpop.eup %3495 }
 0xd46   : > { %v1829_v59 = vmul.f32 %v3496_v55, %v4002_v13 }
 0xd47   : > { %v3498_v62 = vpop.eup %3497 }
 0xd48   : > { %v1830_v63 = vmul.f32 %v3498_v62, %v4005_v38  ;;  %v1838_v0 = vmul.f32 %v2996_v58, %v1829_v59  ;;  %v3409_v38 = vld [vmem:[%s4468_s12 + $0x40] sm:$0xff]  }
 0xd49   : > { %3123 = vmatprep.subr.bf16.mxu0 %v3409_v38 }
 0xd4a   : > { %v1839_v4 = vmul.f32 %v2996_v58, %v1830_v63  ;;  %v1847_v8 = vadd.f32 %v2997_v1, %v1838_v0 }
 0xd4b   : > { %v3500_v6 = vpop.eup %3499 }
 0xd4c   : > { %v1848_v9 = vadd.f32 %v2997_v1, %v1839_v4  ;;  %v1831_v10 = vmul.f32 %v3500_v6, %v4012_v16  ;;  %v3415_v16 = vld [vmem:[%s4468_s12 + $0x8] sm:$0xff]  }
 0xd4e   : > { %v1850_v11 = vpack.c.bf16 %v1848_v9, %v1847_v8  ;;  %v1840_v12 = vmul.f32 %v2996_v58, %v1831_v10 }
 0xd50   : > { %2099 = vmatmul.mubr.bf16.vlgmr.msra.gmra.mrb[28].mxu0 %v1850_v11  ;;  %2150 = vmatmul.mubr.bf16.vlgmr.msra.gmra.mrb[32].mxu1 %v1850_v11  ;;  %v1849_v13 = vadd.f32 %v2997_v1, %v1840_v12 }
 0xd51   : > { %2108 = vmatprep.mubr.bf16.mxu0 %v3560_v35  ;;  %2159 = vmatprep.mubr.bf16.mxu1 %v3560_v35  ;;  %v3412_v35 = vld [vmem:[%s4468_s12 + $0x80] sm:$0xff]  }
 0xd52   : > { %v1851_v27 = vpack.c.bf16 %v1849_v13, %v1849_v13  ;;  %3124 = vmatpush3.bf16.msra.mxu0 %v3411_v28  ;;  %3152 = vmatpush3.bf16.msra.mxu1 %v3412_v35 }
 0xd53   : > { %3125 = vmatprep.subr.bf16.mxu0 %v3413_v43  ;;  %3153 = vmatprep.subr.bf16.mxu1 %v3414_v15 }
 0xd56   : > { %3126 = vmatpush3.bf16.msra.mxu0 %v3415_v16  ;;  %3154 = vmatpush3.bf16.msra.mxu1 %v3416_v29 }
 0xd57   : > { %3127 = vmatprep.subr.bf16.mxu0 %v3417_v17  ;;  %3155 = vmatprep.subr.bf16.mxu1 %v3418_v18 }
 0xd58   : > { %2109 = vmatmul.mubr.bf16.gmra.mrb[32].mxu0 %v1851_v27  ;;  %2160 = vmatmul.mubr.bf16.gmra.mrb[36].mxu1 %v1851_v27 }
 0xd5a   : > { %3128 = vmatpush3.bf16.msra.mxu0 %v3419_v33  ;;  %3156 = vmatpush3.bf16.msra.mxu1 %v3420_v19 }
 0xd5b   : > { %3129 = vmatprep.subr.bf16.mxu0 %v3421_v20  ;;  %3157 = vmatprep.subr.bf16.mxu1 %v3422_v21 }
 0xd5e   : > { %3130 = vmatpush3.bf16.msra.mxu0 %v3423_v22  ;;  %3158 = vmatpush3.bf16.msra.mxu1 %v3424_v23 }
 0xd5f   : > { %3131 = vmatprep.subr.bf16.mxu0 %v3425_v24  ;;  %3159 = vmatprep.subr.bf16.mxu1 %v3426_v25 }
 0xd62   : > { %3132 = vmatpush3.bf16.msra.mxu0 %v3427_v26  ;;  %3160 = vmatpush3.bf16.msra.mxu1 %v3428_v30 }
 0xd63   : > { %3133 = vmatprep.subr.bf16.mxu0 %v3429_v31  ;;  %3161 = vmatprep.subr.bf16.mxu1 %v3430_v32 }
 0xd66   : > { %3134 = vmatpush3.bf16.msra.mxu0 %v3431_v34  ;;  %3162 = vmatpush3.bf16.msra.mxu1 %v3432_v36 }
 0xd67   : > { %3135 = vmatprep.subr.bf16.mxu0 %v3433_v37  ;;  %3163 = vmatprep.subr.bf16.mxu1 %v3434_v44 }
 0xd6a   : > { %3136 = vmatpush3.bf16.msra.mxu0 %v3435_v39  ;;  %3164 = vmatpush3.bf16.msra.mxu1 %v3436_v40 }
 0xd6b   : > { %3137 = vmatprep.subr.bf16.mxu0 %v3437_v41  ;;  %3165 = vmatprep.subr.bf16.mxu1 %v3438_v42  ;;  %v3564_v42 = vmov -1.0  }
 0xd6e   : > { %3138 = vmatpush3.bf16.msra.mxu0 %v3439_v51  ;;  %3166 = vmatpush3.bf16.msra.mxu1 %v3440_v53 }
 0xe23   : > { %v2100_v50 = vpop.f32.mrb[28].mxu0  ;;  %v2151_v52 = vpop.f32.mrb[32].mxu1 }
 0xe24   : > { %v2101_v54 = vadd.f32 %v2100_v50, %v4201_v56  ;;  %v2152_v55 = vadd.f32 %v2151_v52, %v4205_v47  ;;  %v2102_v58 = vpop.f32.mrb[29].mxu0  ;;  %v2153_v59 = vpop.f32.mrb[33].mxu1 }
 0xe25   : > { %v2103_v3 = vadd.f32 %v2102_v58, %v4209_v48  ;;  %v4217_v62 = vadd.f32 %v2153_v59, %v4211_v49  ;;  %v2104_v7 = vpop.f32.mrb[30].mxu0  ;;  %v2155_v63 = vpop.f32.mrb[34].mxu1 }
 0xe26   : > { %v2168_v2 = vmul.f32 0.70710677, %v2101_v54  ;;  %v2170_v5 = vmul.f32 0.70710677, %v2152_v55  ;;  %v2106_v9 = vpop.f32.mrb[31].mxu0  ;;  %v2157_v13 = vpop.f32.mrb[35].mxu1  ;;  %v2105_v17 = vadd.f32 %v2104_v7, %v4201_v56  ;;  %v4235_v23 = vadd.f32 %v2155_v63, %v4205_v47 }
 0xe27   : > { %v2169_v0 = vmul.f32 0.70710677, %v2103_v3  ;;  %v4220_v8 = vmul.f32 0.70710677, %v4217_v62  ;;  %v4238_v30 = vadd.f32 %v2106_v9, %v4209_v48  ;;  %v4244_v36 = vmul.f32 0.5, %v2101_v54 }
 0xe28   : > { %v2204_v1 = vand.u32 2147483647, %v2168_v2  ;;  %v2206_v4 = vand.u32 2147483647, %v2170_v5  ;;  %vm2180_vm3 = vcmp.ge.f32.partialorder %v2168_v2, 0.0  ;;  %vm2182_vm4 = vcmp.ge.f32.partialorder %v2170_v5, 0.0 }
 0xe29   : > { %v2205_v6 = vand.u32 2147483647, %v2169_v0  ;;  %v2207_v35 = vand.u32 2147483647, %v4220_v8  ;;  %v4232_v22 = vmul.f32 0.70710677, %v2105_v17 }
 0xe2a   : > { %v2216_v10 = vmul.f32 0.3275911, %v2204_v1  ;;  %v2218_v11 = vmul.f32 0.3275911, %v2206_v4  ;;  %v2372_v16 = vsub.f32 0.0, %v2204_v1  ;;  %v2374_v21 = vsub.f32 0.0, %v2206_v4 }
 0xe2b   : > { %v2217_v12 = vmul.f32 0.3275911, %v2205_v6  ;;  %v4222_v14 = vpop.f32.mrb[32].mxu0  ;;  %v4224_v28 = vpop.f32.mrb[36].mxu1  ;;  %v2219_v19 = vmul.f32 0.3275911, %v2207_v35 }
 0xe2c   : > { %v2228_v27 = vadd.f32 1.0, %v2216_v10  ;;  %v2230_v38 = vadd.f32 1.0, %v2218_v11  ;;  %v4227_v43 = vpop.f32.mrb[33].mxu0  ;;  %v4229_v15 = vpop.f32.mrb[37].mxu1  ;;  %v2373_v25 = vsub.f32 0.0, %v2205_v6  ;;  %v2384_v31 = vmul.f32 %v2372_v16, %v2204_v1 }
 0xe2d   : > { %v2229_v29 = vadd.f32 1.0, %v2217_v12  ;;  %v2114_v18 = vpop.f32.mrb[34].mxu0  ;;  %v2165_v33 = vpop.f32.mrb[38].mxu1  ;;  %v2231_v26 = vadd.f32 1.0, %v2219_v19  ;;  %v2208_v32 = vand.u32 2147483647, %v4232_v22  ;;  %v2386_v39 = vmul.f32 %v2374_v21, %v2206_v4 }
 0xe2e   : > { %3501 = vrcp.f32 %v2228_v27  ;;  %v2115_v20 = vpop.f32.mrb[35].mxu0  ;;  %v2166_v24 = vpop.f32.mrb[39].mxu1  ;;  %v4242_v34 = vmul.f32 0.70710677, %v4235_v23  ;;  %v4246_v37 = vmul.f32 0.5, %v2152_v55  ;;  %vm2181_vm5 = vcmp.ge.f32.partialorder %v2169_v0, 0.0 }
 0xe2f   : > { %3503 = vrcp.f32 %v2230_v38  ;;  %v4248_v44 = vmul.f32 0.5, %v2103_v3  ;;  %v2375_v40 = vsub.f32 0.0, %v2207_v35  ;;  %v2220_v41 = vmul.f32 0.3275911, %v2208_v32 }
 0xe30   : > { %3505 = vrcp.f32 %v2229_v29  ;;  %v4252_v51 = vsel %vm2180_vm3, 1.0, %v3564_v42  ;;  %v4256_v53 = vsel %vm2182_vm4, 1.0, %v3564_v42  ;;  %v2210_v45 = vand.u32 2147483647, %v4242_v34 }
 0xe31   : > { %3507 = vrcp.f32 %v2231_v26  ;;  %v4260_v46 = vmul.f32 0.70710677, %v4238_v30  ;;  %v2396_v50 = vmul.f32 1.442695, %v2384_v31  ;;  %v2385_v52 = vmul.f32 %v2373_v25, %v2205_v6 }
 0xe32   : > { %v2232_v54 = vadd.f32 1.0, %v2220_v41  ;;  %v4263_v55 = vadd.f32 %v2157_v13, %v4211_v49  ;;  %v4266_v58 = vsel %vm2181_vm5, 1.0, %v3564_v42  ;;  %vm2183_vm6 = vcmp.ge.f32.partialorder %v4220_v8, 0.0 }
 0xe33   : > { %v2222_v59 = vmul.f32 0.3275911, %v2210_v45  ;;  %v4270_v3 = vand.u32 2147483647, %v4260_v46  ;;  %v2400_v63 = vmul.f32 1.442695, %v2386_v39  ;;  %v2387_v2 = vmul.f32 %v2375_v40, %v2207_v35 }
 0xe34   : > { %3509 = vrcp.f32 %v2232_v54  ;;  %v4275_v5 = vmul.f32 0.70710677, %v4263_v55  ;;  %v2376_v4 = vsub.f32 0.0, %v2208_v32  ;;  %v2398_v11 = vmul.f32 1.442695, %v2385_v52 }
 0xe35   : > { %v2234_v6 = vadd.f32 1.0, %v2222_v59  ;;  %v2221_v9 = vmul.f32 0.3275911, %v4270_v3  ;;  %3511 = vpow2.f32 %v2396_v50  ;;  %v4285_v12 = vsel %vm2183_vm6, 1.0, %v3564_v42 }
 0xe36   : > { %v4287_v27 = vmul.f32 0.5, %v2105_v17  ;;  %vm2184_vm7 = vcmp.ge.f32.partialorder %v4232_v22, 0.0  ;;  %v4293_v29 = vand.u32 2147483647, %v4275_v5  ;;  %v2402_v33 = vmul.f32 1.442695, %v2387_v2 }
 0xe37   : > { %3513 = vrcp.f32 %v2234_v6  ;;  %v2233_v38 = vadd.f32 1.0, %v2221_v9  ;;  %v2388_v19 = vmul.f32 %v2376_v4, %v2208_v32  ;;  %v2378_v21 = vsub.f32 0.0, %v2210_v45 }
 0xe38   : > { %v4272_v7 = vpop.eup %3501  ;;  %3515 = vpow2.f32 %v2400_v63  ;;  %v2223_v24 = vmul.f32 0.3275911, %v4293_v29  ;;  %v4305_v40 = vsel %vm2184_vm7, 1.0, %v3564_v42  ;;  %v4309_v41 = vadd.f32 %v4222_v14, %v4201_v56 }
 0xe39   : > { %v4277_v0 = vpop.eup %3503  ;;  %v2264_v1 = vmul.f32 1.0614054, %v4272_v7  ;;  %3517 = vrcp.f32 %v2233_v38  ;;  %v4314_v59 = vmul.f32 0.5, %v4235_v23  ;;  %v2404_v22 = vmul.f32 1.442695, %v2388_v19 }
 0xe3a   : > { %v2266_v10 = vmul.f32 1.0614054, %v4277_v0  ;;  %v4289_v35 = vpop.eup %3505  ;;  %3519 = vpow2.f32 %v2398_v11  ;;  %v2235_v32 = vadd.f32 1.0, %v2223_v24  ;;  %v2377_v11 = vsub.f32 0.0, %v4270_v3 }
 0xe3b   : > { %v2276_v13 = vadd.f32 -1.4531521, %v2264_v1  ;;  %v2265_v8 = vmul.f32 1.0614054, %v4289_v35  ;;  %v4297_v20 = vpop.eup %3507  ;;  %v2390_v1 = vmul.f32 %v2378_v21, %v2210_v45  ;;  %v4323_v23 = vmul.f32 0.70710677, %v4309_v41 }
 0xe3c   : > { %v2278_v16 = vadd.f32 -1.4531521, %v2266_v10  ;;  %v2267_v31 = vmul.f32 1.0614054, %v4297_v20  ;;  %3521 = vrcp.f32 %v2235_v32  ;;  %vm2186_vm8 = vcmp.ge.f32.partialorder %v4242_v34, 0.0 }
 0xe3d   : > { %v2288_v18 = vmul.f32 %v4272_v7, %v2276_v13  ;;  %v2277_v26 = vadd.f32 -1.4531521, %v2265_v8  ;;  %3523 = vpow2.f32 %v2402_v33  ;;  %v2408_v21 = vmul.f32 1.442695, %v2390_v1 }
 0xe3e   : > { %v2290_v17 = vmul.f32 %v4277_v0, %v2278_v16  ;;  %v2279_v54 = vadd.f32 -1.4531521, %v2267_v31  ;;  %v4316_v63 = vpop.eup %3509  ;;  %v2379_v33 = vsub.f32 0.0, %v4293_v29  ;;  %3525 = vpow2.f32 %v2404_v22 }
 0xe3f   : > { %v2300_v25 = vadd.f32 1.4214138, %v2288_v18  ;;  %v2289_v52 = vmul.f32 %v4289_v35, %v2277_v26  ;;  %v2268_v14 = vmul.f32 1.0614054, %v4316_v63  ;;  %v3512_v9 = vpop.eup %3511  ;;  %3527 = vpow2.f32 %v2408_v21 }
 0xe40   : > { %v2302_v39 = vadd.f32 1.4214138, %v2290_v17  ;;  %v2291_v56 = vmul.f32 %v4297_v20, %v2279_v54  ;;  %v4338_v54 = vand.u32 2147483647, %v4323_v23  ;;  %vm2185_vm9 = vcmp.ge.f32.partialorder %v4260_v46, 0.0 }
 0xe41   : > { %v2312_v50 = vmul.f32 %v4272_v7, %v2300_v25  ;;  %v2301_v6 = vadd.f32 1.4214138, %v2289_v52  ;;  %v4325_v13 = vpop.eup %3513  ;;  %v2280_v18 = vadd.f32 -1.4531521, %v2268_v14  ;;  %v2389_v52 = vmul.f32 %v2377_v11, %v4270_v3 }
 0xe42   : > { %v2314_v2 = vmul.f32 %v4277_v0, %v2302_v39  ;;  %v2303_v16 = vadd.f32 1.4214138, %v2291_v56  ;;  %v3516_v8 = vpop.eup %3515  ;;  %v2270_v17 = vmul.f32 1.0614054, %v4325_v13  ;;  %vm2187_vm10 = vcmp.ge.f32.partialorder %v4275_v5, 0.0 }
 0xe43   : > { %v2324_v4 = vadd.f32 -0.28449672, %v2312_v50  ;;  %v2313_v45 = vmul.f32 %v4289_v35, %v2301_v6  ;;  %v2292_v31 = vmul.f32 %v4316_v63, %v2280_v18  ;;  %v4334_v39 = vpop.eup %3517  ;;  %vm2188_vm11 = vcmp.ge.f32.partialorder %v4323_v23, 0.0 }
 0xe44   : > { %v2326_v10 = vadd.f32 -0.28449672, %v2314_v2  ;;  %v2315_v26 = vmul.f32 %v4297_v20, %v2303_v16  ;;  %v2282_v50 = vadd.f32 -1.4531521, %v2270_v17  ;;  %v3520_v2 = vpop.eup %3519  ;;  %v2391_v16 = vmul.f32 %v2379_v33, %v4293_v29 }
 0xe45   : > { %v2336_v38 = vmul.f32 %v4272_v7, %v2324_v4  ;;  %v2325_v25 = vadd.f32 -0.28449672, %v2313_v45  ;;  %v2304_v56 = vadd.f32 1.4214138, %v2292_v31  ;;  %v2406_v17 = vmul.f32 1.442695, %v2389_v52 }
 0xe46   : > { %v2338_v19 = vmul.f32 %v4277_v0, %v2326_v10  ;;  %v2327_v6 = vadd.f32 -0.28449672, %v2315_v26  ;;  %v2294_v10 = vmul.f32 %v4325_v13, %v2282_v50  ;;  %v4348_v18 = vpop.eup %3521  ;;  %v2410_v52 = vmul.f32 1.442695, %v2391_v16 }
 0xe47   : > { %v2348_v24 = vadd.f32 0.2548296, %v2336_v38  ;;  %v2337_v4 = vmul.f32 %v4289_v35, %v2325_v25  ;;  %v2269_v38 = vmul.f32 1.0614054, %v4334_v39  ;;  %v2316_v11 = vmul.f32 %v4316_v63, %v2304_v56  ;;  %v3524_v26 = vpop.eup %3523 }
 0xe48   : > { %v2350_v32 = vadd.f32 0.2548296, %v2338_v19  ;;  %v2339_v3 = vmul.f32 %v4297_v20, %v2327_v6  ;;  %v2224_v25 = vmul.f32 0.3275911, %v4338_v54  ;;  %v2271_v29 = vmul.f32 1.0614054, %v4348_v18 }
 0xe49   : > { %v2360_v1 = vmul.f32 %v4272_v7, %v2348_v24  ;;  %v2349_v45 = vadd.f32 0.2548296, %v2337_v4  ;;  %v2306_v7 = vadd.f32 1.4214138, %v2294_v10  ;;  %v2281_v19 = vadd.f32 -1.4531521, %v2269_v38 }
 0xe4a   : > { %v2362_v14 = vmul.f32 %v4277_v0, %v2350_v32  ;;  %v2328_v22 = vadd.f32 -0.28449672, %v2316_v11  ;;  %v2351_v50 = vadd.f32 0.2548296, %v2339_v3  ;;  %3529 = vpow2.f32 %v2406_v17 }
 0xe4b   : > { %v2420_v24 = vmul.f32 %v3512_v9, %v2360_v1  ;;  %v2318_v31 = vmul.f32 %v4325_v13, %v2306_v7  ;;  %v2293_v32 = vmul.f32 %v4334_v39, %v2281_v19  ;;  %v2361_v33 = vmul.f32 %v4289_v35, %v2349_v45  ;;  %v3526_v7 = vpop.eup %3525 }
 0xe4c   : > { %v2422_v0 = vmul.f32 %v3516_v8, %v2362_v14  ;;  %v2340_v21 = vmul.f32 %v4316_v63, %v2328_v22  ;;  %v2283_v1 = vadd.f32 -1.4531521, %v2271_v29  ;;  %v2236_v14 = vadd.f32 1.0, %v2224_v25 }
 0xe4d   : > { %v2330_v9 = vadd.f32 -0.28449672, %v2318_v31  ;;  %v2305_v8 = vadd.f32 1.4214138, %v2293_v32  ;;  %v2432_v4 = vsub.f32 1.0, %v2420_v24  ;;  %v2421_v45 = vmul.f32 %v3520_v2, %v2361_v33  ;;  %v3528_v2 = vpop.eup %3527 }
 0xe4e   : > { %v2434_v6 = vsub.f32 1.0, %v2422_v0  ;;  %v2352_v56 = vadd.f32 0.2548296, %v2340_v21  ;;  %v2295_v35 = vmul.f32 %v4348_v18, %v2283_v1  ;;  %v2363_v3 = vmul.f32 %v4297_v20, %v2351_v50 }
 0xe4f   : > { %v2342_v10 = vmul.f32 %v4325_v13, %v2330_v9  ;;  %v2317_v38 = vmul.f32 %v4334_v39, %v2305_v8  ;;  %v4365_v16 = vadd.f32 %v4224_v28, %v4205_v47  ;;  %3531 = vpow2.f32 %v2410_v52 }
 0xe50   : > { %v2364_v11 = vmul.f32 %v4316_v63, %v2352_v56  ;;  %v2307_v24 = vadd.f32 1.4214138, %v2295_v35  ;;  %v2444_v0 = vmul.f32 %v2432_v4, %v4252_v51  ;;  %v2446_v22 = vmul.f32 %v2434_v6, %v4256_v53 }
 0xe51   : > { %v2354_v19 = vadd.f32 0.2548296, %v2342_v10  ;;  %v2329_v17 = vadd.f32 -0.28449672, %v2317_v38  ;;  %3533 = vrcp.f32 %v2236_v14  ;;  %v2198_v20 = vsel %vm2186_vm8, 1.0, %v3564_v42 }
 0xe52   : > { %v2424_v25 = vmul.f32 %v3526_v7, %v2364_v11  ;;  %v2319_v28 = vmul.f32 %v4348_v18, %v2307_v24  ;;  %v2433_v31 = vsub.f32 1.0, %v2421_v45  ;;  %v2423_v32 = vmul.f32 %v3524_v26, %v2363_v3 }
 0xe53   : > { %v2366_v63 = vmul.f32 %v4325_v13, %v2354_v19  ;;  %v2341_v47 = vmul.f32 %v4334_v39, %v2329_v17  ;;  %v4376_v51 = vmul.f32 0.70710677, %v4365_v16  ;;  %v2197_v33 = vsel %vm2185_vm9, 1.0, %v3564_v42 }
 0xe54   : > { %v2436_v29 = vsub.f32 1.0, %v2424_v25  ;;  %v2331_v34 = vadd.f32 -0.28449672, %v2319_v28  ;;  %v2468_v21 = vadd.f32 1.0, %v2444_v0  ;;  %v2470_v52 = vadd.f32 1.0, %v2446_v22  ;;  %v3530_v8 = vpop.eup %3529 }
 0xe55   : > { %v2426_v53 = vmul.f32 %v3528_v2, %v2366_v63  ;;  %v2353_v50 = vadd.f32 0.2548296, %v2341_v47  ;;  %v4383_v9 = vand.u32 2147483647, %v4376_v51  ;;  %v4389_v6 = vadd.f32 %v4227_v43, %v4209_v48 }
 0xe56   : > { %v2448_v13 = vmul.f32 %v2436_v29, %v4305_v40  ;;  %v2343_v4 = vmul.f32 %v4348_v18, %v2331_v34  ;;  %v2445_v46 = vmul.f32 %v2433_v31, %v4266_v58  ;;  %v2435_v56 = vsub.f32 1.0, %v2423_v32 }
 0xe57   : > { %v2438_v26 = vsub.f32 1.0, %v2426_v53  ;;  %v2365_v1 = vmul.f32 %v4334_v39, %v2353_v50  ;;  %v2226_v10 = vmul.f32 0.3275911, %v4383_v9  ;;  %v2480_v45 = vmul.f32 %v2468_v21, %v4244_v36 }
 0xe58   : > { %v2472_v14 = vadd.f32 1.0, %v2448_v13  ;;  %v2355_v35 = vadd.f32 0.2548296, %v2343_v4  ;;  %v2482_v39 = vmul.f32 %v2470_v52, %v4246_v37  ;;  %v4399_v19 = vmul.f32 0.70710677, %v4389_v6 }
 0xe59   : > { %v2450_v40 = vmul.f32 %v2438_v26, %v2198_v20  ;;  %v2425_v38 = vmul.f32 %v3530_v8, %v2365_v1  ;;  %v2238_v11 = vadd.f32 1.0, %v2226_v10  ;;  %v3532_v48 = vpop.eup %3531  ;;  %v2469_v24 = vadd.f32 1.0, %v2445_v46 }
 0xe5a   : > { %v2484_v3 = vmul.f32 %v2472_v14, %v4287_v27  ;;  %v2367_v58 = vmul.f32 %v4348_v18, %v2355_v35  ;;  %v2447_v0 = vmul.f32 %v2435_v56, %v4285_v12  ;;  %v2461_v2 = vmul.f32 0.5, %v4238_v30 }
 0xe5b   : > { %v2474_v43 = vadd.f32 1.0, %v2450_v40  ;;  %v2437_v7 = vsub.f32 1.0, %v2425_v38  ;;  %v4401_v17 = vpop.eup %3533  ;;  %3535 = vrcp.f32 %v2238_v11  ;;  %v2199_v18 = vsel %vm2187_vm10, 1.0, %v3564_v42 }
 0xe5c   : > { %v2492_v22 = vpack.c.bf16 %v2484_v3, %v2480_v45  ;;  %v2427_v27 = vmul.f32 %v3532_v48, %v2367_v58  ;;  %v2272_v25 = vmul.f32 1.0614054, %v4401_v17  ;;  %v2213_v20 = vand.u32 2147483647, %v4399_v19 }
 0xe5d   : > { %v2486_v36 = vmul.f32 %v2474_v43, %v4314_v59  ;;  %v2449_v37 = vmul.f32 %v2437_v7, %v2197_v33  ;;  %v4413_v63 = vadd.f32 %v4229_v15, %v4211_v49  ;;  %v2481_v31 = vmul.f32 %v2469_v24, %v4248_v44 }
 0xe5e   : > { %v2439_v28 = vsub.f32 1.0, %v2427_v27  ;;  %v2284_v59 = vadd.f32 -1.4531521, %v2272_v25  ;;  %v2380_v32 = vsub.f32 0.0, %v4338_v54  ;;  %v2225_v29 = vmul.f32 0.3275911, %v2213_v20 }
 0xe5f   : > { %v2494_v12 = vpack.c.bf16 %v2486_v36, %v2482_v39  ;;  %v2473_v47 = vadd.f32 1.0, %v2449_v37  ;;  %v4418_v30 = vmul.f32 0.70710677, %v4413_v63  ;;  %v2471_v5 = vadd.f32 1.0, %v2447_v0 }
 0xe60   : > { %v2451_v33 = vmul.f32 %v2439_v28, %v2199_v18  ;;  %v2296_v50 = vmul.f32 %v4401_v17, %v2284_v59  ;;  %v2459_v49 = vmul.f32 0.5, %v4217_v62  ;;  %v2237_v15 = vadd.f32 1.0, %v2225_v29 }
 0xe61   : > { %v2485_v53 = vmul.f32 %v2473_v47, %v2461_v2  ;;  %v2215_v34 = vand.u32 2147483647, %v4418_v30  ;;  %v2463_v21 = vmul.f32 0.5, %v4263_v55  ;;  %v2392_v8 = vmul.f32 %v2380_v32, %v4338_v54 }
 0xe62   : > { %v2475_v52 = vadd.f32 1.0, %v2451_v33  ;;  %v2308_v44 = vadd.f32 1.4214138, %v2296_v50  ;;  %3537 = vrcp.f32 %v2237_v15  ;;  %v2483_v1 = vmul.f32 %v2471_v5, %v2459_v49 }
 0xe63   : > { %v2493_v13 = vpack.c.bf16 %v2485_v53, %v2481_v31  ;;  %v2227_v26 = vmul.f32 0.3275911, %v2215_v34  ;;  %v2382_v56 = vsub.f32 0.0, %v4383_v9  ;;  %v2412_v38 = vmul.f32 1.442695, %v2392_v8 }
 0xe64   : > { %v2487_v4 = vmul.f32 %v2475_v52, %v2463_v21  ;;  %v2320_v46 = vmul.f32 %v4401_v17, %v2308_v44  ;;  %v2381_v45 = vsub.f32 0.0, %v2213_v20  ;;  %v2383_v58 = vsub.f32 0.0, %v2215_v34 }
 0xe65   : > { %2795 = vmatprep.mubr.bf16.mxu0 %v2493_v13  ;;  %v3536_v62 = vpop.eup %3535  ;;  %v2239_v14 = vadd.f32 1.0, %v2227_v26  ;;  %v2394_v54 = vmul.f32 %v2382_v56, %v4383_v9  ;;  %v2200_v8 = vsel %vm2188_vm11, 1.0, %v3564_v42  ;;  %vm2190_vm12 = vcmp.ge.f32.partialorder %v4376_v51, 0.0 }
 0xe66   : > { %2796 = vmatmul.mubr.bf16.vlgmr.msra.gmra.mrb[36].mxu0 %v2492_v22  ;;  %v2274_v10 = vmul.f32 1.0614054, %v3536_v62  ;;  %v2495_v40 = vpack.c.bf16 %v2487_v4, %v2483_v1  ;;  %v2332_v55 = vadd.f32 -0.28449672, %v2320_v46  ;;  %v2393_v7 = vmul.f32 %v2381_v45, %v2213_v20 }
 0xe67   : > { %3539 = vrcp.f32 %v2239_v14  ;;  %v2416_v48 = vmul.f32 1.442695, %v2394_v54  ;;  %v2395_v25 = vmul.f32 %v2383_v58, %v2215_v34  ;;  %vm2189_vm13 = vcmp.ge.f32.partialorder %v4399_v19, 0.0 }
 0xe68   : > { %v2286_v35 = vadd.f32 -1.4531521, %v2274_v10  ;;  %2843 = vmatprep.mubr.bf16.mxu1 %v2495_v40  ;;  %v2344_v3 = vmul.f32 %v4401_v17, %v2332_v55  ;;  %3541 = vpow2.f32 %v2412_v38  ;;  %v2414_v9 = vmul.f32 1.442695, %v2393_v7 }
 0xe69   : > { %2844 = vmatmul.mubr.bf16.vlgmr.msra.gmra.mrb[40].mxu1 %v2494_v12  ;;  %3543 = vpow2.f32 %v2416_v48  ;;  %v2418_v20 = vmul.f32 1.442695, %v2395_v25  ;;  %v2202_v10 = vsel %vm2190_vm12, 1.0, %v3564_v42  ;;  %vm2191_vm14 = vcmp.ge.f32.partialorder %v4418_v30, 0.0  ;;  %v3030_v25 = vld [vmem:[%s4469_s13] ss:$0 sm:$0xff] }
 0xe6a   : > { %v2298_v39 = vmul.f32 %v3536_v62, %v2286_v35  ;;  %v2356_v22 = vadd.f32 0.2548296, %v2344_v3  ;;  %3545 = vpow2.f32 %v2414_v9  ;;  %v2201_v35 = vsel %vm2189_vm13, 1.0, %v3564_v42 }
 0xe6b   : > { %3547 = vpow2.f32 %v2418_v20  ;;  %v2464_v51 = vmul.f32 0.5, %v4309_v41  ;;  %v2465_v3 = vmul.f32 0.5, %v4389_v6  ;;  %v2203_v48 = vsel %vm2191_vm14, 1.0, %v3564_v42 }
 0xe6c   : > { %v2310_v11 = vadd.f32 1.4214138, %v2298_v39  ;;  %v3538_v43 = vpop.eup %3537  ;;  %v2368_v47 = vmul.f32 %v4401_v17, %v2356_v22  ;;  %v2467_v22 = vmul.f32 0.5, %v4413_v63 }
 0xe6d   : > { %v2273_v0 = vmul.f32 1.0614054, %v3538_v43 }
 0xe6e   : > { %v2322_v24 = vmul.f32 %v3536_v62, %v2310_v11 }
 0xe6f   : > { %v2285_v37 = vadd.f32 -1.4531521, %v2273_v0  ;;  %v2466_v0 = vmul.f32 0.5, %v4365_v16 }
 0xe70   : > { %v2334_v36 = vadd.f32 -0.28449672, %v2322_v24 }
 0xe71   : > { %v3540_v27 = vpop.eup %3539  ;;  %v2297_v18 = vmul.f32 %v3538_v43, %v2285_v37 }
 0xe72   : > { %v2346_v2 = vmul.f32 %v3536_v62, %v2334_v36  ;;  %v2275_v12 = vmul.f32 1.0614054, %v3540_v27  ;;  %v3542_v32 = vpop.eup %3541 }
 0xe73   : > { %v2309_v59 = vadd.f32 1.4214138, %v2297_v18  ;;  %v2428_v53 = vmul.f32 %v3542_v32, %v2368_v47  ;;  %v3544_v15 = vpop.eup %3543 }
 0xe74   : > { %v2358_v28 = vadd.f32 0.2548296, %v2346_v2  ;;  %v2287_v31 = vadd.f32 -1.4531521, %v2275_v12  ;;  %v3546_v4 = vpop.eup %3545 }
 0xe75   : > { %v2321_v29 = vmul.f32 %v3538_v43, %v2309_v59  ;;  %v2440_v52 = vsub.f32 1.0, %v2428_v53  ;;  %v3548_v55 = vpop.eup %3547 }
 0xe76   : > { %v2299_v5 = vmul.f32 %v3540_v27, %v2287_v31  ;;  %v2370_v33 = vmul.f32 %v3536_v62, %v2358_v28 }
 0xe77   : > { %v2333_v50 = vadd.f32 -0.28449672, %v2321_v29  ;;  %v2452_v46 = vmul.f32 %v2440_v52, %v2200_v8 }
 0xe78   : > { %v2311_v49 = vadd.f32 1.4214138, %v2299_v5  ;;  %v2430_v17 = vmul.f32 %v3544_v15, %v2370_v33 }
 0xe79   : > { %v2345_v34 = vmul.f32 %v3538_v43, %v2333_v50  ;;  %v2476_v54 = vadd.f32 1.0, %v2452_v46 }
 0xe7a   : > { %v2323_v21 = vmul.f32 %v3540_v27, %v2311_v49  ;;  %v2442_v56 = vsub.f32 1.0, %v2430_v17 }
 0xe7b   : > { %v2357_v44 = vadd.f32 0.2548296, %v2345_v34 }
 0xe7c   : > { %v2335_v13 = vadd.f32 -0.28449672, %v2323_v21  ;;  %v2454_v38 = vmul.f32 %v2442_v56, %v2202_v10 }
 0xe7d   : > { %v2369_v26 = vmul.f32 %v3538_v43, %v2357_v44  ;;  %v2488_v43 = vmul.f32 %v2476_v54, %v2464_v51 }
 0xe7e   : > { %v2347_v1 = vmul.f32 %v3540_v27, %v2335_v13  ;;  %v2478_v7 = vadd.f32 1.0, %v2454_v38 }
 0xe7f   : > { %v2429_v62 = vmul.f32 %v3546_v4, %v2369_v26  ;;  %v2496_v30 = vpack.c.bf16 %v2488_v43, %v2488_v43 }
 0xe80   : > { %v2359_v14 = vadd.f32 0.2548296, %v2347_v1 }
 0xe81   : > { %v2441_v23 = vsub.f32 1.0, %v2429_v62 }
 0xe82   : > { %v2371_v40 = vmul.f32 %v3540_v27, %v2359_v14  ;;  %v2490_v27 = vmul.f32 %v2478_v7, %v2466_v0 }
 0xe83   : > { %v2453_v45 = vmul.f32 %v2441_v23, %v2201_v35 }
 0xe84   : > { %v2431_v39 = vmul.f32 %v3548_v55, %v2371_v40  ;;  %v2498_v9 = vpack.c.bf16 %v2490_v27, %v2490_v27 }
 0xe85   : > { %v2477_v11 = vadd.f32 1.0, %v2453_v45 }
 0xe86   : > { %v2443_v19 = vsub.f32 1.0, %v2431_v39 }
 0xe87   : > { %v2489_v24 = vmul.f32 %v2477_v11, %v2465_v3 }
 0xe88   : > { %v2455_v58 = vmul.f32 %v2443_v19, %v2203_v48 }
 0xe89   : > { %v2497_v36 = vpack.c.bf16 %v2489_v24, %v2489_v24 }
 0xe8a   : > { %v2479_v37 = vadd.f32 1.0, %v2455_v58 }
 0xe8b   : > { %2803 = vmatprep.mubr.bf16.mxu0 %v2497_v36 }
 0xe8c   : > { %v2491_v41 = vmul.f32 %v2479_v37, %v2467_v22  ;;  %2804 = vmatmul.mubr.bf16.gmra.mrb[40].mxu0 %v2496_v30 }
 0xe8e   : > { %v2499_v6 = vpack.c.bf16 %v2491_v41, %v2491_v41 }
 0xe90   : > { %2851 = vmatprep.mubr.bf16.mxu1 %v2499_v6 }
 0xe91   : > { %2852 = vmatmul.mubr.bf16.gmra.mrb[44].mxu1 %v2498_v9 }
 0xf39   : > { %v3139_v42 = vpop.f32.mrb[36].mxu0 }
 0xf3a   : > { %v3140_v16 = vpop.f32.mrb[37].mxu0 }
 0xf3b   : > { %v3141_v2 = vadd.f32 %v3140_v16, %v3139_v42  ;;  %v3142_v63 = vpop.f32.mrb[38].mxu0 }
 0xf3c   : > { %v3143_v18 = vpop.f32.mrb[39].mxu0  ;;  %v3167_v12 = vpop.f32.mrb[40].mxu1 }
 0xf3d   : > { %v2798_v47 = vadd.f32 %v3141_v2, %v3030_v25  ;;  %v3144_v28 = vadd.f32 %v3143_v18, %v3142_v63  ;;  %v3168_v59 = vpop.f32.mrb[41].mxu1 }
 0xf3e   : > { %v3169_v31 = vadd.f32 %v3168_v59, %v3167_v12  ;;  %v3170_v20 = vpop.f32.mrb[42].mxu1 }
 0xf3f   : > { %v2801_v32 = vadd.f32 %v3144_v28, %v3030_v25  ;;  %v3171_v29 = vpop.f32.mrb[43].mxu1 }
 0xf40   : > { %v2846_v5 = vadd.f32 %v3169_v31, %v2798_v47  ;;  %v3172_v53 = vadd.f32 %v3171_v29, %v3170_v20 }
 0xf42   : > { %v2859_v33 = vadd.f32 %v2846_v5, %v3967_v57  ;;  %v2849_v50 = vadd.f32 %v3172_v53, %v2801_v32 }
 0xf44   : > { %2862 = vst [vmem:[%s481_s20] sm:$0xff] %v2859_v33  ;;  %v2860_v49 = vadd.f32 %v2849_v50, %v3971_v60 }
 0xf46   : > { %2863 = vst [vmem:[%s481_s20 + $0x8] sm:$0xff] %v2860_v49 }
 0xf5f   : > { %v3145_v15 = vpop.f32.mrb[40].mxu0 }
 0xf60   : > { %v3146_v34 = vpop.f32.mrb[41].mxu0 }
 0xf61   : > { %v3147_v21 = vadd.f32 %v3146_v34, %v3145_v15  ;;  %v3148_v52 = vpop.f32.mrb[42].mxu0 }
 0xf62   : > { %v3149_v17 = vpop.f32.mrb[43].mxu0 }
 0xf63   : > { %v2806_v13 = vadd.f32 %v3147_v21, %v3030_v25 }
 0xf64   : > { %v3173_v44 = vpop.f32.mrb[44].mxu1 }
 0xf65   : > { %v3174_v8 = vpop.f32.mrb[45].mxu1 }
 0xf66   : > { %v3175_v26 = vadd.f32 %v3174_v8, %v3173_v44  ;;  %v3176_v1 = vpop.f32.mrb[46].mxu1 }
 0xf67   : > { %v3177_v4 = vpop.f32.mrb[47].mxu1 }
 0xf68   : > { %v2854_v46 = vadd.f32 %v3175_v26, %v2806_v13 }
 0xf6a   : > { %v2861_v56 = vadd.f32 %v2854_v46, %v3974_v61 }
 0xf6c   : > { %2864 = vst [vmem:[%s481_s20 + $0x10] sm:$0xff] %v2861_v56 }
 0xf6d PF: > { %s24_s29 = sadd.s32 1, %s3558_s29  }
 0xf6e   : > { %p21_p4 = scmp.ge.s32.totalorder %s24_s29, 4  }
 0xf70   :  { %23 = sbr.rel (!%p21_p4) target bundleno = 1 (0x1), region = 109 }

// kernel: rna_model_forward.2
= control target key start
LH: loop header
LB: loop body
LE: loop exit
PB: predicated region body
PF: predicated region fallthrough
CT: control target
= control target key end

     0   :  { %19 = vsyncpa [#allocation3], 0  ;;  %s3717_s29 = smov 0   ;;  %s4548_s0 = inlined_call_operand.vmem [shape: f32[2,24,128], index: 0, kind: input, shape index: {}]   ;;  %s4549_s1 = inlined_call_operand.vmem [shape: f32[2,1,24], index: 1, kind: input, shape index: {}]   ;;  %s4550_s2 = inlined_call_operand.vmem [shape: f32[1,128], index: 2, kind: input, shape index: {}]   ;;  %s4551_s3 = inlined_call_operand.vmem [shape: f32[1,128], index: 3, kind: input, shape index: {}]   ;;  %s4552_s4 = inlined_call_operand.vmem [shape: bf16[128,384], index: 4, kind: input, shape index: {}]   ;;  %s4553_s5 = inlined_call_operand.vmem [shape: f32[1,384], index: 5, kind: input, shape index: {}]   ;;  %s4554_s6 = inlined_call_operand.hbm [shape: bf16[128,128], index: 6, kind: input, shape index: {}]   ;;  %s4555_s7 = inlined_call_operand.vmem [shape: f32[1,128], index: 7, kind: input, shape index: {}]   ;;  %s4556_s8 = inlined_call_operand.vmem [shape: f32[1,128], index: 8, kind: input, shape index: {}]   ;;  %s4557_s9 = inlined_call_operand.vmem [shape: f32[1,128], index: 9, kind: input, shape index: {}]   ;;  %s4558_s10 = inlined_call_operand.vmem [shape: bf16[128,512], index: 10, kind: input, shape index: {}]   ;;  %s4559_s11 = inlined_call_operand.vmem [shape: f32[1,512], index: 11, kind: input, shape index: {}]   ;;  %s4560_s12 = inlined_call_operand.vmem [shape: bf16[512,128], index: 12, kind: input, shape index: {}]   ;;  %s4561_s13 = inlined_call_operand.vmem [shape: f32[1,128], index: 13, kind: input, shape index: {}]   ;;  %s4562_s14 = inlined_call_operand.vmem [shape: f32[2,24,128], index: 14, kind: output, shape index: {}]  }
   0x1 LB: > { %s3723_s30 = sadd.s32 4294967295, %s3632_s29   ;;  %p2958_p0 = scmp.ge.s32.totalorder %s3632_s29, 1  ;;  %s3632_s29 = sphi %s3717_s29, %s25_s29  }
   0x2   : > { %p360_p1 = scmp.lt.s32.totalorder %s3632_s29, 3  ;;  %s3634_s15 = smov [#allocation2]  }
   0x3   : > { %s384_s16 = sshll.u32 %s3634_s15, 4  ;;  %p4563_p3 = scmp.eq.s32.totalorder %s3723_s30, 0  ;;  %s385_s16 = int_to_ptr.vmem [resolvable:$true] %s384_s16 }
   0x4   : > { %p3727_p2 = pnand %p2958_p0, %p360_p1  ;;  %s3594_s21 = scalar_lea.hbm %s4554_s6, 1024 }
   0x5   : > { %p3595_p6 = scmp.ne.s32.totalorder %s4554_s6, %s3594_s21  ;;  %p3601_p10 = scmp.lt.u32.totalorder %s3594_s21, %s4554_s6 }
   0x6   : > { %s4565_s17 = scalar_select %p3727_p2, 1, 0 }
   0x7   : > { %p3341_p4 = pneg %p3727_p2 }
   0x9   : > { %p3736_p5 = pnand %p4563_p3, %p3341_p4 }
   0xb   : > { %p3596_p7 = pneg %p3736_p5 }
   0xd   : > { %p3597_p8 = pnand %p3596_p7, %p3595_p6 }
   0xf   : > { %p3598_p9 = pneg %p3597_p8 }
  0x11   : > { %p3603_p11 = pnand %p3601_p10, %p3598_p9 }
  0x13   : > { %3606 = shalt.err (!%p3603_p11)
}
  0x14   : > { %s3607_s26 = scalar_lea.vmem %s385_s16, 1024  ;;  %p3615_p1 = scmp.lt.s32.totalorder %s385_s16, %s385_s16 }
  0x15   : > { %p3608_p12 = scmp.ne.s32.totalorder %s385_s16, %s3607_s26  ;;  %p3616_p4 = scmp.lt.s32.totalorder %s3607_s26, %s3607_s26 }
  0x17   : > { %p3610_p13 = pnand %p3608_p12, %p3596_p7  ;;  %p3617_p3 = por %p3616_p4, %p3615_p1 }
  0x19   : > { %p3611_p0 = pneg %p3610_p13 }
  0x1b   : > { %p3618_p2 = pnand %p3617_p3, %p3611_p0 }
  0x1d   : > { %3621 = shalt.err (!%p3618_p2)
}
  0x1e   : > { %s3635_s27 = smov 64   ;;  %s3636_s28 = smov 4  }
  0x1f   : > { %3344 = dma.hbm_to_vmem [thread:$0]  (!%p3736_p5), %s4554_s6, 1024, %s385_s16, [#allocation3], %s3635_s27, %s3635_s27, %s3636_s28  }
  0x20   : > { %p4567_p6 = scmp.ne.s32.totalorder %s4565_s17, 0 }
  0x21   : > { %p4568_p8 = scmp.eq.s32.totalorder (!%p4567_p6), %s3723_s30, 0 }
  0x22   : > { %435 = sbr.rel (%p4567_p6) target bundleno = 3980 (0xf8c), region = 76 }
  0x29   : > { %3627 = dma.done.wait (%p4568_p8), [#allocation3], 1024   ;;  %p4569_p7 = pmov %p4568_p8 }
  0x2a   : > { %p484_p2 = scmp.lt.s32.totalorder %s3723_s30, 1  ;;  %v3363_v3 = vld [vmem:[%s4552_s4 + $0x4] ss:$12 sps:$4 sm:$0xff]   ;;  %v3365_v4 = vld [vmem:[%s4552_s4] ss:$12 sps:$4 sm:$0xff]   ;;  %v3637_v35 = vmov 0  }
  0x2b   : > { %3629 = vsyncadd (%p4569_p7), [#allocation3], 4294966272  ;;  %v3366_v5 = vld [vmem:[%s4552_s4 + $0x8] ss:$12 sps:$4 sm:$0xff]   ;;  %735 = vmatprep.subr.bf16.mxu0 %v3363_v3  ;;  %v3369_v19 = vld [vmem:[%s4552_s4 + $0x18] ss:$12 sps:$4 sm:$0xff]   ;;  %767 = vmatprep.mubr.bf16.mxu0 %v3637_v35 }
  0x2c   : > { %s4571_s30 = smov (!%p484_p2, %s3723_s30), 1  ;;  %v3367_v6 = vld [vmem:[%s4552_s4 + $0x1c] ss:$12 sps:$4 sm:$0xff]   ;;  %3208 = vmatprep.subr.bf16.mxu1 %v3366_v5  ;;  %736 = vmatpush1.bf16.msra.mxu0 %v3365_v4  ;;  %v3370_v20 = vld [vmem:[%s4552_s4 + $0x20] ss:$12 sps:$4 sm:$0xff]   ;;  %vm865_vm0 = vcmask 261120  }
  0x2d   : > { %s3336_s18 = smul.u32 24, %s4571_s30  ;;  %3209 = vmatpush3.bf16.msra.mxu1 %v3366_v5  ;;  %737 = vmatprep.subr.bf16.mxu0 %v3367_v6  ;;  %v3371_v21 = vld [vmem:[%s4552_s4 + $0x34] ss:$12 sps:$4 sm:$0xff]   ;;  %v3373_v22 = vld [vmem:[%s4552_s4 + $0x30] ss:$12 sps:$4 sm:$0xff]   ;;  %vm968_vm1 = vcmask 1043456   ;;  %s491_s15 = scalar_lea.vmem %s4549_s1, %s4571_s30 }
  0x2e   : > { %3210 = vmatprep.subr.bf16.mxu1 %v3370_v20  ;;  %v3374_v23 = vld [vmem:[%s4552_s4 + $0x38] ss:$12 sps:$4 sm:$0xff]   ;;  %v3377_v25 = vld [vmem:[%s4552_s4 + $0x48] ss:$12 sps:$4 sm:$0xff]   ;;  %v3378_v26 = vld [vmem:[%s4552_s4 + $0x50] ss:$12 sps:$4 sm:$0xff]  }
  0x2f   : > { %s3772_s17 = scalar_lea.vmem %s4548_s0, %s3336_s18  ;;  %v3375_v24 = vld [vmem:[%s4552_s4 + $0x4c] ss:$12 sps:$4 sm:$0xff]   ;;  %v3379_v27 = vld [vmem:[%s4552_s4 + $0x64] ss:$12 sps:$4 sm:$0xff]   ;;  %v3382_v29 = vld [vmem:[%s4552_s4 + $0x68] ss:$12 sps:$4 sm:$0xff]  }
  0x30   : > { %v498_v0 = vld [vmem:[%s3772_s17] sm:$0xff]  ;;  %v500_v1 = vld [vmem:[%s3772_s17 + $0x10] sm:$0xff]  ;;  %v499_v2 = vld [vmem:[%s3772_s17 + $0x8] sm:$0xff]  ;;  %738 = vmatpush1.bf16.msra.mxu0 %v3369_v19  ;;  %vm926_vm2 = vcmask 195584   ;;  %s3638_s19 = smov 96   ;;  %s3639_s20 = smov 64  }
  0x31   : > { %504 = vadd.xlane.f32.xlu0 %v498_v0  ;;  %508 = vadd.xlane.f32.xlu1 %v500_v1  ;;  %v3381_v28 = vld [vmem:[%s4552_s4 + $0x60] ss:$12 sps:$4 sm:$0xff]   ;;  %v3383_v30 = vld [vmem:[%s4552_s4 + $0x7c] ss:$12 sps:$4 sm:$0xff]   ;;  %v3385_v32 = vld [vmem:[%s4552_s4 + $0x78] ss:$12 sps:$4 sm:$0xff]  }
  0x32   : > { %3211 = vmatpush3.bf16.msra.mxu1 %v3370_v20  ;;  %739 = vmatprep.subr.bf16.mxu0 %v3371_v21  ;;  %v3386_v31 = vld [vmem:[%s4552_s4 + $0x80] ss:$12 sps:$4 sm:$0xff]   ;;  %v3390_v34 = vld [vmem:[%s4552_s4 + $0x98] ss:$12 sps:$4 sm:$0xff]   ;;  %v3389_v36 = vld [vmem:[%s4552_s4 + $0x90] ss:$12 sps:$4 sm:$0xff]  }
  0x33   : > { %3212 = vmatprep.subr.bf16.mxu1 %v3374_v23  ;;  %v3387_v33 = vld [vmem:[%s4552_s4 + $0x94] ss:$12 sps:$4 sm:$0xff]   ;;  %v3391_v37 = vld [vmem:[%s4552_s4 + $0xac] ss:$12 sps:$4 sm:$0xff]   ;;  %v3394_v38 = vld [vmem:[%s4552_s4 + $0xb0] ss:$12 sps:$4 sm:$0xff]  }
  0x34   : > { %740 = vmatpush1.bf16.msra.mxu0 %v3373_v22  ;;  %v3393_v39 = vld [vmem:[%s4552_s4 + $0xa8] ss:$12 sps:$4 sm:$0xff]   ;;  %v2965_v51 = vld [vmem:[%s4550_s2] ss:$0 sm:$0xff]  ;;  %s3640_s16 = smov 32  }
  0x35   : > { %506 = vadd.xlane.f32.xlu0 %v499_v2  ;;  %741 = vmatprep.subr.bf16.mxu0 %v3375_v24  ;;  %v2966_v57 = vld [vmem:[%s4551_s3] ss:$0 sm:$0xff] }
  0x36   : > { %3213 = vmatpush3.bf16.msra.mxu1 %v3374_v23  ;;  %v590_v4 = vld [vmem:[%s4553_s5] sm:$0x7] }
  0x37   : > { %3214 = vmatprep.subr.bf16.mxu1 %v3378_v26 }
  0x38   : > { %742 = vmatpush1.bf16.msra.mxu0 %v3377_v25 }
  0x39   : > { %743 = vmatprep.subr.bf16.mxu0 %v3379_v27 }
  0x3a   : > { %3215 = vmatpush3.bf16.msra.mxu1 %v3378_v26 }
  0x3b   : > { %3216 = vmatprep.subr.bf16.mxu1 %v3382_v29 }
  0x3c   : > { %744 = vmatpush1.bf16.msra.mxu0 %v3381_v28 }
  0x3d   : > { %745 = vmatprep.subr.bf16.mxu0 %v3383_v30 }
  0x3e   : > { %3217 = vmatpush3.bf16.msra.mxu1 %v3382_v29 }
  0x3f   : > { %3218 = vmatprep.subr.bf16.mxu1 %v3386_v31 }
  0x40   : > { %746 = vmatpush1.bf16.msra.mxu0 %v3385_v32 }
  0x41   : > { %747 = vmatprep.subr.bf16.mxu0 %v3387_v33 }
  0x42   : > { %3219 = vmatpush3.bf16.msra.mxu1 %v3386_v31 }
  0x43   : > { %3220 = vmatprep.subr.bf16.mxu1 %v3390_v34 }
  0x44   : > { %748 = vmatpush1.bf16.msra.mxu0 %v3389_v36 }
  0x45   : > { %749 = vmatprep.subr.bf16.mxu0 %v3391_v37 }
  0x46   : > { %3221 = vmatpush3.bf16.msra.mxu1 %v3390_v34 }
  0x47   : > { %3222 = vmatprep.subr.bf16.mxu1 %v3394_v38 }
  0x48   : > { %750 = vmatpush1.bf16.msra.mxu0 %v3393_v39 }
  0x4a   : > { %3223 = vmatpush3.bf16.msra.mxu1 %v3394_v38 }
  0xbe   : > { %v505_v7 = vpop.xlane.xlu0 %504  ;;  %v509_v8 = vpop.xlane.xlu1 %508 }
  0xbf   : > { %v511_v9 = vmul.f32 0.0078125, %v505_v7  ;;  %v513_v10 = vmul.f32 0.0078125, %v509_v8 }
  0xc1   : > { %v3789_v11 = vsub.f32 %v498_v0, %v511_v9  ;;  %v3791_v12 = vsub.f32 %v500_v1, %v513_v10  ;;  %v592_v1 = vlaneseq }
  0xc2   : > { %v507_v13 = vpop.xlane.xlu0 %506 }
  0xc3   : > { %v512_v14 = vmul.f32 0.0078125, %v507_v13  ;;  %v517_v15 = vmul.f32 %v3789_v11, %v3789_v11  ;;  %v519_v17 = vmul.f32 %v3791_v12, %v3791_v12 }
  0xc5   : > { %v3795_v16 = vsub.f32 %v499_v2, %v512_v14  ;;  %520 = vadd.xlane.f32.xlu1 %v517_v15  ;;  %v3872_v2 = vshrl.u32 %v592_v1, 7 }
  0xc7   : > { %v518_v18 = vmul.f32 %v3795_v16, %v3795_v16  ;;  %v594_v3 = vsub.s32 0, %v3872_v2  ;;  %v598_v5 = vsub.s32 1, %v3872_v2  ;;  %v602_v7 = vsub.s32 2, %v3872_v2 }
  0xc9   : > { %524 = vadd.xlane.f32.xlu1 %v519_v17  ;;  %522 = vadd.xlane.f32.xlu0 %v518_v18  ;;  %v595_v6 = vrot.slane %v590_v4, %v594_v3  ;;  %v599_v9 = vrot.slane %v590_v4, %v598_v5 }
 0x152   : > { %v521_v40 = vpop.xlane.xlu1 %520 }
 0x153   : > { %v526_v41 = vmul.f32 0.0078125, %v521_v40 }
 0x155   : > { %v529_v42 = vadd.f32 1e-05, %v526_v41 }
 0x156   : > { %v525_v43 = vpop.xlane.xlu1 %524  ;;  %v523_v44 = vpop.xlane.xlu0 %522 }
 0x157   : > { %3483 = vrsqrt.f32 %v529_v42  ;;  %v528_v45 = vmul.f32 0.0078125, %v525_v43  ;;  %v527_v46 = vmul.f32 0.0078125, %v523_v44  ;;  %v3920_v44 = vld [vmem:[%s491_s15] ss:$0 sm:$0xff] }
 0x159   : > { %v531_v47 = vadd.f32 1e-05, %v528_v45  ;;  %v530_v48 = vadd.f32 1e-05, %v527_v46 }
 0x15b   : > { %3485 = vrsqrt.f32 %v531_v47 }
 0x15c   : > { %3487 = vrsqrt.f32 %v530_v48 }
 0x161   : > { %v3484_v49 = vpop.eup %3483 }
 0x162   : > { %v535_v50 = vmul.f32 %v3484_v49, %v3789_v11 }
 0x164   : > { %v544_v56 = vmul.f32 %v2965_v51, %v535_v50 }
 0x165   : > { %v3486_v52 = vpop.eup %3485 }
 0x166   : > { %v3488_v53 = vpop.eup %3487  ;;  %v537_v54 = vmul.f32 %v3486_v52, %v3791_v12  ;;  %v553_v61 = vadd.f32 %v2966_v57, %v544_v56  ;;  %v603_v12 = vrot.slane %v590_v4, %v602_v7 }
 0x167   : > { %v536_v55 = vmul.f32 %v3488_v53, %v3795_v16 }
 0x168   : > { %v546_v58 = vmul.f32 %v2965_v51, %v537_v54 }
 0x169   : > { %v545_v59 = vmul.f32 %v2965_v51, %v536_v55 }
 0x16a   : > { %v555_v60 = vadd.f32 %v2966_v57, %v546_v58 }
 0x16b   : > { %v554_v62 = vadd.f32 %v2966_v57, %v545_v59 }
 0x16c   : > { %v557_v63 = vpack.c.bf16 %v555_v60, %v555_v60 }
 0x16d   : > { %v556_v0 = vpack.c.bf16 %v554_v62, %v553_v61 }
 0x16f   : > { %768 = vmatmul.mubr.bf16.vlgmr.msra.gmra.mrb[0].mxu0 %v556_v0  ;;  %3224 = vmatprep.mubr.bf16.mxu1 %v556_v0 }
 0x170   : > { %3225 = vmatmul.mubr.bf16.vlgmr.msra.gmra.mrb[0].mxu1 %v557_v63  ;;  %777 = vmatprep.mubr.bf16.mxu0 %v3637_v35 }
 0x177   : > { %778 = vmatmul.mubr.bf16.gmra.mrb[4].mxu0 %v557_v63 }
 0x242   : > { %v769_v8 = vpop.f32.mrb[0].mxu0 }
 0x243   : > { %v770_v10 = vadd.f32 %v769_v8, %v595_v6  ;;  %v771_v11 = vpop.f32.mrb[1].mxu0  ;;  %v3226_v13 = vpop.f32.mrb[0].mxu1 }
 0x244   : > { %v773_v14 = vpop.f32.mrb[2].mxu0  ;;  %v820_v15 = vpop.f32.mrb[1].mxu1  ;;  %v772_v19 = vadd.f32 %v771_v11, %v599_v9  ;;  %v829_v26 = vadd.f32 %v3226_v13, %v603_v12 }
 0x245   : > { %v774_v16 = vadd.f32 %v773_v14, %v595_v6  ;;  %v775_v17 = vpop.f32.mrb[3].mxu0  ;;  %v3227_v18 = vpop.f32.mrb[2].mxu1  ;;  %v850_v22 = vmul.f32 0.17677669, %v770_v10  ;;  %v821_v24 = vadd.f32 %v820_v15, %v603_v12 }
 0x246   : > { %v776_v20 = vadd.f32 %v775_v17, %v599_v9  ;;  %v823_v21 = vpop.f32.mrb[3].mxu1  ;;  %v3898_v33 = vpack.c.bf16 %v829_v26, %v829_v26 }
 0x247   : > { %v851_v23 = vmul.f32 0.17677669, %v774_v16  ;;  %v824_v25 = vadd.f32 %v823_v21, %v603_v12 }
 0x248   : > { %v3886_v27 = vpack.c.bf16 %v776_v20, %v772_v19  ;;  %v970_v40 = vsel %vm968_vm1, %v3898_v33, 0 }
 0x249   : > { %v3888_v28 = vpack.c.bf16 %v851_v23, %v850_v22  ;;  %v3890_v29 = vpack.c.bf16 %v824_v25, %v821_v24  ;;  %v3395_v25 = vld [vmem:[#allocation2] sm:$0xff]  }
 0x24a   : > { %v779_v30 = vpop.f32.mrb[4].mxu0  ;;  %3324 = vmatprep.subr.msk.bf16.mxu0 %vm865_vm0, %v3886_v27  ;;  %v873_v31 = vsel %vm865_vm0, %v3886_v27, 0 }
 0x24b   : > { %v781_v32 = vpop.f32.mrb[5].mxu0  ;;  %3229 = vmatpush3.bf16.xpose.msra.mxu0 %v873_v31  ;;  %3232 = vmatprep.mubr.msk.bf16.mxu0 %vm865_vm0, %v3888_v28  ;;  %v780_v39 = vadd.f32 %v779_v30, %v595_v6  ;;  %v3396_v31 = vld [vmem:[#allocation2 + $0x8] sm:$0xff]  }
 0x24c   : > { %v782_v34 = vadd.f32 %v781_v32, %v599_v9  ;;  %3236 = vmatprep.subr.bf16.mxu1 %v3890_v29  ;;  %v783_v36 = vpop.f32.mrb[6].mxu0 }
 0x24d   : > { %3237 = vmatpush3.bf16.msra.mxu1 %v3890_v29  ;;  %v784_v37 = vpop.f32.mrb[7].mxu0  ;;  %v852_v42 = vmul.f32 0.17677669, %v780_v39 }
 0x24e   : > { %v3902_v38 = vpack.c.bf16 %v782_v34, %v782_v34  ;;  %3326 = vmatprep.subr.msk.bf16.mxu1 %vm968_vm1, %v3898_v33 }
 0x24f   : > { %v3912_v43 = vpack.c.bf16 %v852_v42, %v852_v42 }
 0x250   : > { %3325 = vmatprep.subr.msk.bf16.mxu0 %vm865_vm0, %v3902_v38  ;;  %v876_v41 = vsel %vm865_vm0, %v3902_v38, 0 }
 0x251   : > { %3239 = vmatpush3.bf16.msra.mxu1 %v970_v40 }
 0x253   : > { %3231 = vmatpush3.bf16.xpose.msra.mxu0 %v876_v41 }
 0x25a   : > { %3233 = vmatmul.mubr.msk.bf16.vlgmr.msra.gmra.mrb[8].mxu0 %vm865_vm0, %v3912_v43 }
 0x32d   : > { %v3234_v45 = vpop.f32.mrb[8].mxu0 }
 0x32e   : > { %v912_v46 = vpop.f32.mrb[9].mxu0  ;;  %v921_v50 = vadd.f32 %v3234_v45, %v3920_v44 }
 0x32f   : > { %v913_v47 = vadd.f32 %v3920_v44, %v912_v46  ;;  %v3235_v48 = vpop.f32.mrb[10].mxu0 }
 0x330   : > { %v915_v49 = vpop.f32.mrb[11].mxu0  ;;  %v933_v54 = vsel %vm926_vm2, %v921_v50, -inf }
 0x331   : > { %v916_v51 = vadd.f32 %v3920_v44, %v915_v49  ;;  %v927_v52 = vsel %vm926_vm2, %v913_v47, -inf }
 0x332   : > { %928 = vmax.xlane.f32.xlu0 %v927_v52 }
 0x333   : > { %v930_v53 = vsel %vm926_vm2, %v916_v51, -inf }
 0x334   : > { %931 = vmax.xlane.f32.xlu1 %v930_v53 }
 0x336   : > { %934 = vmax.xlane.f32.xlu0 %v933_v54 }
 0x3bf   : > { %v929_v55 = vpop.xlane.xlu0 %928 }
 0x3c0   : > { %v936_v56 = vsub.f32 %v913_v47, %v929_v55 }
 0x3c1   : > { %v932_v57 = vpop.xlane.xlu1 %931 }
 0x3c2   : > { %v939_v58 = vmul.f32 1.442695, %v936_v56  ;;  %v937_v59 = vsub.f32 %v916_v51, %v932_v57 }
 0x3c3   : > { %v935_v60 = vpop.xlane.xlu0 %934 }
 0x3c4   : > { %3489 = vpow2.f32 %v939_v58  ;;  %v941_v61 = vmul.f32 1.442695, %v937_v59  ;;  %v938_v62 = vsub.f32 %v921_v50, %v935_v60 }
 0x3c6   : > { %3491 = vpow2.f32 %v941_v61  ;;  %v943_v63 = vmul.f32 1.442695, %v938_v62 }
 0x3c8   : > { %3493 = vpow2.f32 %v943_v63 }
 0x3ce   : > { %v3490_v0 = vpop.eup %3489 }
 0x3cf   : > { %v945_v1 = vsel %vm926_vm2, %v3490_v0, 0.0 }
 0x3d0   : > { %v3492_v4 = vpop.eup %3491  ;;  %946 = vadd.xlane.f32.xlu1 %v945_v1 }
 0x3d1   : > { %v948_v6 = vsel %vm926_vm2, %v3492_v4, 0.0 }
 0x3d2   : > { %v3494_v8 = vpop.eup %3493  ;;  %949 = vadd.xlane.f32.xlu0 %v948_v6 }
 0x3d3   : > { %v951_v9 = vsel %vm926_vm2, %v3494_v8, 0.0 }
 0x3d4   : > { %952 = vadd.xlane.f32.xlu1 %v951_v9 }
 0x3e5   : > { %1032 = vrot.lane.b32.xlu1 %v3902_v38, %s3638_s19 }
 0x3e8   : > { %1030 = vrot.lane.b32.xlu0 %v3886_v27, %s3638_s19 }
 0x3e9   : > { %1024 = vrot.lane.b32.xlu1 %v3888_v28, %s3638_s19 }
 0x3ed   : > { %1026 = vrot.lane.b32.xlu1 %v3912_v43, %s3638_s19 }
 0x45d   : > { %v947_v10 = vpop.xlane.xlu1 %946 }
 0x45e   : > { %3495 = vrcp.f32 %v947_v10 }
 0x45f   : > { %v950_v11 = vpop.xlane.xlu0 %949 }
 0x460   : > { %3497 = vrcp.f32 %v950_v11 }
 0x461   : > { %v953_v12 = vpop.xlane.xlu1 %952 }
 0x462   : > { %3499 = vrcp.f32 %v953_v12 }
 0x463   : > { %v1031_v13 = vpop.permute.xlu0 %1030 }
 0x464   : > { %3327 = vmatprep.subr.msk.bf16.mxu1 %vm865_vm0, %v1031_v13  ;;  %v1041_v23 = vsel %vm865_vm0, %v1031_v13, 0 }
 0x465   : > { %v1033_v16 = vpop.permute.xlu1 %1032 }
 0x466   : > { %v1044_v26 = vsel %vm865_vm0, %v1033_v16, 0 }
 0x468   : > { %v3496_v14 = vpop.eup %3495 }
 0x469   : > { %v957_v17 = vmul.f32 %v3496_v14, %v3490_v0  ;;  %v1025_v24 = vpop.permute.xlu1 %1024 }
 0x46a   : > { %v3498_v15 = vpop.eup %3497 }
 0x46b   : > { %v958_v18 = vmul.f32 %v3498_v15, %v3492_v4 }
 0x46c   : > { %v3500_v19 = vpop.eup %3499 }
 0x46d   : > { %v959_v20 = vmul.f32 %v3500_v19, %v3494_v8  ;;  %v960_v21 = vpack.c.bf16 %v958_v18, %v957_v17  ;;  %v1027_v30 = vpop.permute.xlu1 %1026 }
 0x46f   : > { %3240 = vmatprep.mubr.msk.bf16.mxu1 %vm926_vm2, %v960_v21  ;;  %v961_v22 = vpack.c.bf16 %v959_v20, %v959_v20 }
 0x471   : > { %3241 = vmatmul.mubr.msk.bf16.vlgmr.msra.gmra.mrb[4].mxu1 %vm926_vm2, %v961_v22 }
 0x472   : > { %3245 = vmatpush3.bf16.xpose.msra.mxu1 %v1041_v23  ;;  %3248 = vmatprep.mubr.msk.bf16.mxu1 %vm865_vm0, %v1025_v24  ;;  %v3398_v23 = vld [vmem:[#allocation2 + $0x18] sm:$0xff]  }
 0x473   : > { %3328 = vmatprep.subr.msk.bf16.mxu1 %vm865_vm0, %v1033_v16 }
 0x47a   : > { %3247 = vmatpush3.bf16.xpose.msra.mxu1 %v1044_v26 }
 0x47b   : > { %3268 = vmatprep.subr.bf16.mxu1 %v3395_v25 }
 0x481   : > { %3249 = vmatmul.mubr.msk.bf16.vlgmr.msra.gmra.mrb[8].mxu1 %vm865_vm0, %v1027_v30 }
 0x482   : > { %3269 = vmatpush3.bf16.msra.mxu1 %v3395_v25 }
 0x483   : > { %3270 = vmatprep.subr.bf16.mxu1 %v3396_v31 }
 0x486   : > { %3271 = vmatpush3.bf16.msra.mxu1 %v3396_v31 }
 0x544   : > { %v3242_v32 = vpop.f32.mrb[4].mxu1 }
 0x545   : > { %v1006_v34 = vpop.f32.mrb[5].mxu1  ;;  %v1021_v40 = vpack.c.bf16 %v3242_v32, %v3242_v32 }
 0x546   : > { %v3243_v36 = vpop.f32.mrb[6].mxu1 }
 0x547   : > { %v1009_v37 = vpop.f32.mrb[7].mxu1 }
 0x548   : > { %v1020_v39 = vpack.c.bf16 %v1009_v37, %v1006_v34 }
 0x54a   : > { %3272 = vmatprep.mubr.msk.bf16.mxu1 %vm865_vm0, %v1020_v39 }
 0x54b   : > { %3273 = vmatmul.mubr.msk.bf16.vlgmr.msra.gmra.mrb[12].mxu1 %vm865_vm0, %v1021_v40 }
 0x554   : > { %v3250_v41 = vpop.f32.mrb[8].mxu1 }
 0x555   : > { %v1080_v42 = vpop.f32.mrb[9].mxu1  ;;  %v1089_v48 = vadd.f32 %v3250_v41, %v3920_v44 }
 0x556   : > { %v1081_v45 = vadd.f32 %v3920_v44, %v1080_v42  ;;  %v3251_v46 = vpop.f32.mrb[10].mxu1 }
 0x557   : > { %v1083_v47 = vpop.f32.mrb[11].mxu1  ;;  %v1100_v52 = vsel %vm926_vm2, %v1089_v48, -inf }
 0x558   : > { %v1084_v49 = vadd.f32 %v3920_v44, %v1083_v47  ;;  %v1094_v50 = vsel %vm926_vm2, %v1081_v45, -inf }
 0x559   : > { %1095 = vmax.xlane.f32.xlu0 %v1094_v50 }
 0x55a   : > { %v1097_v51 = vsel %vm926_vm2, %v1084_v49, -inf }
 0x55b   : > { %1098 = vmax.xlane.f32.xlu1 %v1097_v51 }
 0x55d   : > { %1101 = vmax.xlane.f32.xlu0 %v1100_v52 }
 0x5e6   : > { %v1096_v53 = vpop.xlane.xlu0 %1095 }
 0x5e7   : > { %v1103_v54 = vsub.f32 %v1081_v45, %v1096_v53 }
 0x5e8   : > { %v1099_v55 = vpop.xlane.xlu1 %1098 }
 0x5e9   : > { %v1106_v56 = vmul.f32 1.442695, %v1103_v54  ;;  %v1104_v57 = vsub.f32 %v1084_v49, %v1099_v55 }
 0x5ea   : > { %v1102_v58 = vpop.xlane.xlu0 %1101 }
 0x5eb   : > { %3501 = vpow2.f32 %v1106_v56  ;;  %v1108_v59 = vmul.f32 1.442695, %v1104_v57  ;;  %v1105_v60 = vsub.f32 %v1089_v48, %v1102_v58 }
 0x5ed   : > { %3503 = vpow2.f32 %v1108_v59  ;;  %v1110_v61 = vmul.f32 1.442695, %v1105_v60 }
 0x5ef   : > { %3505 = vpow2.f32 %v1110_v61 }
 0x5f5   : > { %v3502_v62 = vpop.eup %3501 }
 0x5f6   : > { %v1112_v63 = vsel %vm926_vm2, %v3502_v62, 0.0 }
 0x5f7   : > { %v3504_v0 = vpop.eup %3503  ;;  %1113 = vadd.xlane.f32.xlu0 %v1112_v63 }
 0x5f8   : > { %v1115_v4 = vsel %vm926_vm2, %v3504_v0, 0.0 }
 0x5f9   : > { %v3506_v1 = vpop.eup %3505 }
 0x5fa   : > { %v1118_v6 = vsel %vm926_vm2, %v3506_v1, 0.0 }
 0x5fb   : > { %1116 = vadd.xlane.f32.xlu0 %v1115_v4  ;;  %1119 = vadd.xlane.f32.xlu1 %v1118_v6 }
 0x60c   : > { %1133 = vrot.lane.b32.xlu1 %v3898_v33, %s3638_s19 }
 0x610   : > { %1331 = vrot.lane.b32.xlu1 %v3886_v27, %s3639_s20 }
 0x611   : > { %1131 = vrot.lane.b32.xlu0 %v3890_v29, %s3638_s19  ;;  %s496_s19 = scalar_lea.vmem %s4562_s14, %s3336_s18 }
 0x614   : > { %1333 = vrot.lane.b32.xlu1 %v3902_v38, %s3639_s20 }
 0x615   : > { %1327 = vrot.lane.b32.xlu0 %v3888_v28, %s3639_s20 }
 0x618   : > { %1329 = vrot.lane.b32.xlu1 %v3912_v43, %s3639_s20 }
 0x619   : > { %1567 = vrot.lane.b32.xlu0 %v3886_v27, %s3640_s16 }
 0x61c   : > { %1569 = vrot.lane.b32.xlu1 %v3902_v38, %s3640_s16 }
 0x61d   : > { %1563 = vrot.lane.b32.xlu0 %v3888_v28, %s3640_s16  ;;  %v3397_v28 = vld [vmem:[#allocation2 + $0x10] sm:$0xff]  }
 0x61e   : > { %v3976_v8 = vpop.f32.mrb[12].mxu1 }
 0x61f   : > { %v3978_v9 = vpop.f32.mrb[13].mxu1 }
 0x620   : > { %1565 = vrot.lane.b32.xlu1 %v3912_v43, %s3640_s16  ;;  %v3275_v10 = vpop.f32.mrb[14].mxu1 }
 0x621   : > { %v3982_v11 = vpop.f32.mrb[15].mxu1 }
 0x684   : > { %v1114_v12 = vpop.xlane.xlu0 %1113 }
 0x685   : > { %3507 = vrcp.f32 %v1114_v12 }
 0x688   : > { %v1120_v13 = vpop.xlane.xlu1 %1119  ;;  %v1117_v27 = vpop.xlane.xlu0 %1116 }
 0x689   : > { %3509 = vrcp.f32 %v1120_v13 }
 0x68a   : > { %3511 = vrcp.f32 %v1117_v27 }
 0x68c   : > { %v1132_v38 = vpop.permute.xlu0 %1131  ;;  %v1134_v14 = vpop.permute.xlu1 %1133 }
 0x68d   : > { %3252 = vmatprep.subr.bf16.mxu0 %v1132_v38  ;;  %v1143_v15 = vsel %vm968_vm1, %v1134_v14, 0 }
 0x68e   : > { %3253 = vmatpush3.bf16.msra.mxu0 %v1132_v38 }
 0x68f   : > { %3329 = vmatprep.subr.msk.bf16.mxu0 %vm968_vm1, %v1134_v14  ;;  %v3508_v16 = vpop.eup %3507 }
 0x690   : > { %v1124_v19 = vmul.f32 %v3508_v16, %v3502_v62  ;;  %v1332_v24 = vpop.permute.xlu1 %1331  ;;  %v1328_v37 = vpop.permute.xlu0 %1327 }
 0x691   : > { %v1342_v36 = vsel %vm865_vm0, %v1332_v24, 0 }
 0x692   : > { %3255 = vmatpush3.bf16.msra.mxu0 %v1143_v15 }
 0x693   : > { %v3510_v43 = vpop.eup %3509  ;;  %3260 = vmatprep.subr.bf16.mxu0 %v3397_v28 }
 0x694   : > { %v3512_v17 = vpop.eup %3511  ;;  %v1126_v18 = vmul.f32 %v3510_v43, %v3506_v1  ;;  %v1334_v39 = vpop.permute.xlu1 %1333 }
 0x695   : > { %v1125_v20 = vmul.f32 %v3512_v17, %v3504_v0  ;;  %v1345_v40 = vsel %vm865_vm0, %v1334_v39, 0  ;;  %v1568_v41 = vpop.permute.xlu0 %1567 }
 0x696   : > { %v1128_v21 = vpack.c.bf16 %v1126_v18, %v1126_v18  ;;  %v1578_v45 = vsel %vm865_vm0, %v1568_v41, 0 }
 0x697   : > { %v1127_v22 = vpack.c.bf16 %v1125_v20, %v1124_v19 }
 0x698   : > { %v1330_v42 = vpop.permute.xlu1 %1329 }
 0x699   : > { %3256 = vmatprep.mubr.msk.bf16.mxu0 %vm926_vm2, %v1127_v22  ;;  %v1564_v46 = vpop.permute.xlu0 %1563 }
 0x69a   : > { %3257 = vmatmul.mubr.msk.bf16.vlgmr.msra.gmra.mrb[12].mxu0 %vm926_vm2, %v1128_v21 }
 0x69b   : > { %3261 = vmatpush3.bf16.msra.mxu0 %v3397_v28 }
 0x69c   : > { %3262 = vmatprep.subr.bf16.mxu0 %v3398_v23  ;;  %v1570_v47 = vpop.permute.xlu1 %1569 }
 0x69d   : > { %v1581_v48 = vsel %vm865_vm0, %v1570_v47, 0 }
 0x69f   : > { %3263 = vmatpush3.bf16.msra.mxu0 %v3398_v23 }
 0x6a0   : > { %3330 = vmatprep.subr.msk.bf16.mxu0 %vm865_vm0, %v1332_v24  ;;  %v1566_v49 = vpop.permute.xlu1 %1565 }
 0x76d   : > { %v3258_v25 = vpop.f32.mrb[12].mxu0 }
 0x76e   : > { %v1179_v26 = vpop.f32.mrb[13].mxu0  ;;  %v1194_v34 = vpack.c.bf16 %v3258_v25, %v3258_v25 }
 0x76f   : > { %v3259_v30 = vpop.f32.mrb[14].mxu0 }
 0x770   : > { %v1182_v31 = vpop.f32.mrb[15].mxu0 }
 0x771   : > { %v1193_v32 = vpack.c.bf16 %v1182_v31, %v1179_v26 }
 0x773   : > { %3264 = vmatprep.mubr.msk.bf16.mxu0 %vm865_vm0, %v1193_v32 }
 0x774   : > { %3265 = vmatmul.mubr.msk.bf16.vlgmr.msra.gmra.mrb[16].mxu0 %vm865_vm0, %v1194_v34 }
 0x775   : > { %3277 = vmatpush3.bf16.xpose.msra.mxu0 %v1342_v36  ;;  %3280 = vmatprep.mubr.msk.bf16.mxu0 %vm865_vm0, %v1328_v37 }
 0x776   : > { %3331 = vmatprep.subr.msk.bf16.mxu0 %vm865_vm0, %v1334_v39 }
 0x77d   : > { %3279 = vmatpush3.bf16.xpose.msra.mxu0 %v1345_v40 }
 0x77e   : > { %3333 = vmatprep.subr.msk.bf16.mxu0 %vm865_vm0, %v1568_v41 }
 0x784   : > { %3281 = vmatmul.mubr.msk.bf16.vlgmr.msra.gmra.mrb[20].mxu0 %vm865_vm0, %v1330_v42 }
 0x785   : > { %3301 = vmatpush3.bf16.xpose.msra.mxu0 %v1578_v45  ;;  %3304 = vmatprep.mubr.msk.bf16.mxu0 %vm865_vm0, %v1564_v46 }
 0x786   : > { %3334 = vmatprep.subr.msk.bf16.mxu0 %vm865_vm0, %v1570_v47 }
 0x78d   : > { %3303 = vmatpush3.bf16.xpose.msra.mxu0 %v1581_v48 }
 0x794   : > { %3305 = vmatmul.mubr.msk.bf16.vlgmr.msra.gmra.mrb[24].mxu0 %vm865_vm0, %v1566_v49 }
 0x795   : > { %2113 = vmatprep.mubr.bf16.mxu0 %v3637_v35 }
 0x847   : > { %v3266_v50 = vpop.f32.mrb[16].mxu0 }
 0x848   : > { %v4004_v51 = vadd.f32 %v3976_v8, %v3266_v50  ;;  %v1247_v52 = vpop.f32.mrb[17].mxu0 }
 0x849   : > { %v4007_v53 = vadd.f32 %v3978_v9, %v1247_v52  ;;  %v3267_v54 = vpop.f32.mrb[18].mxu0 }
 0x84a   : > { %v1250_v55 = vpop.f32.mrb[19].mxu0 }
 0x84b   : > { %v4010_v56 = vadd.f32 %v3982_v11, %v1250_v55 }
 0x857   : > { %v3282_v57 = vpop.f32.mrb[20].mxu0 }
 0x858   : > { %v1381_v58 = vpop.f32.mrb[21].mxu0  ;;  %v1390_v62 = vadd.f32 %v3282_v57, %v3920_v44 }
 0x859   : > { %v1382_v59 = vadd.f32 %v3920_v44, %v1381_v58  ;;  %v3283_v60 = vpop.f32.mrb[22].mxu0 }
 0x85a   : > { %v1384_v61 = vpop.f32.mrb[23].mxu0  ;;  %v1401_v4 = vsel %vm926_vm2, %v1390_v62, -inf }
 0x85b   : > { %v1385_v63 = vadd.f32 %v3920_v44, %v1384_v61  ;;  %v1395_v0 = vsel %vm926_vm2, %v1382_v59, -inf }
 0x85c   : > { %1396 = vmax.xlane.f32.xlu0 %v1395_v0 }
 0x85d   : > { %v1398_v1 = vsel %vm926_vm2, %v1385_v63, -inf }
 0x85e   : > { %1399 = vmax.xlane.f32.xlu1 %v1398_v1 }
 0x860   : > { %1402 = vmax.xlane.f32.xlu0 %v1401_v4 }
 0x867   : > { %v3306_v6 = vpop.f32.mrb[24].mxu0 }
 0x868   : > { %v1617_v8 = vpop.f32.mrb[25].mxu0  ;;  %v1626_v24 = vadd.f32 %v3306_v6, %v3920_v44 }
 0x869   : > { %v3307_v9 = vpop.f32.mrb[26].mxu0  ;;  %v1618_v22 = vadd.f32 %v3920_v44, %v1617_v8  ;;  %v3400_v8 = vld [vmem:[#allocation2 + $0x28] sm:$0xff]  }
 0x86a   : > { %v1620_v10 = vpop.f32.mrb[27].mxu0  ;;  %v1637_v30 = vsel %vm926_vm2, %v1626_v24, -inf }
 0x86b   : > { %v1621_v23 = vadd.f32 %v3920_v44, %v1620_v10  ;;  %v1631_v26 = vsel %vm926_vm2, %v1618_v22, -inf  ;;  %v3399_v44 = vld [vmem:[#allocation2 + $0x20] sm:$0xff]  }
 0x86d   : > { %v1634_v25 = vsel %vm926_vm2, %v1621_v23, -inf }
 0x8e9   : > { %v1397_v11 = vpop.xlane.xlu0 %1396 }
 0x8ea   : > { %v1404_v12 = vsub.f32 %v1382_v59, %v1397_v11 }
 0x8eb   : > { %v1400_v13 = vpop.xlane.xlu1 %1399 }
 0x8ec   : > { %v1407_v27 = vmul.f32 1.442695, %v1404_v12  ;;  %v1405_v38 = vsub.f32 %v1385_v63, %v1400_v13 }
 0x8ed   : > { %v1403_v14 = vpop.xlane.xlu0 %1402 }
 0x8ee   : > { %3513 = vpow2.f32 %v1407_v27  ;;  %v1409_v28 = vmul.f32 1.442695, %v1405_v38  ;;  %v1406_v15 = vsub.f32 %v1390_v62, %v1403_v14 }
 0x8f0   : > { %3515 = vpow2.f32 %v1409_v28  ;;  %v1411_v16 = vmul.f32 1.442695, %v1406_v15 }
 0x8f2   : > { %3517 = vpow2.f32 %v1411_v16 }
 0x8f8   : > { %v3514_v43 = vpop.eup %3513 }
 0x8f9   : > { %v1413_v17 = vsel %vm926_vm2, %v3514_v43, 0.0 }
 0x8fa   : > { %v3516_v18 = vpop.eup %3515  ;;  %1414 = vadd.xlane.f32.xlu0 %v1413_v17 }
 0x8fb   : > { %v1416_v20 = vsel %vm926_vm2, %v3516_v18, 0.0 }
 0x8fc   : > { %v3518_v19 = vpop.eup %3517 }
 0x8fd   : > { %v1419_v21 = vsel %vm926_vm2, %v3518_v19, 0.0 }
 0x8fe   : > { %1417 = vadd.xlane.f32.xlu0 %v1416_v20  ;;  %1420 = vadd.xlane.f32.xlu1 %v1419_v21 }
 0x90f   : > { %1432 = vrot.lane.b32.xlu1 %v3898_v33, %s3639_s20 }
 0x914   : > { %1430 = vrot.lane.b32.xlu0 %v3890_v29, %s3639_s20 }
 0x933   : > { %1635 = vmax.xlane.f32.xlu0 %v1634_v25  ;;  %1632 = vmax.xlane.f32.xlu1 %v1631_v26 }
 0x937   : > { %1638 = vmax.xlane.f32.xlu0 %v1637_v30 }
 0x987   : > { %v1415_v31 = vpop.xlane.xlu0 %1414 }
 0x988   : > { %3519 = vrcp.f32 %v1415_v31 }
 0x98b   : > { %v1421_v32 = vpop.xlane.xlu1 %1420  ;;  %v1418_v34 = vpop.xlane.xlu0 %1417 }
 0x98c   : > { %3521 = vrcp.f32 %v1421_v32 }
 0x98d   : > { %3523 = vrcp.f32 %v1418_v34 }
 0x98f   : > { %v1431_v36 = vpop.permute.xlu0 %1430  ;;  %v1433_v37 = vpop.permute.xlu1 %1432 }
 0x990   : > { %3284 = vmatprep.subr.bf16.mxu1 %v1431_v36  ;;  %v1442_v39 = vsel %vm968_vm1, %v1433_v37, 0 }
 0x991   : > { %3285 = vmatpush3.bf16.msra.mxu1 %v1431_v36 }
 0x992   : > { %3332 = vmatprep.subr.msk.bf16.mxu1 %vm968_vm1, %v1433_v37  ;;  %v3520_v40 = vpop.eup %3519 }
 0x993   : > { %v1425_v46 = vmul.f32 %v3520_v40, %v3514_v43 }
 0x995   : > { %3287 = vmatpush3.bf16.msra.mxu1 %v1442_v39 }
 0x996   : > { %v3522_v41 = vpop.eup %3521  ;;  %3292 = vmatprep.subr.bf16.mxu1 %v3399_v44 }
 0x997   : > { %v3524_v42 = vpop.eup %3523  ;;  %v1427_v45 = vmul.f32 %v3522_v41, %v3518_v19 }
 0x998   : > { %v1426_v47 = vmul.f32 %v3524_v42, %v3516_v18 }
 0x999   : > { %v1429_v48 = vpack.c.bf16 %v1427_v45, %v1427_v45 }
 0x99a   : > { %v1428_v49 = vpack.c.bf16 %v1426_v47, %v1425_v46 }
 0x99c   : > { %3288 = vmatprep.mubr.msk.bf16.mxu1 %vm926_vm2, %v1428_v49  ;;  %v3591_v49 = vld [vmem:[%s3772_s17] sm:$0xff] }
 0x99d   : > { %3289 = vmatmul.mubr.msk.bf16.vlgmr.msra.gmra.mrb[16].mxu1 %vm926_vm2, %v1429_v48  ;;  %v3024_v48 = vld [vmem:[%s4555_s7] ss:$0 sm:$0xff] }
 0x99e   : > { %3293 = vmatpush3.bf16.msra.mxu1 %v3399_v44 }
 0x99f   : > { %3294 = vmatprep.subr.bf16.mxu1 %v3400_v8 }
 0x9a2   : > { %3295 = vmatpush3.bf16.msra.mxu1 %v3400_v8  ;;  %v3409_v8 = vld [vmem:[%s4558_s10 + $0x20] ss:$16 sps:$4 sm:$0xff]  }
 0x9c0   : > { %v1633_v50 = vpop.xlane.xlu1 %1632  ;;  %v1636_v52 = vpop.xlane.xlu0 %1635 }
 0x9c1   : > { %v1641_v54 = vsub.f32 %v1621_v23, %v1636_v52  ;;  %v1640_v55 = vsub.f32 %v1618_v22, %v1633_v50  ;;  %v3401_v23 = vld [vmem:[#allocation2 + $0x30] sm:$0xff]  }
 0x9c3   : > { %v1645_v57 = vmul.f32 1.442695, %v1641_v54  ;;  %v1643_v60 = vmul.f32 1.442695, %v1640_v55  ;;  %v3592_v54 = vld [vmem:[%s3772_s17 + $0x8] sm:$0xff] }
 0x9c4   : > { %v1639_v58 = vpop.xlane.xlu0 %1638 }
 0x9c5   : > { %v1642_v59 = vsub.f32 %v1626_v24, %v1639_v58  ;;  %3525 = vpow2.f32 %v1645_v57  ;;  %v3402_v24 = vld [vmem:[#allocation2 + $0x38] sm:$0xff]   ;;  %v3593_v58 = vld [vmem:[%s3772_s17 + $0x10] sm:$0xff] }
 0x9c7   : > { %v1647_v61 = vmul.f32 1.442695, %v1642_v59 }
 0x9c9   : > { %3527 = vpow2.f32 %v1647_v61 }
 0x9ca   : > { %3529 = vpow2.f32 %v1643_v60 }
 0x9cf   : > { %v3526_v62 = vpop.eup %3525 }
 0x9d0   : > { %v1652_v63 = vsel %vm926_vm2, %v3526_v62, 0.0 }
 0x9d1   : > { %1653 = vadd.xlane.f32.xlu0 %v1652_v63  ;;  %v3405_v63 = vld [vmem:[%s4558_s10 + $0x4] ss:$16 sps:$4 sm:$0xff]  }
 0x9d2   : > { %2081 = vmatprep.subr.bf16.mxu0 %v3405_v63 }
 0x9d3   : > { %v3528_v0 = vpop.eup %3527 }
 0x9d4   : > { %v1655_v1 = vsel %vm926_vm2, %v3528_v0, 0.0  ;;  %v3530_v4 = vpop.eup %3529 }
 0x9d5   : > { %1656 = vadd.xlane.f32.xlu1 %v1655_v1  ;;  %v1649_v6 = vsel %vm926_vm2, %v3530_v4, 0.0  ;;  %v3408_v1 = vld [vmem:[%s4558_s10 + $0xc] ss:$16 sps:$4 sm:$0xff]  }
 0x9d9   : > { %1650 = vadd.xlane.f32.xlu1 %v1649_v6  ;;  %v3414_v6 = vld [vmem:[%s4558_s10 + $0x2c] ss:$16 sps:$4 sm:$0xff]  }
 0x9e7   : > { %1666 = vrot.lane.b32.xlu0 %v3890_v29, %s3640_s16 }
 0x9ea   : > { %1668 = vrot.lane.b32.xlu1 %v3898_v33, %s3640_s16 }
 0xa5e   : > { %v1654_v9 = vpop.xlane.xlu0 %1653 }
 0xa5f   : > { %3531 = vrcp.f32 %v1654_v9  ;;  %v3412_v9 = vld [vmem:[%s4558_s10 + $0x28] ss:$16 sps:$4 sm:$0xff]  }
 0xa62   : > { %v1657_v10 = vpop.xlane.xlu1 %1656  ;;  %v1667_v11 = vpop.permute.xlu0 %1666 }
 0xa63   : > { %3308 = vmatprep.subr.bf16.mxu1 %v1667_v11 }
 0xa66   : > { %v1651_v12 = vpop.xlane.xlu1 %1650 }
 0xa67   : > { %3533 = vrcp.f32 %v1651_v12 }
 0xa68   : > { %3535 = vrcp.f32 %v1657_v10 }
 0xa69   : > { %v3532_v13 = vpop.eup %3531 }
 0xa6a   : > { %v1662_v16 = vmul.f32 %v3532_v13, %v3526_v62  ;;  %v1669_v19 = vpop.permute.xlu1 %1668  ;;  %v3403_v62 = vld [vmem:[%s4558_s10] ss:$16 sps:$4 sm:$0xff]  }
 0xa6b   : > { %v1678_v21 = vsel %vm968_vm1, %v1669_v19, 0  ;;  %2082 = vmatpush1.bf16.msra.mxu0 %v3403_v62 }
 0xa70   : > { %v3290_v27 = vpop.f32.mrb[16].mxu1 }
 0xa71   : > { %v3534_v38 = vpop.eup %3533  ;;  %v1478_v14 = vpop.f32.mrb[17].mxu1  ;;  %v1493_v18 = vpack.c.bf16 %v3290_v27, %v3290_v27 }
 0xa72   : > { %v3291_v28 = vpop.f32.mrb[18].mxu1  ;;  %v1661_v15 = vmul.f32 %v3534_v38, %v3530_v4  ;;  %v3536_v33 = vpop.eup %3535  ;;  %v3411_v4 = vld [vmem:[%s4558_s10 + $0x24] ss:$16 sps:$4 sm:$0xff]  }
 0xa73   : > { %v1481_v43 = vpop.f32.mrb[19].mxu1  ;;  %v1663_v20 = vmul.f32 %v3536_v33, %v3528_v0  ;;  %v3406_v0 = vld [vmem:[%s4558_s10 + $0x8] ss:$16 sps:$4 sm:$0xff]   ;;  %2083 = vmatprep.subr.bf16.mxu0 %v3411_v4  ;;  %v3415_v33 = vld [vmem:[%s4558_s10 + $0x40] ss:$16 sps:$4 sm:$0xff]  }
 0xa74   : > { %v1492_v29 = vpack.c.bf16 %v1481_v43, %v1478_v14  ;;  %v1664_v17 = vpack.c.bf16 %v1662_v16, %v1661_v15  ;;  %2084 = vmatpush1.bf16.msra.mxu0 %v3409_v8 }
 0xa75   : > { %v1665_v22 = vpack.c.bf16 %v1663_v20, %v1663_v20  ;;  %v3423_v20 = vld [vmem:[%s4558_s10 + $0x64] ss:$16 sps:$4 sm:$0xff]  }
 0xa76   : > { %3296 = vmatprep.mubr.msk.bf16.mxu1 %vm865_vm0, %v1492_v29 }
 0xa77   : > { %3297 = vmatmul.mubr.msk.bf16.vlgmr.msra.gmra.mrb[20].mxu1 %vm865_vm0, %v1493_v18  ;;  %v3420_v18 = vld [vmem:[%s4558_s10 + $0x4c] ss:$16 sps:$4 sm:$0xff]  }
 0xa78   : > { %3309 = vmatpush3.bf16.msra.mxu1 %v1667_v11  ;;  %3312 = vmatprep.mubr.msk.bf16.mxu1 %vm926_vm2, %v1664_v17  ;;  %v3417_v17 = vld [vmem:[%s4558_s10 + $0x44] ss:$16 sps:$4 sm:$0xff]  }
 0xa79   : > { %3335 = vmatprep.subr.msk.bf16.mxu1 %vm968_vm1, %v1669_v19  ;;  %v3418_v19 = vld [vmem:[%s4558_s10 + $0x48] ss:$16 sps:$4 sm:$0xff]   ;;  %2085 = vmatprep.subr.bf16.mxu0 %v3417_v17  ;;  %v3459_v17 = vld [vmem:[%s4560_s12 + $0x50] sm:$0xff]  }
 0xa7a   : > { %2086 = vmatpush1.bf16.msra.mxu0 %v3415_v33  ;;  %v3461_v33 = vld [vmem:[%s4560_s12 + $0x10] sm:$0xff]  }
 0xa7b   : > { %2087 = vmatprep.subr.bf16.mxu0 %v3423_v20  ;;  %v3463_v20 = vld [vmem:[%s4560_s12 + $0x58] sm:$0xff]  }
 0xa7c   : > { %3311 = vmatpush3.bf16.msra.mxu1 %v1678_v21  ;;  %v3426_v21 = vld [vmem:[%s4558_s10 + $0x6c] ss:$16 sps:$4 sm:$0xff]  }
 0xa7d   : > { %3316 = vmatprep.subr.bf16.mxu1 %v3401_v23 }
 0xa7f   : > { %3313 = vmatmul.mubr.msk.bf16.vlgmr.msra.gmra.mrb[24].mxu1 %vm926_vm2, %v1665_v22  ;;  %v3421_v22 = vld [vmem:[%s4558_s10 + $0x60] ss:$16 sps:$4 sm:$0xff]  }
 0xa80   : > { %3317 = vmatpush3.bf16.msra.mxu1 %v3401_v23  ;;  %v3424_v23 = vld [vmem:[%s4558_s10 + $0x68] ss:$16 sps:$4 sm:$0xff]   ;;  %2088 = vmatpush1.bf16.msra.mxu0 %v3421_v22 }
 0xa81   : > { %3318 = vmatprep.subr.bf16.mxu1 %v3402_v24  ;;  %v3465_v22 = vld [vmem:[%s4560_s12 + $0x18] sm:$0xff]  }
 0xa84   : > { %3319 = vmatpush3.bf16.msra.mxu1 %v3402_v24  ;;  %v3429_v24 = vld [vmem:[%s4558_s10 + $0x84] ss:$16 sps:$4 sm:$0xff]  }
 0xa85   : > { %2132 = vmatprep.subr.bf16.mxu1 %v3408_v1  ;;  %2089 = vmatprep.subr.bf16.mxu0 %v3429_v24  ;;  %v3026_v1 = vld [vmem:[%s4557_s9] ss:$0 sm:$0xff] }
 0xa86   : > { %v3467_v24 = vld [vmem:[%s4560_s12 + $0x60] sm:$0xff]  }
 0xb4a   : > { %v3298_v25 = vpop.f32.mrb[20].mxu1 }
 0xb4b   : > { %v1562_v26 = vadd.f32 %v3298_v25, %v4004_v51  ;;  %v1546_v30 = vpop.f32.mrb[21].mxu1  ;;  %v3432_v25 = vld [vmem:[%s4558_s10 + $0x8c] ss:$16 sps:$4 sm:$0xff]  }
 0xb4c   : > { %v1560_v31 = vadd.f32 %v1546_v30, %v4007_v53  ;;  %v3299_v32 = vpop.f32.mrb[22].mxu1  ;;  %v3430_v30 = vld [vmem:[%s4558_s10 + $0x88] ss:$16 sps:$4 sm:$0xff]  }
 0xb4d   : > { %v1549_v34 = vpop.f32.mrb[23].mxu1  ;;  %v3438_v32 = vld [vmem:[%s4558_s10 + $0xac] ss:$16 sps:$4 sm:$0xff]  }
 0xb4e   : > { %v1561_v36 = vadd.f32 %v1549_v34, %v4010_v56  ;;  %v3433_v34 = vld [vmem:[%s4558_s10 + $0xa0] ss:$16 sps:$4 sm:$0xff]  }
 0xb52   : > { %v3314_v37 = vpop.f32.mrb[24].mxu1 }
 0xb53   : > { %v1714_v44 = vpop.f32.mrb[25].mxu1  ;;  %v1729_v42 = vpack.c.bf16 %v3314_v37, %v3314_v37  ;;  %v3441_v37 = vld [vmem:[%s4558_s10 + $0xc4] ss:$16 sps:$4 sm:$0xff]  }
 0xb54   : > { %v3315_v39 = vpop.f32.mrb[26].mxu1 }
 0xb55   : > { %v1717_v40 = vpop.f32.mrb[27].mxu1  ;;  %v3439_v39 = vld [vmem:[%s4558_s10 + $0xc0] ss:$16 sps:$4 sm:$0xff]  }
 0xb56   : > { %v1728_v41 = vpack.c.bf16 %v1717_v40, %v1714_v44  ;;  %v3444_v44 = vld [vmem:[%s4558_s10 + $0xcc] ss:$16 sps:$4 sm:$0xff]   ;;  %v3442_v40 = vld [vmem:[%s4558_s10 + $0xc8] ss:$16 sps:$4 sm:$0xff]  }
 0xb58   : > { %3320 = vmatprep.mubr.msk.bf16.mxu1 %vm865_vm0, %v1728_v41  ;;  %v3447_v41 = vld [vmem:[%s4558_s10 + $0xe4] ss:$16 sps:$4 sm:$0xff]  }
 0xb59   : > { %3321 = vmatmul.mubr.msk.bf16.vlgmr.msra.gmra.mrb[28].mxu1 %vm865_vm0, %v1729_v42  ;;  %v3450_v42 = vld [vmem:[%s4558_s10 + $0xec] ss:$16 sps:$4 sm:$0xff]  }
 0xb5a   : > { %2164 = vmatprep.mubr.bf16.mxu1 %v3637_v35  ;;  %2133 = vmatpush1.bf16.msra.mxu1 %v3406_v0 }
 0xb5b   : > { %2134 = vmatprep.subr.bf16.mxu1 %v3414_v6 }
 0xb5e   : > { %2135 = vmatpush1.bf16.msra.mxu1 %v3412_v9 }
 0xb5f   : > { %2136 = vmatprep.subr.bf16.mxu1 %v3420_v18  ;;  %v3460_v18 = vld [vmem:[%s4560_s12 + $0xd0] sm:$0xff]  }
 0xb62   : > { %2137 = vmatpush1.bf16.msra.mxu1 %v3418_v19  ;;  %v3462_v19 = vld [vmem:[%s4560_s12 + $0x90] sm:$0xff]  }
 0xb63   : > { %2138 = vmatprep.subr.bf16.mxu1 %v3426_v21  ;;  %v3464_v21 = vld [vmem:[%s4560_s12 + $0xd8] sm:$0xff]  }
 0xb66   : > { %2139 = vmatpush1.bf16.msra.mxu1 %v3424_v23  ;;  %v3466_v23 = vld [vmem:[%s4560_s12 + $0x98] sm:$0xff]  }
 0xb67   : > { %2140 = vmatprep.subr.bf16.mxu1 %v3432_v25  ;;  %v3468_v25 = vld [vmem:[%s4560_s12 + $0xe0] sm:$0xff]  }
 0xb6a   : > { %2141 = vmatpush1.bf16.msra.mxu1 %v3430_v30  ;;  %v3470_v30 = vld [vmem:[%s4560_s12 + $0xa0] sm:$0xff]  }
 0xb6b   : > { %2142 = vmatprep.subr.bf16.mxu1 %v3438_v32  ;;  %v3472_v32 = vld [vmem:[%s4560_s12 + $0xe8] sm:$0xff]  }
 0xc2c   : > { %v3322_v51 = vpop.f32.mrb[28].mxu1 }
 0xc2d   : > { %v1798_v53 = vadd.f32 %v3322_v51, %v1562_v26  ;;  %v1782_v45 = vpop.f32.mrb[29].mxu1  ;;  %v3427_v26 = vld [vmem:[%s4558_s10 + $0x80] ss:$16 sps:$4 sm:$0xff]  }
 0xc2e   : > { %v1796_v46 = vadd.f32 %v1782_v45, %v1560_v31  ;;  %v3323_v56 = vpop.f32.mrb[30].mxu1  ;;  %2090 = vmatpush1.bf16.msra.mxu0 %v3427_v26  ;;  %v3435_v31 = vld [vmem:[%s4558_s10 + $0xa4] ss:$16 sps:$4 sm:$0xff]   ;;  %v3445_v51 = vld [vmem:[%s4558_s10 + $0xe0] ss:$16 sps:$4 sm:$0xff]  }
 0xc2f   : > { %v1785_v47 = vpop.f32.mrb[31].mxu1  ;;  %v1801_v59 = vadd.f32 %v3593_v58, %v1798_v53  ;;  %2091 = vmatprep.subr.bf16.mxu0 %v3435_v31  ;;  %v3448_v53 = vld [vmem:[%s4558_s10 + $0xe8] ss:$16 sps:$4 sm:$0xff]   ;;  %v3025_v58 = vld [vmem:[%s4556_s8] ss:$0 sm:$0xff] }
 0xc30   : > { %v1799_v50 = vadd.f32 %v3591_v49, %v1796_v46  ;;  %v1797_v52 = vadd.f32 %v1785_v47, %v1561_v36  ;;  %v3436_v36 = vld [vmem:[%s4558_s10 + $0xa8] ss:$16 sps:$4 sm:$0xff]   ;;  %v3469_v26 = vld [vmem:[%s4560_s12 + $0x20] sm:$0xff]  }
 0xc31   : > { %v4066_v61 = vadd.f32 %v3024_v48, %v1801_v59  ;;  %2143 = vmatpush1.bf16.msra.mxu1 %v3436_v36  ;;  %v3471_v31 = vld [vmem:[%s4560_s12 + $0x68] sm:$0xff]  }
 0xc32   : > { %v1800_v55 = vadd.f32 %v3592_v54, %v1797_v52  ;;  %v4059_v57 = vadd.f32 %v3024_v48, %v1799_v50  ;;  %2092 = vmatpush1.bf16.msra.mxu0 %v3433_v34  ;;  %2144 = vmatprep.subr.bf16.mxu1 %v3444_v44  ;;  %v3473_v34 = vld [vmem:[%s4560_s12 + $0x28] sm:$0xff]   ;;  %v3476_v44 = vld [vmem:[%s4560_s12 + $0xf0] sm:$0xff]  }
 0xc33   : > { %2093 = vmatprep.subr.bf16.mxu0 %v3441_v37  ;;  %v3474_v36 = vld [vmem:[%s4560_s12 + $0xa8] sm:$0xff]   ;;  %v3475_v37 = vld [vmem:[%s4560_s12 + $0x70] sm:$0xff]  }
 0xc34   : > { %1814 = vadd.xlane.f32.xlu1 %v4059_v57  ;;  %v4063_v60 = vadd.f32 %v3024_v48, %v1800_v55 }
 0xc35   : > { %2145 = vmatpush1.bf16.msra.mxu1 %v3442_v40  ;;  %v3478_v40 = vld [vmem:[%s4560_s12 + $0xb0] sm:$0xff]  }
 0xc36   : > { %1816 = vadd.xlane.f32.xlu0 %v4063_v60  ;;  %2094 = vmatpush1.bf16.msra.mxu0 %v3439_v39  ;;  %v3477_v39 = vld [vmem:[%s4560_s12 + $0x30] sm:$0xff]  }
 0xc37   : > { %2095 = vmatprep.subr.bf16.mxu0 %v3447_v41  ;;  %2146 = vmatprep.subr.bf16.mxu1 %v3450_v42  ;;  %v3479_v41 = vld [vmem:[%s4560_s12 + $0x78] sm:$0xff]  }
 0xc38   : > { %v3480_v42 = vld [vmem:[%s4560_s12 + $0xf8] sm:$0xff]  }
 0xc39   : > { %2147 = vmatpush1.bf16.msra.mxu1 %v3448_v53  ;;  %v3482_v53 = vld [vmem:[%s4560_s12 + $0xb8] sm:$0xff]  }
 0xc3a   : > { %1818 = vadd.xlane.f32.xlu0 %v4066_v61  ;;  %2096 = vmatpush1.bf16.msra.mxu0 %v3445_v51  ;;  %v3481_v51 = vld [vmem:[%s4560_s12 + $0x38] sm:$0xff]  }
 0xcc1   : > { %v1815_v10 = vpop.xlane.xlu1 %1814 }
 0xcc2   : > { %v1820_v11 = vmul.f32 0.0078125, %v1815_v10 }
 0xcc3   : > { %v1817_v12 = vpop.xlane.xlu0 %1816 }
 0xcc4   : > { %v4094_v13 = vsub.f32 %v4059_v57, %v1820_v11  ;;  %v1821_v27 = vmul.f32 0.0078125, %v1817_v12 }
 0xcc6   : > { %v4097_v38 = vsub.f32 %v4063_v60, %v1821_v27  ;;  %v1826_v14 = vmul.f32 %v4094_v13, %v4094_v13 }
 0xcc7   : > { %v1819_v28 = vpop.xlane.xlu0 %1818 }
 0xcc8   : > { %v1822_v15 = vmul.f32 0.0078125, %v1819_v28  ;;  %1829 = vadd.xlane.f32.xlu1 %v1826_v14  ;;  %v1827_v16 = vmul.f32 %v4097_v38, %v4097_v38  ;;  %v3452_v14 = vld [vmem:[%s4560_s12 + $0xc0] sm:$0xff]  }
 0xcc9   : > { %v3453_v28 = vld [vmem:[%s4560_s12] sm:$0xff]   ;;  %3180 = vmatprep.subr.bf16.mxu1 %v3452_v14 }
 0xcca   : > { %v4104_v43 = vsub.f32 %v4066_v61, %v1822_v15  ;;  %1831 = vadd.xlane.f32.xlu0 %v1827_v16  ;;  %v3455_v15 = vld [vmem:[%s4560_s12 + $0x48] sm:$0xff]  }
 0xccb   : > { %v3456_v16 = vld [vmem:[%s4560_s12 + $0xc8] sm:$0xff]  }
 0xccc   : > { %v1828_v29 = vmul.f32 %v4104_v43, %v4104_v43 }
 0xcce   : > { %1833 = vadd.xlane.f32.xlu1 %v1828_v29  ;;  %v3458_v29 = vld [vmem:[%s4560_s12 + $0x88] sm:$0xff]  }
 0xd55   : > { %v1830_v45 = vpop.xlane.xlu1 %1829 }
 0xd56   : > { %v1835_v46 = vmul.f32 0.0078125, %v1830_v45  ;;  %v1899_v45 = vld [vmem:[%s4559_s11] sm:$0xf] }
 0xd57   : > { %v1832_v56 = vpop.xlane.xlu0 %1831 }
 0xd58   : > { %v1838_v47 = vadd.f32 1e-05, %v1835_v46  ;;  %v1836_v48 = vmul.f32 0.0078125, %v1832_v56  ;;  %v1915_v46 = vsub.s32 3, %v3872_v2  ;;  %v4293_v56 = vrot.slane %v1899_v45, %v594_v3 }
 0xd5a   : > { %3537 = vrsqrt.f32 %v1838_v47  ;;  %v1839_v49 = vadd.f32 1e-05, %v1836_v48  ;;  %v4297_v47 = vrot.slane %v1899_v45, %v602_v7  ;;  %v4301_v48 = vrot.slane %v1899_v45, %v598_v5 }
 0xd5b   : > { %v1834_v50 = vpop.xlane.xlu1 %1833 }
 0xd5c   : > { %3539 = vrsqrt.f32 %v1839_v49  ;;  %v1837_v52 = vmul.f32 0.0078125, %v1834_v50  ;;  %v4303_v49 = vrot.slane %v1899_v45, %v1915_v46 }
 0xd5e   : > { %v1840_v54 = vadd.f32 1e-05, %v1837_v52 }
 0xd60   : > { %3541 = vrsqrt.f32 %v1840_v54 }
 0xd64   : > { %v3538_v55 = vpop.eup %3537 }
 0xd65   : > { %v1844_v59 = vmul.f32 %v3538_v55, %v4094_v13 }
 0xd66   : > { %v3540_v62 = vpop.eup %3539 }
 0xd67   : > { %v1845_v63 = vmul.f32 %v3540_v62, %v4097_v38  ;;  %v1853_v0 = vmul.f32 %v3025_v58, %v1844_v59  ;;  %v3451_v38 = vld [vmem:[%s4560_s12 + $0x40] sm:$0xff]  }
 0xd68   : > { %3152 = vmatprep.subr.bf16.mxu0 %v3451_v38 }
 0xd69   : > { %v1854_v4 = vmul.f32 %v3025_v58, %v1845_v63  ;;  %v1862_v8 = vadd.f32 %v3026_v1, %v1853_v0 }
 0xd6a   : > { %v3542_v6 = vpop.eup %3541 }
 0xd6b   : > { %v1863_v9 = vadd.f32 %v3026_v1, %v1854_v4  ;;  %v1846_v10 = vmul.f32 %v3542_v6, %v4104_v43  ;;  %v3457_v43 = vld [vmem:[%s4560_s12 + $0x8] sm:$0xff]  }
 0xd6d   : > { %v1865_v11 = vpack.c.bf16 %v1863_v9, %v1862_v8  ;;  %v1855_v12 = vmul.f32 %v3025_v58, %v1846_v10 }
 0xd6f   : > { %2114 = vmatmul.mubr.bf16.vlgmr.msra.gmra.mrb[28].mxu0 %v1865_v11  ;;  %2165 = vmatmul.mubr.bf16.vlgmr.msra.gmra.mrb[32].mxu1 %v1865_v11  ;;  %v1864_v13 = vadd.f32 %v3026_v1, %v1855_v12 }
 0xd70   : > { %2123 = vmatprep.mubr.bf16.mxu0 %v3637_v35  ;;  %2174 = vmatprep.mubr.bf16.mxu1 %v3637_v35  ;;  %v3454_v35 = vld [vmem:[%s4560_s12 + $0x80] sm:$0xff]  }
 0xd71   : > { %v1866_v27 = vpack.c.bf16 %v1864_v13, %v1864_v13  ;;  %3153 = vmatpush3.bf16.msra.mxu0 %v3453_v28  ;;  %3181 = vmatpush3.bf16.msra.mxu1 %v3454_v35 }
 0xd72   : > { %3154 = vmatprep.subr.bf16.mxu0 %v3455_v15  ;;  %3182 = vmatprep.subr.bf16.mxu1 %v3456_v16 }
 0xd75   : > { %3155 = vmatpush3.bf16.msra.mxu0 %v3457_v43  ;;  %3183 = vmatpush3.bf16.msra.mxu1 %v3458_v29 }
 0xd76   : > { %3156 = vmatprep.subr.bf16.mxu0 %v3459_v17  ;;  %3184 = vmatprep.subr.bf16.mxu1 %v3460_v18 }
 0xd77   : > { %2124 = vmatmul.mubr.bf16.gmra.mrb[32].mxu0 %v1866_v27  ;;  %2175 = vmatmul.mubr.bf16.gmra.mrb[36].mxu1 %v1866_v27 }
 0xd79   : > { %3157 = vmatpush3.bf16.msra.mxu0 %v3461_v33  ;;  %3185 = vmatpush3.bf16.msra.mxu1 %v3462_v19 }
 0xd7a   : > { %3158 = vmatprep.subr.bf16.mxu0 %v3463_v20  ;;  %3186 = vmatprep.subr.bf16.mxu1 %v3464_v21 }
 0xd7d   : > { %3159 = vmatpush3.bf16.msra.mxu0 %v3465_v22  ;;  %3187 = vmatpush3.bf16.msra.mxu1 %v3466_v23 }
 0xd7e   : > { %3160 = vmatprep.subr.bf16.mxu0 %v3467_v24  ;;  %3188 = vmatprep.subr.bf16.mxu1 %v3468_v25 }
 0xd81   : > { %3161 = vmatpush3.bf16.msra.mxu0 %v3469_v26  ;;  %3189 = vmatpush3.bf16.msra.mxu1 %v3470_v30 }
 0xd82   : > { %3162 = vmatprep.subr.bf16.mxu0 %v3471_v31  ;;  %3190 = vmatprep.subr.bf16.mxu1 %v3472_v32 }
 0xd85   : > { %3163 = vmatpush3.bf16.msra.mxu0 %v3473_v34  ;;  %3191 = vmatpush3.bf16.msra.mxu1 %v3474_v36 }
 0xd86   : > { %3164 = vmatprep.subr.bf16.mxu0 %v3475_v37  ;;  %3192 = vmatprep.subr.bf16.mxu1 %v3476_v44 }
 0xd89   : > { %3165 = vmatpush3.bf16.msra.mxu0 %v3477_v39  ;;  %3193 = vmatpush3.bf16.msra.mxu1 %v3478_v40 }
 0xd8a   : > { %3166 = vmatprep.subr.bf16.mxu0 %v3479_v41  ;;  %3194 = vmatprep.subr.bf16.mxu1 %v3480_v42  ;;  %v3641_v42 = vmov -1.0  }
 0xd8d   : > { %3167 = vmatpush3.bf16.msra.mxu0 %v3481_v51  ;;  %3195 = vmatpush3.bf16.msra.mxu1 %v3482_v53 }
 0xe42   : > { %v2115_v50 = vpop.f32.mrb[28].mxu0  ;;  %v2166_v52 = vpop.f32.mrb[32].mxu1 }
 0xe43   : > { %v2116_v54 = vadd.f32 %v2115_v50, %v4293_v56  ;;  %v2167_v55 = vadd.f32 %v2166_v52, %v4297_v47  ;;  %v2117_v58 = vpop.f32.mrb[29].mxu0  ;;  %v2168_v59 = vpop.f32.mrb[33].mxu1 }
 0xe44   : > { %v2118_v3 = vadd.f32 %v2117_v58, %v4301_v48  ;;  %v4309_v62 = vadd.f32 %v2168_v59, %v4303_v49  ;;  %v2119_v7 = vpop.f32.mrb[30].mxu0  ;;  %v2170_v63 = vpop.f32.mrb[34].mxu1 }
 0xe45   : > { %v2183_v2 = vmul.f32 0.70710677, %v2116_v54  ;;  %v2185_v5 = vmul.f32 0.70710677, %v2167_v55  ;;  %v2121_v9 = vpop.f32.mrb[31].mxu0  ;;  %v2172_v13 = vpop.f32.mrb[35].mxu1  ;;  %v2120_v17 = vadd.f32 %v2119_v7, %v4293_v56  ;;  %v4327_v23 = vadd.f32 %v2170_v63, %v4297_v47 }
 0xe46   : > { %v2184_v0 = vmul.f32 0.70710677, %v2118_v3  ;;  %v4312_v8 = vmul.f32 0.70710677, %v4309_v62  ;;  %v4330_v30 = vadd.f32 %v2121_v9, %v4301_v48  ;;  %v4336_v36 = vmul.f32 0.5, %v2116_v54 }
 0xe47   : > { %v2219_v1 = vand.u32 2147483647, %v2183_v2  ;;  %v2221_v4 = vand.u32 2147483647, %v2185_v5  ;;  %vm2195_vm3 = vcmp.ge.f32.partialorder %v2183_v2, 0.0  ;;  %vm2197_vm4 = vcmp.ge.f32.partialorder %v2185_v5, 0.0 }
 0xe48   : > { %v2220_v6 = vand.u32 2147483647, %v2184_v0  ;;  %v2222_v35 = vand.u32 2147483647, %v4312_v8  ;;  %v4324_v22 = vmul.f32 0.70710677, %v2120_v17 }
 0xe49   : > { %v2231_v10 = vmul.f32 0.3275911, %v2219_v1  ;;  %v2233_v11 = vmul.f32 0.3275911, %v2221_v4  ;;  %v2387_v43 = vsub.f32 0.0, %v2219_v1  ;;  %v2389_v21 = vsub.f32 0.0, %v2221_v4 }
 0xe4a   : > { %v2232_v12 = vmul.f32 0.3275911, %v2220_v6  ;;  %v4314_v14 = vpop.f32.mrb[32].mxu0  ;;  %v4316_v28 = vpop.f32.mrb[36].mxu1  ;;  %v2234_v19 = vmul.f32 0.3275911, %v2222_v35 }
 0xe4b   : > { %v2243_v27 = vadd.f32 1.0, %v2231_v10  ;;  %v2245_v38 = vadd.f32 1.0, %v2233_v11  ;;  %v4319_v15 = vpop.f32.mrb[33].mxu0  ;;  %v4321_v16 = vpop.f32.mrb[37].mxu1  ;;  %v2388_v25 = vsub.f32 0.0, %v2220_v6  ;;  %v2399_v31 = vmul.f32 %v2387_v43, %v2219_v1 }
 0xe4c   : > { %v2244_v29 = vadd.f32 1.0, %v2232_v12  ;;  %v2129_v18 = vpop.f32.mrb[34].mxu0  ;;  %v2180_v33 = vpop.f32.mrb[38].mxu1  ;;  %v2246_v26 = vadd.f32 1.0, %v2234_v19  ;;  %v2223_v32 = vand.u32 2147483647, %v4324_v22  ;;  %v2401_v39 = vmul.f32 %v2389_v21, %v2221_v4 }
 0xe4d   : > { %3543 = vrcp.f32 %v2243_v27  ;;  %v2130_v20 = vpop.f32.mrb[35].mxu0  ;;  %v2181_v24 = vpop.f32.mrb[39].mxu1  ;;  %v4334_v34 = vmul.f32 0.70710677, %v4327_v23  ;;  %v4338_v37 = vmul.f32 0.5, %v2167_v55  ;;  %vm2196_vm5 = vcmp.ge.f32.partialorder %v2184_v0, 0.0 }
 0xe4e   : > { %3545 = vrcp.f32 %v2245_v38  ;;  %v4340_v44 = vmul.f32 0.5, %v2118_v3  ;;  %v2390_v40 = vsub.f32 0.0, %v2222_v35  ;;  %v2235_v41 = vmul.f32 0.3275911, %v2223_v32 }
 0xe4f   : > { %3547 = vrcp.f32 %v2244_v29  ;;  %v4344_v51 = vsel %vm2195_vm3, 1.0, %v3641_v42  ;;  %v4348_v53 = vsel %vm2197_vm4, 1.0, %v3641_v42  ;;  %v2225_v45 = vand.u32 2147483647, %v4334_v34 }
 0xe50   : > { %3549 = vrcp.f32 %v2246_v26  ;;  %v4352_v46 = vmul.f32 0.70710677, %v4330_v30  ;;  %v2411_v50 = vmul.f32 1.442695, %v2399_v31  ;;  %v2400_v52 = vmul.f32 %v2388_v25, %v2220_v6 }
 0xe51   : > { %v2247_v54 = vadd.f32 1.0, %v2235_v41  ;;  %v4355_v55 = vadd.f32 %v2172_v13, %v4303_v49  ;;  %v4358_v58 = vsel %vm2196_vm5, 1.0, %v3641_v42  ;;  %vm2198_vm6 = vcmp.ge.f32.partialorder %v4312_v8, 0.0 }
 0xe52   : > { %v2237_v59 = vmul.f32 0.3275911, %v2225_v45  ;;  %v4362_v3 = vand.u32 2147483647, %v4352_v46  ;;  %v2415_v63 = vmul.f32 1.442695, %v2401_v39  ;;  %v2402_v2 = vmul.f32 %v2390_v40, %v2222_v35 }
 0xe53   : > { %3551 = vrcp.f32 %v2247_v54  ;;  %v4367_v5 = vmul.f32 0.70710677, %v4355_v55  ;;  %v2391_v4 = vsub.f32 0.0, %v2223_v32  ;;  %v2413_v11 = vmul.f32 1.442695, %v2400_v52 }
 0xe54   : > { %v2249_v6 = vadd.f32 1.0, %v2237_v59  ;;  %v2236_v9 = vmul.f32 0.3275911, %v4362_v3  ;;  %3553 = vpow2.f32 %v2411_v50  ;;  %v4377_v12 = vsel %vm2198_vm6, 1.0, %v3641_v42 }
 0xe55   : > { %v4379_v27 = vmul.f32 0.5, %v2120_v17  ;;  %vm2199_vm7 = vcmp.ge.f32.partialorder %v4324_v22, 0.0  ;;  %v4385_v29 = vand.u32 2147483647, %v4367_v5  ;;  %v2417_v33 = vmul.f32 1.442695, %v2402_v2 }
 0xe56   : > { %3555 = vrcp.f32 %v2249_v6  ;;  %v2248_v38 = vadd.f32 1.0, %v2236_v9  ;;  %v2403_v19 = vmul.f32 %v2391_v4, %v2223_v32  ;;  %v2393_v21 = vsub.f32 0.0, %v2225_v45 }
 0xe57   : > { %v4364_v7 = vpop.eup %3543  ;;  %3557 = vpow2.f32 %v2415_v63  ;;  %v2238_v24 = vmul.f32 0.3275911, %v4385_v29  ;;  %v4397_v40 = vsel %vm2199_vm7, 1.0, %v3641_v42  ;;  %v4401_v41 = vadd.f32 %v4314_v14, %v4293_v56 }
 0xe58   : > { %v4369_v0 = vpop.eup %3545  ;;  %v2279_v1 = vmul.f32 1.0614054, %v4364_v7  ;;  %3559 = vrcp.f32 %v2248_v38  ;;  %v4406_v59 = vmul.f32 0.5, %v4327_v23  ;;  %v2419_v22 = vmul.f32 1.442695, %v2403_v19 }
 0xe59   : > { %v2281_v10 = vmul.f32 1.0614054, %v4369_v0  ;;  %v4381_v35 = vpop.eup %3547  ;;  %3561 = vpow2.f32 %v2413_v11  ;;  %v2250_v32 = vadd.f32 1.0, %v2238_v24  ;;  %v2392_v11 = vsub.f32 0.0, %v4362_v3 }
 0xe5a   : > { %v2291_v13 = vadd.f32 -1.4531521, %v2279_v1  ;;  %v2280_v8 = vmul.f32 1.0614054, %v4381_v35  ;;  %v4389_v20 = vpop.eup %3549  ;;  %v2405_v1 = vmul.f32 %v2393_v21, %v2225_v45  ;;  %v4415_v23 = vmul.f32 0.70710677, %v4401_v41 }
 0xe5b   : > { %v2293_v43 = vadd.f32 -1.4531521, %v2281_v10  ;;  %v2282_v31 = vmul.f32 1.0614054, %v4389_v20  ;;  %3563 = vrcp.f32 %v2250_v32  ;;  %vm2201_vm8 = vcmp.ge.f32.partialorder %v4334_v34, 0.0 }
 0xe5c   : > { %v2303_v18 = vmul.f32 %v4364_v7, %v2291_v13  ;;  %v2292_v26 = vadd.f32 -1.4531521, %v2280_v8  ;;  %3565 = vpow2.f32 %v2417_v33  ;;  %v2423_v21 = vmul.f32 1.442695, %v2405_v1 }
 0xe5d   : > { %v2305_v17 = vmul.f32 %v4369_v0, %v2293_v43  ;;  %v2294_v54 = vadd.f32 -1.4531521, %v2282_v31  ;;  %v4408_v63 = vpop.eup %3551  ;;  %v2394_v33 = vsub.f32 0.0, %v4385_v29  ;;  %3567 = vpow2.f32 %v2419_v22 }
 0xe5e   : > { %v2315_v25 = vadd.f32 1.4214138, %v2303_v18  ;;  %v2304_v52 = vmul.f32 %v4381_v35, %v2292_v26  ;;  %v2283_v14 = vmul.f32 1.0614054, %v4408_v63  ;;  %v3554_v9 = vpop.eup %3553  ;;  %3569 = vpow2.f32 %v2423_v21 }
 0xe5f   : > { %v2317_v39 = vadd.f32 1.4214138, %v2305_v17  ;;  %v2306_v56 = vmul.f32 %v4389_v20, %v2294_v54  ;;  %v4430_v54 = vand.u32 2147483647, %v4415_v23  ;;  %vm2200_vm9 = vcmp.ge.f32.partialorder %v4352_v46, 0.0 }
 0xe60   : > { %v2327_v50 = vmul.f32 %v4364_v7, %v2315_v25  ;;  %v2316_v6 = vadd.f32 1.4214138, %v2304_v52  ;;  %v4417_v13 = vpop.eup %3555  ;;  %v2295_v18 = vadd.f32 -1.4531521, %v2283_v14  ;;  %v2404_v52 = vmul.f32 %v2392_v11, %v4362_v3 }
 0xe61   : > { %v2329_v2 = vmul.f32 %v4369_v0, %v2317_v39  ;;  %v2318_v43 = vadd.f32 1.4214138, %v2306_v56  ;;  %v3558_v8 = vpop.eup %3557  ;;  %v2285_v17 = vmul.f32 1.0614054, %v4417_v13  ;;  %vm2202_vm10 = vcmp.ge.f32.partialorder %v4367_v5, 0.0 }
 0xe62   : > { %v2339_v4 = vadd.f32 -0.28449672, %v2327_v50  ;;  %v2328_v45 = vmul.f32 %v4381_v35, %v2316_v6  ;;  %v2307_v31 = vmul.f32 %v4408_v63, %v2295_v18  ;;  %v4426_v39 = vpop.eup %3559  ;;  %vm2203_vm11 = vcmp.ge.f32.partialorder %v4415_v23, 0.0 }
 0xe63   : > { %v2341_v10 = vadd.f32 -0.28449672, %v2329_v2  ;;  %v2330_v26 = vmul.f32 %v4389_v20, %v2318_v43  ;;  %v2297_v50 = vadd.f32 -1.4531521, %v2285_v17  ;;  %v3562_v2 = vpop.eup %3561  ;;  %v2406_v43 = vmul.f32 %v2394_v33, %v4385_v29 }
 0xe64   : > { %v2351_v38 = vmul.f32 %v4364_v7, %v2339_v4  ;;  %v2340_v25 = vadd.f32 -0.28449672, %v2328_v45  ;;  %v2319_v56 = vadd.f32 1.4214138, %v2307_v31  ;;  %v2421_v17 = vmul.f32 1.442695, %v2404_v52 }
 0xe65   : > { %v2353_v19 = vmul.f32 %v4369_v0, %v2341_v10  ;;  %v2342_v6 = vadd.f32 -0.28449672, %v2330_v26  ;;  %v2309_v10 = vmul.f32 %v4417_v13, %v2297_v50  ;;  %v4440_v18 = vpop.eup %3563  ;;  %v2425_v52 = vmul.f32 1.442695, %v2406_v43 }
 0xe66   : > { %v2363_v24 = vadd.f32 0.2548296, %v2351_v38  ;;  %v2352_v4 = vmul.f32 %v4381_v35, %v2340_v25  ;;  %v2284_v38 = vmul.f32 1.0614054, %v4426_v39  ;;  %v2331_v11 = vmul.f32 %v4408_v63, %v2319_v56  ;;  %v3566_v26 = vpop.eup %3565 }
 0xe67   : > { %v2365_v32 = vadd.f32 0.2548296, %v2353_v19  ;;  %v2354_v3 = vmul.f32 %v4389_v20, %v2342_v6  ;;  %v2239_v25 = vmul.f32 0.3275911, %v4430_v54  ;;  %v2286_v29 = vmul.f32 1.0614054, %v4440_v18 }
 0xe68   : > { %v2375_v1 = vmul.f32 %v4364_v7, %v2363_v24  ;;  %v2364_v45 = vadd.f32 0.2548296, %v2352_v4  ;;  %v2321_v7 = vadd.f32 1.4214138, %v2309_v10  ;;  %v2296_v19 = vadd.f32 -1.4531521, %v2284_v38 }
 0xe69   : > { %v2377_v14 = vmul.f32 %v4369_v0, %v2365_v32  ;;  %v2343_v22 = vadd.f32 -0.28449672, %v2331_v11  ;;  %v2366_v50 = vadd.f32 0.2548296, %v2354_v3  ;;  %3571 = vpow2.f32 %v2421_v17 }
 0xe6a   : > { %v2435_v24 = vmul.f32 %v3554_v9, %v2375_v1  ;;  %v2333_v31 = vmul.f32 %v4417_v13, %v2321_v7  ;;  %v2308_v32 = vmul.f32 %v4426_v39, %v2296_v19  ;;  %v2376_v33 = vmul.f32 %v4381_v35, %v2364_v45  ;;  %v3568_v7 = vpop.eup %3567 }
 0xe6b   : > { %v2437_v0 = vmul.f32 %v3558_v8, %v2377_v14  ;;  %v2355_v21 = vmul.f32 %v4408_v63, %v2343_v22  ;;  %v2298_v1 = vadd.f32 -1.4531521, %v2286_v29  ;;  %v2251_v14 = vadd.f32 1.0, %v2239_v25 }
 0xe6c   : > { %v2345_v9 = vadd.f32 -0.28449672, %v2333_v31  ;;  %v2320_v8 = vadd.f32 1.4214138, %v2308_v32  ;;  %v2447_v4 = vsub.f32 1.0, %v2435_v24  ;;  %v2436_v45 = vmul.f32 %v3562_v2, %v2376_v33  ;;  %v3570_v2 = vpop.eup %3569 }
 0xe6d   : > { %v2449_v6 = vsub.f32 1.0, %v2437_v0  ;;  %v2367_v56 = vadd.f32 0.2548296, %v2355_v21  ;;  %v2310_v35 = vmul.f32 %v4440_v18, %v2298_v1  ;;  %v2378_v3 = vmul.f32 %v4389_v20, %v2366_v50 }
 0xe6e   : > { %v2357_v10 = vmul.f32 %v4417_v13, %v2345_v9  ;;  %v2332_v38 = vmul.f32 %v4426_v39, %v2320_v8  ;;  %v4457_v43 = vadd.f32 %v4316_v28, %v4297_v47  ;;  %3573 = vpow2.f32 %v2425_v52 }
 0xe6f   : > { %v2379_v11 = vmul.f32 %v4408_v63, %v2367_v56  ;;  %v2322_v24 = vadd.f32 1.4214138, %v2310_v35  ;;  %v2459_v0 = vmul.f32 %v2447_v4, %v4344_v51  ;;  %v2461_v22 = vmul.f32 %v2449_v6, %v4348_v53 }
 0xe70   : > { %v2369_v19 = vadd.f32 0.2548296, %v2357_v10  ;;  %v2344_v17 = vadd.f32 -0.28449672, %v2332_v38  ;;  %3575 = vrcp.f32 %v2251_v14  ;;  %v2213_v20 = vsel %vm2201_vm8, 1.0, %v3641_v42 }
 0xe71   : > { %v2439_v25 = vmul.f32 %v3568_v7, %v2379_v11  ;;  %v2334_v28 = vmul.f32 %v4440_v18, %v2322_v24  ;;  %v2448_v31 = vsub.f32 1.0, %v2436_v45  ;;  %v2438_v32 = vmul.f32 %v3566_v26, %v2378_v3 }
 0xe72   : > { %v2381_v63 = vmul.f32 %v4417_v13, %v2369_v19  ;;  %v2356_v47 = vmul.f32 %v4426_v39, %v2344_v17  ;;  %v4468_v51 = vmul.f32 0.70710677, %v4457_v43  ;;  %v2212_v33 = vsel %vm2200_vm9, 1.0, %v3641_v42 }
 0xe73   : > { %v2451_v29 = vsub.f32 1.0, %v2439_v25  ;;  %v2346_v34 = vadd.f32 -0.28449672, %v2334_v28  ;;  %v2483_v21 = vadd.f32 1.0, %v2459_v0  ;;  %v2485_v52 = vadd.f32 1.0, %v2461_v22  ;;  %v3572_v8 = vpop.eup %3571 }
 0xe74   : > { %v2441_v53 = vmul.f32 %v3570_v2, %v2381_v63  ;;  %v2368_v50 = vadd.f32 0.2548296, %v2356_v47  ;;  %v4475_v9 = vand.u32 2147483647, %v4468_v51  ;;  %v4481_v6 = vadd.f32 %v4319_v15, %v4301_v48 }
 0xe75   : > { %v2463_v13 = vmul.f32 %v2451_v29, %v4397_v40  ;;  %v2358_v4 = vmul.f32 %v4440_v18, %v2346_v34  ;;  %v2460_v46 = vmul.f32 %v2448_v31, %v4358_v58  ;;  %v2450_v56 = vsub.f32 1.0, %v2438_v32 }
 0xe76   : > { %v2453_v26 = vsub.f32 1.0, %v2441_v53  ;;  %v2380_v1 = vmul.f32 %v4426_v39, %v2368_v50  ;;  %v2241_v10 = vmul.f32 0.3275911, %v4475_v9  ;;  %v2495_v45 = vmul.f32 %v2483_v21, %v4336_v36 }
 0xe77   : > { %v2487_v14 = vadd.f32 1.0, %v2463_v13  ;;  %v2370_v35 = vadd.f32 0.2548296, %v2358_v4  ;;  %v2497_v39 = vmul.f32 %v2485_v52, %v4338_v37  ;;  %v4491_v19 = vmul.f32 0.70710677, %v4481_v6 }
 0xe78   : > { %v2465_v40 = vmul.f32 %v2453_v26, %v2213_v20  ;;  %v2440_v38 = vmul.f32 %v3572_v8, %v2380_v1  ;;  %v2253_v11 = vadd.f32 1.0, %v2241_v10  ;;  %v3574_v48 = vpop.eup %3573  ;;  %v2484_v24 = vadd.f32 1.0, %v2460_v46 }
 0xe79   : > { %v2499_v3 = vmul.f32 %v2487_v14, %v4379_v27  ;;  %v2382_v58 = vmul.f32 %v4440_v18, %v2370_v35  ;;  %v2462_v0 = vmul.f32 %v2450_v56, %v4377_v12  ;;  %v2476_v2 = vmul.f32 0.5, %v4330_v30 }
 0xe7a   : > { %v2489_v15 = vadd.f32 1.0, %v2465_v40  ;;  %v2452_v7 = vsub.f32 1.0, %v2440_v38  ;;  %v4493_v17 = vpop.eup %3575  ;;  %3577 = vrcp.f32 %v2253_v11  ;;  %v2214_v18 = vsel %vm2202_vm10, 1.0, %v3641_v42 }
 0xe7b   : > { %v2507_v22 = vpack.c.bf16 %v2499_v3, %v2495_v45  ;;  %v2442_v27 = vmul.f32 %v3574_v48, %v2382_v58  ;;  %v2287_v25 = vmul.f32 1.0614054, %v4493_v17  ;;  %v2228_v20 = vand.u32 2147483647, %v4491_v19 }
 0xe7c   : > { %v2501_v36 = vmul.f32 %v2489_v15, %v4406_v59  ;;  %v2464_v37 = vmul.f32 %v2452_v7, %v2212_v33  ;;  %v4505_v63 = vadd.f32 %v4321_v16, %v4303_v49  ;;  %v2496_v31 = vmul.f32 %v2484_v24, %v4340_v44 }
 0xe7d   : > { %v2454_v28 = vsub.f32 1.0, %v2442_v27  ;;  %v2299_v59 = vadd.f32 -1.4531521, %v2287_v25  ;;  %v2395_v32 = vsub.f32 0.0, %v4430_v54  ;;  %v2240_v29 = vmul.f32 0.3275911, %v2228_v20 }
 0xe7e   : > { %v2509_v12 = vpack.c.bf16 %v2501_v36, %v2497_v39  ;;  %v2488_v47 = vadd.f32 1.0, %v2464_v37  ;;  %v4510_v30 = vmul.f32 0.70710677, %v4505_v63  ;;  %v2486_v5 = vadd.f32 1.0, %v2462_v0 }
 0xe7f   : > { %v2466_v33 = vmul.f32 %v2454_v28, %v2214_v18  ;;  %v2311_v50 = vmul.f32 %v4493_v17, %v2299_v59  ;;  %v2474_v49 = vmul.f32 0.5, %v4309_v62  ;;  %v2252_v16 = vadd.f32 1.0, %v2240_v29 }
 0xe80   : > { %v2500_v53 = vmul.f32 %v2488_v47, %v2476_v2  ;;  %v2230_v34 = vand.u32 2147483647, %v4510_v30  ;;  %v2478_v21 = vmul.f32 0.5, %v4355_v55  ;;  %v2407_v8 = vmul.f32 %v2395_v32, %v4430_v54 }
 0xe81   : > { %v2490_v52 = vadd.f32 1.0, %v2466_v33  ;;  %v2323_v44 = vadd.f32 1.4214138, %v2311_v50  ;;  %3579 = vrcp.f32 %v2252_v16  ;;  %v2498_v1 = vmul.f32 %v2486_v5, %v2474_v49 }
 0xe82   : > { %v2508_v13 = vpack.c.bf16 %v2500_v53, %v2496_v31  ;;  %v2242_v26 = vmul.f32 0.3275911, %v2230_v34  ;;  %v2397_v56 = vsub.f32 0.0, %v4475_v9  ;;  %v2427_v38 = vmul.f32 1.442695, %v2407_v8 }
 0xe83   : > { %v2502_v4 = vmul.f32 %v2490_v52, %v2478_v21  ;;  %v2335_v46 = vmul.f32 %v4493_v17, %v2323_v44  ;;  %v2396_v45 = vsub.f32 0.0, %v2228_v20  ;;  %v2398_v58 = vsub.f32 0.0, %v2230_v34 }
 0xe84   : > { %2810 = vmatprep.mubr.bf16.mxu0 %v2508_v13  ;;  %v3578_v62 = vpop.eup %3577  ;;  %v2254_v14 = vadd.f32 1.0, %v2242_v26  ;;  %v2409_v54 = vmul.f32 %v2397_v56, %v4475_v9  ;;  %v2215_v8 = vsel %vm2203_vm11, 1.0, %v3641_v42  ;;  %vm2205_vm12 = vcmp.ge.f32.partialorder %v4468_v51, 0.0 }
 0xe85   : > { %2811 = vmatmul.mubr.bf16.vlgmr.msra.gmra.mrb[36].mxu0 %v2507_v22  ;;  %v2289_v10 = vmul.f32 1.0614054, %v3578_v62  ;;  %v2510_v40 = vpack.c.bf16 %v2502_v4, %v2498_v1  ;;  %v2347_v55 = vadd.f32 -0.28449672, %v2335_v46  ;;  %v2408_v7 = vmul.f32 %v2396_v45, %v2228_v20 }
 0xe86   : > { %3581 = vrcp.f32 %v2254_v14  ;;  %v2431_v48 = vmul.f32 1.442695, %v2409_v54  ;;  %v2410_v25 = vmul.f32 %v2398_v58, %v2230_v34  ;;  %vm2204_vm13 = vcmp.ge.f32.partialorder %v4491_v19, 0.0 }
 0xe87   : > { %v2301_v35 = vadd.f32 -1.4531521, %v2289_v10  ;;  %2858 = vmatprep.mubr.bf16.mxu1 %v2510_v40  ;;  %v2359_v3 = vmul.f32 %v4493_v17, %v2347_v55  ;;  %3583 = vpow2.f32 %v2427_v38  ;;  %v2429_v9 = vmul.f32 1.442695, %v2408_v7 }
 0xe88   : > { %2859 = vmatmul.mubr.bf16.vlgmr.msra.gmra.mrb[40].mxu1 %v2509_v12  ;;  %3585 = vpow2.f32 %v2431_v48  ;;  %v2433_v20 = vmul.f32 1.442695, %v2410_v25  ;;  %v2217_v10 = vsel %vm2205_vm12, 1.0, %v3641_v42  ;;  %vm2206_vm14 = vcmp.ge.f32.partialorder %v4510_v30, 0.0  ;;  %v3059_v25 = vld [vmem:[%s4561_s13] ss:$0 sm:$0xff] }
 0xe89   : > { %v2313_v39 = vmul.f32 %v3578_v62, %v2301_v35  ;;  %v2371_v22 = vadd.f32 0.2548296, %v2359_v3  ;;  %3587 = vpow2.f32 %v2429_v9  ;;  %v2216_v35 = vsel %vm2204_vm13, 1.0, %v3641_v42 }
 0xe8a   : > { %3589 = vpow2.f32 %v2433_v20  ;;  %v2479_v51 = vmul.f32 0.5, %v4401_v41  ;;  %v2480_v3 = vmul.f32 0.5, %v4481_v6  ;;  %v2218_v48 = vsel %vm2206_vm14, 1.0, %v3641_v42 }
 0xe8b   : > { %v2325_v11 = vadd.f32 1.4214138, %v2313_v39  ;;  %v3580_v15 = vpop.eup %3579  ;;  %v2383_v47 = vmul.f32 %v4493_v17, %v2371_v22  ;;  %v2482_v22 = vmul.f32 0.5, %v4505_v63 }
 0xe8c   : > { %v2288_v0 = vmul.f32 1.0614054, %v3580_v15 }
 0xe8d   : > { %v2337_v24 = vmul.f32 %v3578_v62, %v2325_v11 }
 0xe8e   : > { %v2300_v37 = vadd.f32 -1.4531521, %v2288_v0  ;;  %v2481_v0 = vmul.f32 0.5, %v4457_v43 }
 0xe8f   : > { %v2349_v36 = vadd.f32 -0.28449672, %v2337_v24 }
 0xe90   : > { %v3582_v27 = vpop.eup %3581  ;;  %v2312_v18 = vmul.f32 %v3580_v15, %v2300_v37 }
 0xe91   : > { %v2361_v2 = vmul.f32 %v3578_v62, %v2349_v36  ;;  %v2290_v12 = vmul.f32 1.0614054, %v3582_v27  ;;  %v3584_v32 = vpop.eup %3583 }
 0xe92   : > { %v2324_v59 = vadd.f32 1.4214138, %v2312_v18  ;;  %v2443_v53 = vmul.f32 %v3584_v32, %v2383_v47  ;;  %v3586_v16 = vpop.eup %3585 }
 0xe93   : > { %v2373_v28 = vadd.f32 0.2548296, %v2361_v2  ;;  %v2302_v31 = vadd.f32 -1.4531521, %v2290_v12  ;;  %v3588_v4 = vpop.eup %3587 }
 0xe94   : > { %v2336_v29 = vmul.f32 %v3580_v15, %v2324_v59  ;;  %v2455_v52 = vsub.f32 1.0, %v2443_v53  ;;  %v3590_v55 = vpop.eup %3589 }
 0xe95   : > { %v2314_v5 = vmul.f32 %v3582_v27, %v2302_v31  ;;  %v2385_v33 = vmul.f32 %v3578_v62, %v2373_v28 }
 0xe96   : > { %v2348_v50 = vadd.f32 -0.28449672, %v2336_v29  ;;  %v2467_v46 = vmul.f32 %v2455_v52, %v2215_v8 }
 0xe97   : > { %v2326_v49 = vadd.f32 1.4214138, %v2314_v5  ;;  %v2445_v17 = vmul.f32 %v3586_v16, %v2385_v33 }
 0xe98   : > { %v2360_v34 = vmul.f32 %v3580_v15, %v2348_v50  ;;  %v2491_v54 = vadd.f32 1.0, %v2467_v46 }
 0xe99   : > { %v2338_v21 = vmul.f32 %v3582_v27, %v2326_v49  ;;  %v2457_v56 = vsub.f32 1.0, %v2445_v17 }
 0xe9a   : > { %v2372_v44 = vadd.f32 0.2548296, %v2360_v34 }
 0xe9b   : > { %v2350_v13 = vadd.f32 -0.28449672, %v2338_v21  ;;  %v2469_v38 = vmul.f32 %v2457_v56, %v2217_v10 }
 0xe9c   : > { %v2384_v26 = vmul.f32 %v3580_v15, %v2372_v44  ;;  %v2503_v15 = vmul.f32 %v2491_v54, %v2479_v51 }
 0xe9d   : > { %v2362_v1 = vmul.f32 %v3582_v27, %v2350_v13  ;;  %v2493_v7 = vadd.f32 1.0, %v2469_v38 }
 0xe9e   : > { %v2444_v62 = vmul.f32 %v3588_v4, %v2384_v26  ;;  %v2511_v30 = vpack.c.bf16 %v2503_v15, %v2503_v15 }
 0xe9f   : > { %v2374_v14 = vadd.f32 0.2548296, %v2362_v1 }
 0xea0   : > { %v2456_v23 = vsub.f32 1.0, %v2444_v62 }
 0xea1   : > { %v2386_v40 = vmul.f32 %v3582_v27, %v2374_v14  ;;  %v2505_v27 = vmul.f32 %v2493_v7, %v2481_v0 }
 0xea2   : > { %v2468_v45 = vmul.f32 %v2456_v23, %v2216_v35 }
 0xea3   : > { %v2446_v39 = vmul.f32 %v3590_v55, %v2386_v40  ;;  %v2513_v9 = vpack.c.bf16 %v2505_v27, %v2505_v27 }
 0xea4   : > { %v2492_v11 = vadd.f32 1.0, %v2468_v45 }
 0xea5   : > { %v2458_v19 = vsub.f32 1.0, %v2446_v39 }
 0xea6   : > { %v2504_v24 = vmul.f32 %v2492_v11, %v2480_v3 }
 0xea7   : > { %v2470_v58 = vmul.f32 %v2458_v19, %v2218_v48 }
 0xea8   : > { %v2512_v36 = vpack.c.bf16 %v2504_v24, %v2504_v24 }
 0xea9   : > { %v2494_v37 = vadd.f32 1.0, %v2470_v58 }
 0xeaa   : > { %2818 = vmatprep.mubr.bf16.mxu0 %v2512_v36 }
 0xeab   : > { %v2506_v41 = vmul.f32 %v2494_v37, %v2482_v22  ;;  %2819 = vmatmul.mubr.bf16.gmra.mrb[40].mxu0 %v2511_v30 }
 0xead   : > { %v2514_v6 = vpack.c.bf16 %v2506_v41, %v2506_v41 }
 0xeaf   : > { %2866 = vmatprep.mubr.bf16.mxu1 %v2514_v6 }
 0xeb0   : > { %2867 = vmatmul.mubr.bf16.gmra.mrb[44].mxu1 %v2513_v9 }
 0xf58   : > { %v3168_v42 = vpop.f32.mrb[36].mxu0 }
 0xf59   : > { %v3169_v43 = vpop.f32.mrb[37].mxu0 }
 0xf5a   : > { %v3170_v2 = vadd.f32 %v3169_v43, %v3168_v42  ;;  %v3171_v63 = vpop.f32.mrb[38].mxu0 }
 0xf5b   : > { %v3172_v18 = vpop.f32.mrb[39].mxu0  ;;  %v3196_v12 = vpop.f32.mrb[40].mxu1 }
 0xf5c   : > { %v2813_v47 = vadd.f32 %v3170_v2, %v3059_v25  ;;  %v3173_v28 = vadd.f32 %v3172_v18, %v3171_v63  ;;  %v3197_v59 = vpop.f32.mrb[41].mxu1 }
 0xf5d   : > { %v3198_v31 = vadd.f32 %v3197_v59, %v3196_v12  ;;  %v3199_v20 = vpop.f32.mrb[42].mxu1 }
 0xf5e   : > { %v2816_v32 = vadd.f32 %v3173_v28, %v3059_v25  ;;  %v3200_v29 = vpop.f32.mrb[43].mxu1 }
 0xf5f   : > { %v2861_v5 = vadd.f32 %v3198_v31, %v2813_v47  ;;  %v3201_v53 = vadd.f32 %v3200_v29, %v3199_v20 }
 0xf61   : > { %v2874_v33 = vadd.f32 %v2861_v5, %v4059_v57  ;;  %v2864_v50 = vadd.f32 %v3201_v53, %v2816_v32 }
 0xf63   : > { %2877 = vst [vmem:[%s496_s19] sm:$0xff] %v2874_v33  ;;  %v2875_v49 = vadd.f32 %v2864_v50, %v4063_v60 }
 0xf65   : > { %2878 = vst [vmem:[%s496_s19 + $0x8] sm:$0xff] %v2875_v49 }
 0xf7e   : > { %v3174_v16 = vpop.f32.mrb[40].mxu0 }
 0xf7f   : > { %v3175_v34 = vpop.f32.mrb[41].mxu0 }
 0xf80   : > { %v3176_v21 = vadd.f32 %v3175_v34, %v3174_v16  ;;  %v3177_v52 = vpop.f32.mrb[42].mxu0 }
 0xf81   : > { %v3178_v17 = vpop.f32.mrb[43].mxu0 }
 0xf82   : > { %v2821_v13 = vadd.f32 %v3176_v21, %v3059_v25 }
 0xf83   : > { %v3202_v44 = vpop.f32.mrb[44].mxu1 }
 0xf84   : > { %v3203_v8 = vpop.f32.mrb[45].mxu1 }
 0xf85   : > { %v3204_v26 = vadd.f32 %v3203_v8, %v3202_v44  ;;  %v3205_v1 = vpop.f32.mrb[46].mxu1 }
 0xf86   : > { %v3206_v4 = vpop.f32.mrb[47].mxu1 }
 0xf87   : > { %v2869_v46 = vadd.f32 %v3204_v26, %v2821_v13 }
 0xf89   : > { %v2876_v56 = vadd.f32 %v2869_v46, %v4066_v61 }
 0xf8b   : > { %2879 = vst [vmem:[%s496_s19 + $0x10] sm:$0xff] %v2876_v56 }
 0xf8c PF: > { %s25_s29 = sadd.s32 1, %s3632_s29  }
 0xf8d   : > { %p22_p3 = scmp.ge.s32.totalorder %s25_s29, 4  }
 0xf8f   :  { %24 = sbr.rel (!%p22_p3) target bundleno = 1 (0x1), region = 114 }
 0xf96   :  { %2901 = vsyncpa [#allocation3], 1 }
 0xf97   :  { %2903 = vsyncpa [#allocation3 + $0x1], 1 }

</bundles_post_ra>
